<compile_context>
chip_gen: v7x
topology: tpu7x:2x2x1
jax: 0.10.0
libtpu: 0.0.40
codegen_flags: <defaults>
</compile_context>

<pallas_src>
import functools
import math

import jax
import jax.numpy as jnp
from jax import lax
from jax.experimental import pallas as pl
from jax.experimental.pallas import tpu as pltpu  # noqa: F401  (TPU backend; defaults suffice here)

EPS = 1e-5   # nn.LayerNorm default eps
F32 = jnp.float32


def _silu(x):
    return x * jax.nn.sigmoid(x)


def _ln(x, g, b):
    mu = jnp.mean(x, axis=-1, keepdims=True)
    var = jnp.mean((x - mu) ** 2, axis=-1, keepdims=True)
    return (x - mu) * lax.rsqrt(var + EPS) * g + b


def _scatter_rows(dst_row, num_rows, values):
    """Scatter-add values[e] into row dst_row[0, e] via a 0/1 one-hot MXU matmul."""
    num_edges = dst_row.shape[1]
    onehot = (lax.broadcasted_iota(jnp.int32, (num_rows, num_edges), 0) == dst_row).astype(F32)
    return jnp.dot(onehot, values, preferred_element_type=F32)


def _gather_rows(src_col, num_rows, table):
    """Gather table[src_col[e, 0]] for every edge e via a 0/1 one-hot MXU matmul (exact)."""
    num_edges = src_col.shape[0]
    onehot = (lax.broadcasted_iota(jnp.int32, (num_edges, num_rows), 1) == src_col).astype(F32)
    return jnp.dot(onehot, table, preferred_element_type=F32)


# --------------------------- the single fused kernel ---------------------------

def _fused_kernel(
        # data
        x_ref, rbf_ref, mx_ref,
        a2a_dst_ref, a2a_j_ref, a2a_i_ref,
        a2m_src_ref, a2m_dst_ref, m2a_src_ref, m2a_dst_ref,
        a2m_w_ref, m2a_w_ref, a2m_attr_ref, m2a_attr_ref,
        # parameters
        sg_ref, sb_ref, lg_ref, lb_ref, ag_ref, ab_ref, mg_ref, mb_ref,
        ws_ref, bs_ref, wrbf_ref, wl_ref, bl_ref, wa2m_ref, wm2a_ref,
        wc1_ref, wc2_ref, bc_ref,
        # outputs
        xout_ref, mout_ref,
        *, num_nodes):
    x = x_ref[...].astype(F32)        # (E_a2a, H)  -> delta_x
    mx = mx_ref[...].astype(F32)      # (M, H)      -> delta_m_x
    num_mesh = mx.shape[0]

    # ---- short path: short_layernorm -> short_mp -> lin_rbf(rbf) * x ----
    xln = _ln(x, sg_ref[...], sb_ref[...])
    # TODO(synk): short_mp is an injected DimeNet interaction block (consumes sbf/idx_kj/idx_ji);
    # surrogate = SiLU(Linear(x)).
    x_new = _silu(jnp.dot(xln, ws_ref[...], preferred_element_type=F32) + bs_ref[...])
    gate = jnp.dot(rbf_ref[...].astype(F32), wrbf_ref[...], preferred_element_type=F32)
    a_e = gate * x_new
    # scatter(a_e, a2a_edge_index[1], dim_size=num_nodes) -- in-kernel one-hot scatter-add
    a_x = _scatter_rows(a2a_dst_ref[...], num_nodes, a_e)                        # (N, H)

    # ---- long path: long_layernorm -> long_mp ----
    mln = _ln(mx, lg_ref[...], lb_ref[...])
    # TODO(synk): long_mp is injected; surrogate = pointwise Conv3d(kernel_size=1), i.e. a
    # per-grid-point channel matmul on the flat channels-last (B*G0*G1*G2, H) layout
    # (no NCDHW permute round-trip is materialised).
    m_new = jnp.dot(mln, wl_ref[...], preferred_element_type=F32) + bl_ref[...]

    # ---- a2m message passing + a2m_layernorm, fused m-side residual epilogue ----
    # TODO(synk): a2m_mp / m2a_mp are injected; surrogate = edge_weight * Linear(edge_attr) * x[src].
    a_src = _gather_rows(a2m_src_ref[...], num_nodes, a_x)
    a2m_e = (a2m_w_ref[...] *
             jnp.dot(a2m_attr_ref[...].astype(F32), wa2m_ref[...], preferred_element_type=F32) *
             a_src)
    a2m_raw = _scatter_rows(a2m_dst_ref[...], num_mesh, a2m_e)
    a2m_msg = _ln(a2m_raw, ag_ref[...], ab_ref[...])
    # TODO(synk): repack outputs lane-dense ((rows*H)//128, 128) if H / row counts grow; after
    # fusion the two output stores total ~12 KiB so masked H=32 stores are negligible.
    mout_ref[...] = (m_new + a2m_msg + mx).astype(mout_ref.dtype)

    # ---- m2a message passing ----
    m_src = _gather_rows(m2a_src_ref[...], num_mesh, m_new)
    m2a_e = (m2a_w_ref[...] *
             jnp.dot(m2a_attr_ref[...].astype(F32), wm2a_ref[...], preferred_element_type=F32) *
             m_src)
    m2a_raw = _scatter_rows(m2a_dst_ref[...], num_nodes, m2a_e)                  # (N, H)

    # ---- m2a_combine(cat[m_j, m_i]) -> SiLU -> m2a_layernorm, fused x-side residual epilogue ----
    # Two K=H accumulating dots instead of materialising the (E, 2H) concat.
    mj = _gather_rows(a2a_j_ref[...], num_nodes, m2a_raw)
    mi = _gather_rows(a2a_i_ref[...], num_nodes, m2a_raw)
    comb = (jnp.dot(mj, wc1_ref[...], preferred_element_type=F32) +
            jnp.dot(mi, wc2_ref[...], preferred_element_type=F32) + bc_ref[...])
    m2a_msg = _ln(_silu(comb), mg_ref[...], mb_ref[...])
    xout_ref[...] = (x + x_new + m2a_msg).astype(xout_ref.dtype)


# --------------------------- forward (mirrors ShortLongMixLayer.forward) ---------------------------

def _nbytes(*arrays):
    return sum(math.prod(a.shape) * jnp.dtype(a.dtype).itemsize for a in arrays)


def short_long_mix_forward(params, x, rbf, sbf, idx_kj, idx_ji, m_x,
                           a2a_edge_index, a2m_edge_index, m2a_edge_index,
                           a2m_edge_weights, m2a_edge_weights,
                           a2m_edge_attr, m2a_edge_attr, num_nodes):
    """Entire forward pass in one pallas_call (full-array VMEM blocks, no grid)."""
    del sbf, idx_kj, idx_ji  # consumed only by the injected short_mp (surrogate ignores them)
    e, h = x.shape
    m = m_x.shape[0]
    r = rbf.shape[1]
    ea2m = a2m_edge_attr.shape[0]
    em2a = m2a_edge_attr.shape[0]

    i32 = jnp.int32
    # Pre-shape the index vectors: (1, E) rows for scatter destinations, (E, 1) cols for gather
    # sources, so the kernel builds one-hot masks with no in-kernel transposes.  (Metadata-only
    # reshapes -- not the per-call weight concat the review flagged; that concat is gone.)
    a2a_dst = a2a_edge_index[1:2, :].astype(i32)           # (1, e)
    a2a_j = a2a_edge_index[0][:, None].astype(i32)         # (e, 1)
    a2a_i = a2a_edge_index[1][:, None].astype(i32)         # (e, 1)
    a2m_src = a2m_edge_index[0][:, None].astype(i32)       # (ea2m, 1)
    a2m_dst = a2m_edge_index[1:2, :].astype(i32)           # (1, ea2m)
    m2a_src = m2a_edge_index[0][:, None].astype(i32)       # (em2a, 1)
    m2a_dst = m2a_edge_index[1:2, :].astype(i32)           # (1, em2a)

    def row(v):
        return v.reshape(1, h)

    args = (
        x, rbf, m_x,
        a2a_dst, a2a_j, a2a_i, a2m_src, a2m_dst, m2a_src, m2a_dst,
        a2m_edge_weights.reshape(ea2m, 1), m2a_edge_weights.reshape(em2a, 1),
        a2m_edge_attr, m2a_edge_attr,
        row(params["short_ln_g"]), row(params["short_ln_b"]),
        row(params["long_ln_g"]), row(params["long_ln_b"]),
        row(params["a2m_ln_g"]), row(params["a2m_ln_b"]),
        row(params["m2a_ln_g"]), row(params["m2a_ln_b"]),
        params["W_short"], row(params["b_short"]), params["W_rbf"],
        params["W_long"], row(params["b_long"]),
        params["W_a2m"], params["W_m2a"],
        params["W_comb1"], params["W_comb2"], row(params["b_comb"]),
    )

    out_shape = (jax.ShapeDtypeStruct((e, h), x.dtype),     # x_out
                 jax.ShapeDtypeStruct((m, h), m_x.dtype))   # m_out

    flops = 2 * (e * h * h + e * r * h                      # short linear + lin_rbf
                 + num_nodes * e * h                        # a2a scatter (one-hot)
                 + m * h * h                                # long linear
                 + ea2m * num_nodes * h + ea2m * r * h + m * ea2m * h     # a2m gather/lin/scatter
                 + em2a * m * h + em2a * r * h + num_nodes * em2a * h     # m2a gather/lin/scatter
                 + 2 * e * num_nodes * h                    # mj / mi gathers
                 + 2 * e * h * h)                           # combine (two K=H dots)
    transcendentals = 2 * e * h + 2 * e + 2 * m             # SiLU sigmoids + LN rsqrts
    cost = pl.CostEstimate(flops=int(flops), transcendentals=int(transcendentals),
                           bytes_accessed=int(_nbytes(*args) + (e + m) * h * 4))

    # TODO(synk): once e / m exceed a few hundred rows, add a row grid (tile multiple of 256) with
    # dimension_semantics=("parallel",) to use both v7x TensorCores, and cast MXU operands to bf16.
    kernel = functools.partial(_fused_kernel, num_nodes=num_nodes)
    return pl.pallas_call(kernel, out_shape=out_shape, cost_estimate=cost)(*args)


# --------------------------- pure-JAX reference for validation ---------------------------

def _ref_ln(x, g, b):
    mu = x.mean(-1, keepdims=True)
    var = ((x - mu) ** 2).mean(-1, keepdims=True)
    return (x - mu) / jnp.sqrt(var + EPS) * g + b


def reference_forward(params, x, rbf, sbf, idx_kj, idx_ji, m_x,
                      a2a_edge_index, a2m_edge_index, m2a_edge_index,
                      a2m_edge_weights, m2a_edge_weights,
                      a2m_edge_attr, m2a_edge_attr, num_nodes):
    del sbf, idx_kj, idx_ji
    dot = functools.partial(jnp.dot, precision=lax.Precision.HIGHEST)
    delta_m_x, delta_x = m_x, x
    xl = _ref_ln(x, params["short_ln_g"], params["short_ln_b"])
    xl = _silu(dot(xl, params["W_short"]) + params["b_short"])
    a_x = dot(rbf, params["W_rbf"]) * xl
    a_x = jnp.zeros((num_nodes, xl.shape[1]), xl.dtype).at[a2a_edge_index[1]].add(a_x)
    ml = _ref_ln(m_x, params["long_ln_g"], params["long_ln_b"])
    ml = dot(ml, params["W_long"]) + params["b_long"]
    a_src = a_x[a2m_edge_index[0]]
    a2m_e = a2m_edge_weights[:, None] * dot(a2m_edge_attr, params["W_a2m"]) * a_src
    a2m_msg = jnp.zeros_like(ml).at[a2m_edge_index[1]].add(a2m_e)
    a2m_msg = _ref_ln(a2m_msg, params["a2m_ln_g"], params["a2m_ln_b"])
    m_src = ml[m2a_edge_index[0]]
    m2a_e = m2a_edge_weights[:, None] * dot(m2a_edge_attr, params["W_m2a"]) * m_src
    m2a_msg = jnp.zeros_like(a_x).at[m2a_edge_index[1]].add(m2a_e)
    mj, mi = m2a_msg[a2a_edge_index[0]], m2a_msg[a2a_edge_index[1]]
    hcomb = _silu(dot(mj, params["W_comb1"]) + dot(mi, params["W_comb2"]) + params["b_comb"])
    m2a_msg = _ref_ln(hcomb, params["m2a_ln_g"], params["m2a_ln_b"])
    return delta_x + xl + m2a_msg, ml + a2m_msg + delta_m_x


# --------------------------- main ---------------------------

if __name__ == "__main__":
    NUM_RADIAL = 16
    HIDDEN = 32
    NUM_GRIDS = [4, 4, 4]
    BATCH = 2
    NUM_NODES = 16          # atoms
    E_A2A = 64              # atom-atom edges (rows of x / rbf)
    NUM_MESH = BATCH * NUM_GRIDS[0] * NUM_GRIDS[1] * NUM_GRIDS[2]   # 128
    E_A2M = 48
    E_M2A = 48

    key = jax.random.PRNGKey(0)
    ks = jax.random.split(key, 24)

    def nrm(k, shape, scale=0.1):
        return scale * jax.random.normal(k, shape, dtype=jnp.float32)

    params = {
        "W_rbf": nrm(ks[0], (NUM_RADIAL, HIDDEN)),
        "short_ln_g": 1.0 + nrm(ks[1], (HIDDEN,)), "short_ln_b": nrm(ks[2], (HIDDEN,)),
        "long_ln_g": 1.0 + nrm(ks[3], (HIDDEN,)), "long_ln_b": nrm(ks[4], (HIDDEN,)),
        "a2m_ln_g": 1.0 + nrm(ks[5], (HIDDEN,)), "a2m_ln_b": nrm(ks[6], (HIDDEN,)),
        "m2a_ln_g": 1.0 + nrm(ks[7], (HIDDEN,)), "m2a_ln_b": nrm(ks[8], (HIDDEN,)),
        "W_comb1": nrm(ks[9], (HIDDEN, HIDDEN)), "W_comb2": nrm(ks[10], (HIDDEN, HIDDEN)),
        "b_comb": nrm(ks[11], (HIDDEN,)),
        "W_short": nrm(ks[12], (HIDDEN, HIDDEN)), "b_short": nrm(ks[13], (HIDDEN,)),
        "W_long": nrm(ks[14], (HIDDEN, HIDDEN)), "b_long": nrm(ks[15], (HIDDEN,)),
        "W_a2m": nrm(ks[16], (NUM_RADIAL, HIDDEN)),
        "W_m2a": nrm(ks[17], (NUM_RADIAL, HIDDEN)),
    }

    dk = jax.random.split(ks[18], 12)
    x = jax.random.normal(dk[0], (E_A2A, HIDDEN), dtype=jnp.float32)
    rbf = jax.random.normal(dk[1], (E_A2A, NUM_RADIAL), dtype=jnp.float32)
    sbf = jax.random.normal(dk[2], (E_A2A, NUM_RADIAL), dtype=jnp.float32)      # unused by surrogate
    idx_kj = jax.random.randint(dk[3], (E_A2A,), 0, E_A2A)                      # unused by surrogate
    idx_ji = jax.random.randint(dk[4], (E_A2A,), 0, E_A2A)                      # unused by surrogate
    m_x = jax.random.normal(dk[5], (NUM_MESH, HIDDEN), dtype=jnp.float32)
    a2a_edge_index = jax.random.randint(dk[6], (2, E_A2A), 0, NUM_NODES)
    a2m_src = jax.random.randint(dk[7], (E_A2M,), 0, NUM_NODES)
    a2m_dst = jax.random.randint(dk[8], (E_A2M,), 0, NUM_MESH)
    a2m_edge_index = jnp.stack([a2m_src, a2m_dst])
    m2a_src = jax.random.randint(dk[9], (E_M2A,), 0, NUM_MESH)
    m2a_dst = jax.random.randint(dk[10], (E_M2A,), 0, NUM_NODES)
    m2a_edge_index = jnp.stack([m2a_src, m2a_dst])
    a2m_edge_weights = jax.random.uniform(dk[11], (E_A2M,), dtype=jnp.float32)
    m2a_edge_weights = jax.random.uniform(dk[0], (E_M2A,), dtype=jnp.float32)
    a2m_edge_attr = jax.random.normal(dk[1], (E_A2M, NUM_RADIAL), dtype=jnp.float32)
    m2a_edge_attr = jax.random.normal(dk[2], (E_M2A, NUM_RADIAL), dtype=jnp.float32)

    args = (params, x, rbf, sbf, idx_kj, idx_ji, m_x,
            a2a_edge_index, a2m_edge_index, m2a_edge_index,
            a2m_edge_weights, m2a_edge_weights,
            a2m_edge_attr, m2a_edge_attr, NUM_NODES)

    fwd = jax.jit(short_long_mix_forward, static_argnums=(14,))
    out_x, out_m = fwd(*args)
    jax.block_until_ready(out_x)
    jax.block_until_ready(out_m)

    ref_x, ref_m = reference_forward(*args)
    assert out_x.shape == (E_A2A, HIDDEN) and out_m.shape == (NUM_MESH, HIDDEN)
    assert jnp.allclose(out_x, ref_x, atol=1e-2, rtol=1e-2), \
        float(jnp.max(jnp.abs(out_x - ref_x)))
    assert jnp.allclose(out_m, ref_m, atol=1e-2, rtol=1e-2), \
        float(jnp.max(jnp.abs(out_m - ref_m)))

    print("KERNEL_OK")
</pallas_src>

<mosaic_0001>
module attributes {stable_mosaic.version = 11 : i64} {
  func.func @_fused_kernel(%arg0: memref<64x32xf32, #tpu.memory_space<vmem>>, %arg1: memref<64x16xf32, #tpu.memory_space<vmem>>, %arg2: memref<128x32xf32, #tpu.memory_space<vmem>>, %arg3: memref<1x64xi32, #tpu.memory_space<vmem>>, %arg4: memref<64x1xi32, #tpu.memory_space<vmem>>, %arg5: memref<64x1xi32, #tpu.memory_space<vmem>>, %arg6: memref<48x1xi32, #tpu.memory_space<vmem>>, %arg7: memref<1x48xi32, #tpu.memory_space<vmem>>, %arg8: memref<48x1xi32, #tpu.memory_space<vmem>>, %arg9: memref<1x48xi32, #tpu.memory_space<vmem>>, %arg10: memref<48x1xf32, #tpu.memory_space<vmem>>, %arg11: memref<48x1xf32, #tpu.memory_space<vmem>>, %arg12: memref<48x16xf32, #tpu.memory_space<vmem>>, %arg13: memref<48x16xf32, #tpu.memory_space<vmem>>, %arg14: memref<1x32xf32, #tpu.memory_space<vmem>>, %arg15: memref<1x32xf32, #tpu.memory_space<vmem>>, %arg16: memref<1x32xf32, #tpu.memory_space<vmem>>, %arg17: memref<1x32xf32, #tpu.memory_space<vmem>>, %arg18: memref<1x32xf32, #tpu.memory_space<vmem>>, %arg19: memref<1x32xf32, #tpu.memory_space<vmem>>, %arg20: memref<1x32xf32, #tpu.memory_space<vmem>>, %arg21: memref<1x32xf32, #tpu.memory_space<vmem>>, %arg22: memref<32x32xf32, #tpu.memory_space<vmem>>, %arg23: memref<1x32xf32, #tpu.memory_space<vmem>>, %arg24: memref<16x32xf32, #tpu.memory_space<vmem>>, %arg25: memref<32x32xf32, #tpu.memory_space<vmem>>, %arg26: memref<1x32xf32, #tpu.memory_space<vmem>>, %arg27: memref<16x32xf32, #tpu.memory_space<vmem>>, %arg28: memref<16x32xf32, #tpu.memory_space<vmem>>, %arg29: memref<32x32xf32, #tpu.memory_space<vmem>>, %arg30: memref<32x32xf32, #tpu.memory_space<vmem>>, %arg31: memref<1x32xf32, #tpu.memory_space<vmem>>, %arg32: memref<64x32xf32, #tpu.memory_space<vmem>>, %arg33: memref<128x32xf32, #tpu.memory_space<vmem>>) attributes {dimension_semantics = [], scalar_prefetch = 0 : i64, scratch_operands = 0 : i64, tpu.core_type = #tpu.core_type<tc>} {
    %c0 = arith.constant 0 : index
    %c0_0 = arith.constant 0 : index
    %0 = vector.load %arg0[%c0, %c0_0] : memref<64x32xf32, #tpu.memory_space<vmem>>, vector<64x32xf32>
    %c0_1 = arith.constant 0 : index
    %c0_2 = arith.constant 0 : index
    %1 = vector.load %arg2[%c0_1, %c0_2] : memref<128x32xf32, #tpu.memory_space<vmem>>, vector<128x32xf32>
    %c0_3 = arith.constant 0 : index
    %c0_4 = arith.constant 0 : index
    %2 = vector.load %arg14[%c0_3, %c0_4] : memref<1x32xf32, #tpu.memory_space<vmem>>, vector<1x32xf32>
    %c0_5 = arith.constant 0 : index
    %c0_6 = arith.constant 0 : index
    %3 = vector.load %arg15[%c0_5, %c0_6] : memref<1x32xf32, #tpu.memory_space<vmem>>, vector<1x32xf32>
    %cst = arith.constant dense<0.000000e+00> : vector<64xf32>
    %4 = vector.multi_reduction <add>, %0, %cst [1] : vector<64x32xf32> to vector<64xf32>
    %5 = vector.shape_cast %4 : vector<64xf32> to vector<64x1xf32>
    %cst_7 = arith.constant 3.200000e+01 : f32
    %6 = vector.broadcast %cst_7 : f32 to vector<64x1xf32>
    %7 = arith.divf %5, %6 : vector<64x1xf32>
    %8 = vector.broadcast %7 : vector<64x1xf32> to vector<64x32xf32>
    %9 = arith.subf %0, %8 : vector<64x32xf32>
    %10 = arith.mulf %9, %9 : vector<64x32xf32>
    %cst_8 = arith.constant dense<0.000000e+00> : vector<64xf32>
    %11 = vector.multi_reduction <add>, %10, %cst_8 [1] : vector<64x32xf32> to vector<64xf32>
    %12 = vector.shape_cast %11 : vector<64xf32> to vector<64x1xf32>
    %cst_9 = arith.constant 3.200000e+01 : f32
    %13 = vector.broadcast %cst_9 : f32 to vector<64x1xf32>
    %14 = arith.divf %12, %13 : vector<64x1xf32>
    %15 = vector.broadcast %7 : vector<64x1xf32> to vector<64x32xf32>
    %16 = arith.subf %0, %15 : vector<64x32xf32>
    %cst_10 = arith.constant 9.99999974E-6 : f32
    %17 = vector.broadcast %cst_10 : f32 to vector<64x1xf32>
    %18 = arith.addf %14, %17 : vector<64x1xf32>
    %19 = math.rsqrt %18 : vector<64x1xf32>
    %20 = vector.broadcast %19 : vector<64x1xf32> to vector<64x32xf32>
    %21 = arith.mulf %16, %20 : vector<64x32xf32>
    %22 = vector.broadcast %2 : vector<1x32xf32> to vector<64x32xf32>
    %23 = arith.mulf %21, %22 : vector<64x32xf32>
    %24 = vector.broadcast %3 : vector<1x32xf32> to vector<64x32xf32>
    %25 = arith.addf %23, %24 : vector<64x32xf32>
    %c0_11 = arith.constant 0 : index
    %c0_12 = arith.constant 0 : index
    %26 = vector.load %arg22[%c0_11, %c0_12] : memref<32x32xf32, #tpu.memory_space<vmem>>, vector<32x32xf32>
    %cst_13 = arith.constant dense<0.000000e+00> : vector<64x32xf32>
    %27 = tpu.matmul %25, %26, %cst_13 {dimension_numbers = #tpu.dot_dimension_numbers<[1], [0], [0], [1], [0, 0, 1, 1], [], []>} : vector<64x32xf32>, vector<32x32xf32>, vector<64x32xf32> -> vector<64x32xf32>
    %c0_14 = arith.constant 0 : index
    %c0_15 = arith.constant 0 : index
    %28 = vector.load %arg23[%c0_14, %c0_15] : memref<1x32xf32, #tpu.memory_space<vmem>>, vector<1x32xf32>
    %29 = vector.broadcast %28 : vector<1x32xf32> to vector<64x32xf32>
    %30 = arith.addf %27, %29 : vector<64x32xf32>
    %31 = arith.negf %30 : vector<64x32xf32>
    %32 = math.exp %31 : vector<64x32xf32>
    %cst_16 = arith.constant 1.000000e+00 : f32
    %33 = vector.broadcast %cst_16 : f32 to vector<64x32xf32>
    %34 = arith.addf %33, %32 : vector<64x32xf32>
    %35 = arith.divf %33, %34 : vector<64x32xf32>
    %36 = arith.mulf %30, %35 : vector<64x32xf32>
    %c0_17 = arith.constant 0 : index
    %c0_18 = arith.constant 0 : index
    %37 = vector.load %arg1[%c0_17, %c0_18] : memref<64x16xf32, #tpu.memory_space<vmem>>, vector<64x16xf32>
    %c0_19 = arith.constant 0 : index
    %c0_20 = arith.constant 0 : index
    %38 = vector.load %arg24[%c0_19, %c0_20] : memref<16x32xf32, #tpu.memory_space<vmem>>, vector<16x32xf32>
    %cst_21 = arith.constant dense<0.000000e+00> : vector<64x32xf32>
    %39 = tpu.matmul %37, %38, %cst_21 {dimension_numbers = #tpu.dot_dimension_numbers<[1], [0], [0], [1], [0, 0, 1, 1], [], []>} : vector<64x16xf32>, vector<16x32xf32>, vector<64x32xf32> -> vector<64x32xf32>
    %40 = arith.mulf %39, %36 : vector<64x32xf32>
    %c0_22 = arith.constant 0 : index
    %c0_23 = arith.constant 0 : index
    %41 = vector.load %arg3[%c0_22, %c0_23] : memref<1x64xi32, #tpu.memory_space<vmem>>, vector<1x64xi32>
    %42 = tpu.iota {dimensions = array<i32: 0>} : vector<16x64xi32>
    %43 = vector.broadcast %41 : vector<1x64xi32> to vector<16x64xi32>
    %44 = arith.cmpi eq, %42, %43 : vector<16x64xi32>
    %45 = arith.extui %44 : vector<16x64xi1> to vector<16x64xi32>
    %46 = arith.sitofp %45 : vector<16x64xi32> to vector<16x64xf32>
    %cst_24 = arith.constant dense<0.000000e+00> : vector<16x32xf32>
    %47 = tpu.matmul %46, %40, %cst_24 {dimension_numbers = #tpu.dot_dimension_numbers<[1], [0], [0], [1], [0, 0, 1, 1], [], []>} : vector<16x64xf32>, vector<64x32xf32>, vector<16x32xf32> -> vector<16x32xf32>
    %c0_25 = arith.constant 0 : index
    %c0_26 = arith.constant 0 : index
    %48 = vector.load %arg16[%c0_25, %c0_26] : memref<1x32xf32, #tpu.memory_space<vmem>>, vector<1x32xf32>
    %c0_27 = arith.constant 0 : index
    %c0_28 = arith.constant 0 : index
    %49 = vector.load %arg17[%c0_27, %c0_28] : memref<1x32xf32, #tpu.memory_space<vmem>>, vector<1x32xf32>
    %cst_29 = arith.constant dense<0.000000e+00> : vector<128xf32>
    %50 = vector.multi_reduction <add>, %1, %cst_29 [1] : vector<128x32xf32> to vector<128xf32>
    %51 = vector.shape_cast %50 : vector<128xf32> to vector<128x1xf32>
    %cst_30 = arith.constant 3.200000e+01 : f32
    %52 = vector.broadcast %cst_30 : f32 to vector<128x1xf32>
    %53 = arith.divf %51, %52 : vector<128x1xf32>
    %54 = vector.broadcast %53 : vector<128x1xf32> to vector<128x32xf32>
    %55 = arith.subf %1, %54 : vector<128x32xf32>
    %56 = arith.mulf %55, %55 : vector<128x32xf32>
    %cst_31 = arith.constant dense<0.000000e+00> : vector<128xf32>
    %57 = vector.multi_reduction <add>, %56, %cst_31 [1] : vector<128x32xf32> to vector<128xf32>
    %58 = vector.shape_cast %57 : vector<128xf32> to vector<128x1xf32>
    %cst_32 = arith.constant 3.200000e+01 : f32
    %59 = vector.broadcast %cst_32 : f32 to vector<128x1xf32>
    %60 = arith.divf %58, %59 : vector<128x1xf32>
    %61 = vector.broadcast %53 : vector<128x1xf32> to vector<128x32xf32>
    %62 = arith.subf %1, %61 : vector<128x32xf32>
    %cst_33 = arith.constant 9.99999974E-6 : f32
    %63 = vector.broadcast %cst_33 : f32 to vector<128x1xf32>
    %64 = arith.addf %60, %63 : vector<128x1xf32>
    %65 = math.rsqrt %64 : vector<128x1xf32>
    %66 = vector.broadcast %65 : vector<128x1xf32> to vector<128x32xf32>
    %67 = arith.mulf %62, %66 : vector<128x32xf32>
    %68 = vector.broadcast %48 : vector<1x32xf32> to vector<128x32xf32>
    %69 = arith.mulf %67, %68 : vector<128x32xf32>
    %70 = vector.broadcast %49 : vector<1x32xf32> to vector<128x32xf32>
    %71 = arith.addf %69, %70 : vector<128x32xf32>
    %c0_34 = arith.constant 0 : index
    %c0_35 = arith.constant 0 : index
    %72 = vector.load %arg25[%c0_34, %c0_35] : memref<32x32xf32, #tpu.memory_space<vmem>>, vector<32x32xf32>
    %cst_36 = arith.constant dense<0.000000e+00> : vector<128x32xf32>
    %73 = tpu.matmul %71, %72, %cst_36 {dimension_numbers = #tpu.dot_dimension_numbers<[1], [0], [0], [1], [0, 0, 1, 1], [], []>} : vector<128x32xf32>, vector<32x32xf32>, vector<128x32xf32> -> vector<128x32xf32>
    %c0_37 = arith.constant 0 : index
    %c0_38 = arith.constant 0 : index
    %74 = vector.load %arg26[%c0_37, %c0_38] : memref<1x32xf32, #tpu.memory_space<vmem>>, vector<1x32xf32>
    %75 = vector.broadcast %74 : vector<1x32xf32> to vector<128x32xf32>
    %76 = arith.addf %73, %75 : vector<128x32xf32>
    %c0_39 = arith.constant 0 : index
    %c0_40 = arith.constant 0 : index
    %77 = vector.load %arg6[%c0_39, %c0_40] : memref<48x1xi32, #tpu.memory_space<vmem>>, vector<48x1xi32>
    %78 = tpu.iota {dimensions = array<i32: 1>} : vector<48x16xi32>
    %79 = vector.broadcast %77 : vector<48x1xi32> to vector<48x16xi32>
    %80 = arith.cmpi eq, %78, %79 : vector<48x16xi32>
    %81 = arith.extui %80 : vector<48x16xi1> to vector<48x16xi32>
    %82 = arith.sitofp %81 : vector<48x16xi32> to vector<48x16xf32>
    %cst_41 = arith.constant dense<0.000000e+00> : vector<48x32xf32>
    %83 = tpu.matmul %82, %47, %cst_41 {dimension_numbers = #tpu.dot_dimension_numbers<[1], [0], [0], [1], [0, 0, 1, 1], [], []>} : vector<48x16xf32>, vector<16x32xf32>, vector<48x32xf32> -> vector<48x32xf32>
    %c0_42 = arith.constant 0 : index
    %c0_43 = arith.constant 0 : index
    %84 = vector.load %arg10[%c0_42, %c0_43] : memref<48x1xf32, #tpu.memory_space<vmem>>, vector<48x1xf32>
    %c0_44 = arith.constant 0 : index
    %c0_45 = arith.constant 0 : index
    %85 = vector.load %arg12[%c0_44, %c0_45] : memref<48x16xf32, #tpu.memory_space<vmem>>, vector<48x16xf32>
    %c0_46 = arith.constant 0 : index
    %c0_47 = arith.constant 0 : index
    %86 = vector.load %arg27[%c0_46, %c0_47] : memref<16x32xf32, #tpu.memory_space<vmem>>, vector<16x32xf32>
    %cst_48 = arith.constant dense<0.000000e+00> : vector<48x32xf32>
    %87 = tpu.matmul %85, %86, %cst_48 {dimension_numbers = #tpu.dot_dimension_numbers<[1], [0], [0], [1], [0, 0, 1, 1], [], []>} : vector<48x16xf32>, vector<16x32xf32>, vector<48x32xf32> -> vector<48x32xf32>
    %88 = vector.broadcast %84 : vector<48x1xf32> to vector<48x32xf32>
    %89 = arith.mulf %88, %87 : vector<48x32xf32>
    %90 = arith.mulf %89, %83 : vector<48x32xf32>
    %c0_49 = arith.constant 0 : index
    %c0_50 = arith.constant 0 : index
    %91 = vector.load %arg7[%c0_49, %c0_50] : memref<1x48xi32, #tpu.memory_space<vmem>>, vector<1x48xi32>
    %92 = tpu.iota {dimensions = array<i32: 0>} : vector<128x48xi32>
    %93 = vector.broadcast %91 : vector<1x48xi32> to vector<128x48xi32>
    %94 = arith.cmpi eq, %92, %93 : vector<128x48xi32>
    %95 = arith.extui %94 : vector<128x48xi1> to vector<128x48xi32>
    %96 = arith.sitofp %95 : vector<128x48xi32> to vector<128x48xf32>
    %cst_51 = arith.constant dense<0.000000e+00> : vector<128x32xf32>
    %97 = tpu.matmul %96, %90, %cst_51 {dimension_numbers = #tpu.dot_dimension_numbers<[1], [0], [0], [1], [0, 0, 1, 1], [], []>} : vector<128x48xf32>, vector<48x32xf32>, vector<128x32xf32> -> vector<128x32xf32>
    %c0_52 = arith.constant 0 : index
    %c0_53 = arith.constant 0 : index
    %98 = vector.load %arg18[%c0_52, %c0_53] : memref<1x32xf32, #tpu.memory_space<vmem>>, vector<1x32xf32>
    %c0_54 = arith.constant 0 : index
    %c0_55 = arith.constant 0 : index
    %99 = vector.load %arg19[%c0_54, %c0_55] : memref<1x32xf32, #tpu.memory_space<vmem>>, vector<1x32xf32>
    %cst_56 = arith.constant dense<0.000000e+00> : vector<128xf32>
    %100 = vector.multi_reduction <add>, %97, %cst_56 [1] : vector<128x32xf32> to vector<128xf32>
    %101 = vector.shape_cast %100 : vector<128xf32> to vector<128x1xf32>
    %cst_57 = arith.constant 3.200000e+01 : f32
    %102 = vector.broadcast %cst_57 : f32 to vector<128x1xf32>
    %103 = arith.divf %101, %102 : vector<128x1xf32>
    %104 = vector.broadcast %103 : vector<128x1xf32> to vector<128x32xf32>
    %105 = arith.subf %97, %104 : vector<128x32xf32>
    %106 = arith.mulf %105, %105 : vector<128x32xf32>
    %cst_58 = arith.constant dense<0.000000e+00> : vector<128xf32>
    %107 = vector.multi_reduction <add>, %106, %cst_58 [1] : vector<128x32xf32> to vector<128xf32>
    %108 = vector.shape_cast %107 : vector<128xf32> to vector<128x1xf32>
    %cst_59 = arith.constant 3.200000e+01 : f32
    %109 = vector.broadcast %cst_59 : f32 to vector<128x1xf32>
    %110 = arith.divf %108, %109 : vector<128x1xf32>
    %111 = vector.broadcast %103 : vector<128x1xf32> to vector<128x32xf32>
    %112 = arith.subf %97, %111 : vector<128x32xf32>
    %cst_60 = arith.constant 9.99999974E-6 : f32
    %113 = vector.broadcast %cst_60 : f32 to vector<128x1xf32>
    %114 = arith.addf %110, %113 : vector<128x1xf32>
    %115 = math.rsqrt %114 : vector<128x1xf32>
    %116 = vector.broadcast %115 : vector<128x1xf32> to vector<128x32xf32>
    %117 = arith.mulf %112, %116 : vector<128x32xf32>
    %118 = vector.broadcast %98 : vector<1x32xf32> to vector<128x32xf32>
    %119 = arith.mulf %117, %118 : vector<128x32xf32>
    %120 = vector.broadcast %99 : vector<1x32xf32> to vector<128x32xf32>
    %121 = arith.addf %119, %120 : vector<128x32xf32>
    %122 = arith.addf %76, %121 : vector<128x32xf32>
    %123 = arith.addf %122, %1 : vector<128x32xf32>
    %c0_61 = arith.constant 0 : index
    %c0_62 = arith.constant 0 : index
    %124 = vector.load %arg33[%c0_61, %c0_62] : memref<128x32xf32, #tpu.memory_space<vmem>>, vector<128x32xf32>
    tpu.vector_store %arg33[%c0_61, %c0_62], %123 {strides = array<i32>} : memref<128x32xf32, #tpu.memory_space<vmem>>, vector<128x32xf32>,
    %c0_63 = arith.constant 0 : index
    %c0_64 = arith.constant 0 : index
    %125 = vector.load %arg8[%c0_63, %c0_64] : memref<48x1xi32, #tpu.memory_space<vmem>>, vector<48x1xi32>
    %126 = tpu.iota {dimensions = array<i32: 1>} : vector<48x128xi32>
    %127 = vector.broadcast %125 : vector<48x1xi32> to vector<48x128xi32>
    %128 = arith.cmpi eq, %126, %127 : vector<48x128xi32>
    %129 = arith.extui %128 : vector<48x128xi1> to vector<48x128xi32>
    %130 = arith.sitofp %129 : vector<48x128xi32> to vector<48x128xf32>
    %cst_65 = arith.constant dense<0.000000e+00> : vector<48x32xf32>
    %131 = tpu.matmul %130, %76, %cst_65 {dimension_numbers = #tpu.dot_dimension_numbers<[1], [0], [0], [1], [0, 0, 1, 1], [], []>} : vector<48x128xf32>, vector<128x32xf32>, vector<48x32xf32> -> vector<48x32xf32>
    %c0_66 = arith.constant 0 : index
    %c0_67 = arith.constant 0 : index
    %132 = vector.load %arg11[%c0_66, %c0_67] : memref<48x1xf32, #tpu.memory_space<vmem>>, vector<48x1xf32>
    %c0_68 = arith.constant 0 : index
    %c0_69 = arith.constant 0 : index
    %133 = vector.load %arg13[%c0_68, %c0_69] : memref<48x16xf32, #tpu.memory_space<vmem>>, vector<48x16xf32>
    %c0_70 = arith.constant 0 : index
    %c0_71 = arith.constant 0 : index
    %134 = vector.load %arg28[%c0_70, %c0_71] : memref<16x32xf32, #tpu.memory_space<vmem>>, vector<16x32xf32>
    %cst_72 = arith.constant dense<0.000000e+00> : vector<48x32xf32>
    %135 = tpu.matmul %133, %134, %cst_72 {dimension_numbers = #tpu.dot_dimension_numbers<[1], [0], [0], [1], [0, 0, 1, 1], [], []>} : vector<48x16xf32>, vector<16x32xf32>, vector<48x32xf32> -> vector<48x32xf32>
    %136 = vector.broadcast %132 : vector<48x1xf32> to vector<48x32xf32>
    %137 = arith.mulf %136, %135 : vector<48x32xf32>
    %138 = arith.mulf %137, %131 : vector<48x32xf32>
    %c0_73 = arith.constant 0 : index
    %c0_74 = arith.constant 0 : index
    %139 = vector.load %arg9[%c0_73, %c0_74] : memref<1x48xi32, #tpu.memory_space<vmem>>, vector<1x48xi32>
    %140 = tpu.iota {dimensions = array<i32: 0>} : vector<16x48xi32>
    %141 = vector.broadcast %139 : vector<1x48xi32> to vector<16x48xi32>
    %142 = arith.cmpi eq, %140, %141 : vector<16x48xi32>
    %143 = arith.extui %142 : vector<16x48xi1> to vector<16x48xi32>
    %144 = arith.sitofp %143 : vector<16x48xi32> to vector<16x48xf32>
    %cst_75 = arith.constant dense<0.000000e+00> : vector<16x32xf32>
    %145 = tpu.matmul %144, %138, %cst_75 {dimension_numbers = #tpu.dot_dimension_numbers<[1], [0], [0], [1], [0, 0, 1, 1], [], []>} : vector<16x48xf32>, vector<48x32xf32>, vector<16x32xf32> -> vector<16x32xf32>
    %c0_76 = arith.constant 0 : index
    %c0_77 = arith.constant 0 : index
    %146 = vector.load %arg4[%c0_76, %c0_77] : memref<64x1xi32, #tpu.memory_space<vmem>>, vector<64x1xi32>
    %147 = tpu.iota {dimensions = array<i32: 1>} : vector<64x16xi32>
    %148 = vector.broadcast %146 : vector<64x1xi32> to vector<64x16xi32>
    %149 = arith.cmpi eq, %147, %148 : vector<64x16xi32>
    %150 = arith.extui %149 : vector<64x16xi1> to vector<64x16xi32>
    %151 = arith.sitofp %150 : vector<64x16xi32> to vector<64x16xf32>
    %cst_78 = arith.constant dense<0.000000e+00> : vector<64x32xf32>
    %152 = tpu.matmul %151, %145, %cst_78 {dimension_numbers = #tpu.dot_dimension_numbers<[1], [0], [0], [1], [0, 0, 1, 1], [], []>} : vector<64x16xf32>, vector<16x32xf32>, vector<64x32xf32> -> vector<64x32xf32>
    %c0_79 = arith.constant 0 : index
    %c0_80 = arith.constant 0 : index
    %153 = vector.load %arg5[%c0_79, %c0_80] : memref<64x1xi32, #tpu.memory_space<vmem>>, vector<64x1xi32>
    %154 = tpu.iota {dimensions = array<i32: 1>} : vector<64x16xi32>
    %155 = vector.broadcast %153 : vector<64x1xi32> to vector<64x16xi32>
    %156 = arith.cmpi eq, %154, %155 : vector<64x16xi32>
    %157 = arith.extui %156 : vector<64x16xi1> to vector<64x16xi32>
    %158 = arith.sitofp %157 : vector<64x16xi32> to vector<64x16xf32>
    %cst_81 = arith.constant dense<0.000000e+00> : vector<64x32xf32>
    %159 = tpu.matmul %158, %145, %cst_81 {dimension_numbers = #tpu.dot_dimension_numbers<[1], [0], [0], [1], [0, 0, 1, 1], [], []>} : vector<64x16xf32>, vector<16x32xf32>, vector<64x32xf32> -> vector<64x32xf32>
    %c0_82 = arith.constant 0 : index
    %c0_83 = arith.constant 0 : index
    %160 = vector.load %arg29[%c0_82, %c0_83] : memref<32x32xf32, #tpu.memory_space<vmem>>, vector<32x32xf32>
    %cst_84 = arith.constant dense<0.000000e+00> : vector<64x32xf32>
    %161 = tpu.matmul %152, %160, %cst_84 {dimension_numbers = #tpu.dot_dimension_numbers<[1], [0], [0], [1], [0, 0, 1, 1], [], []>} : vector<64x32xf32>, vector<32x32xf32>, vector<64x32xf32> -> vector<64x32xf32>
    %c0_85 = arith.constant 0 : index
    %c0_86 = arith.constant 0 : index
    %162 = vector.load %arg30[%c0_85, %c0_86] : memref<32x32xf32, #tpu.memory_space<vmem>>, vector<32x32xf32>
    %cst_87 = arith.constant dense<0.000000e+00> : vector<64x32xf32>
    %163 = tpu.matmul %159, %162, %cst_87 {dimension_numbers = #tpu.dot_dimension_numbers<[1], [0], [0], [1], [0, 0, 1, 1], [], []>} : vector<64x32xf32>, vector<32x32xf32>, vector<64x32xf32> -> vector<64x32xf32>
    %164 = arith.addf %161, %163 : vector<64x32xf32>
    %c0_88 = arith.constant 0 : index
    %c0_89 = arith.constant 0 : index
    %165 = vector.load %arg31[%c0_88, %c0_89] : memref<1x32xf32, #tpu.memory_space<vmem>>, vector<1x32xf32>
    %166 = vector.broadcast %165 : vector<1x32xf32> to vector<64x32xf32>
    %167 = arith.addf %164, %166 : vector<64x32xf32>
    %168 = arith.negf %167 : vector<64x32xf32>
    %169 = math.exp %168 : vector<64x32xf32>
    %cst_90 = arith.constant 1.000000e+00 : f32
    %170 = vector.broadcast %cst_90 : f32 to vector<64x32xf32>
    %171 = arith.addf %170, %169 : vector<64x32xf32>
    %172 = arith.divf %170, %171 : vector<64x32xf32>
    %173 = arith.mulf %167, %172 : vector<64x32xf32>
    %c0_91 = arith.constant 0 : index
    %c0_92 = arith.constant 0 : index
    %174 = vector.load %arg20[%c0_91, %c0_92] : memref<1x32xf32, #tpu.memory_space<vmem>>, vector<1x32xf32>
    %c0_93 = arith.constant 0 : index
    %c0_94 = arith.constant 0 : index
    %175 = vector.load %arg21[%c0_93, %c0_94] : memref<1x32xf32, #tpu.memory_space<vmem>>, vector<1x32xf32>
    %cst_95 = arith.constant dense<0.000000e+00> : vector<64xf32>
    %176 = vector.multi_reduction <add>, %173, %cst_95 [1] : vector<64x32xf32> to vector<64xf32>
    %177 = vector.shape_cast %176 : vector<64xf32> to vector<64x1xf32>
    %cst_96 = arith.constant 3.200000e+01 : f32
    %178 = vector.broadcast %cst_96 : f32 to vector<64x1xf32>
    %179 = arith.divf %177, %178 : vector<64x1xf32>
    %180 = vector.broadcast %179 : vector<64x1xf32> to vector<64x32xf32>
    %181 = arith.subf %173, %180 : vector<64x32xf32>
    %182 = arith.mulf %181, %181 : vector<64x32xf32>
    %cst_97 = arith.constant dense<0.000000e+00> : vector<64xf32>
    %183 = vector.multi_reduction <add>, %182, %cst_97 [1] : vector<64x32xf32> to vector<64xf32>
    %184 = vector.shape_cast %183 : vector<64xf32> to vector<64x1xf32>
    %cst_98 = arith.constant 3.200000e+01 : f32
    %185 = vector.broadcast %cst_98 : f32 to vector<64x1xf32>
    %186 = arith.divf %184, %185 : vector<64x1xf32>
    %187 = vector.broadcast %179 : vector<64x1xf32> to vector<64x32xf32>
    %188 = arith.subf %173, %187 : vector<64x32xf32>
    %cst_99 = arith.constant 9.99999974E-6 : f32
    %189 = vector.broadcast %cst_99 : f32 to vector<64x1xf32>
    %190 = arith.addf %186, %189 : vector<64x1xf32>
    %191 = math.rsqrt %190 : vector<64x1xf32>
    %192 = vector.broadcast %191 : vector<64x1xf32> to vector<64x32xf32>
    %193 = arith.mulf %188, %192 : vector<64x32xf32>
    %194 = vector.broadcast %174 : vector<1x32xf32> to vector<64x32xf32>
    %195 = arith.mulf %193, %194 : vector<64x32xf32>
    %196 = vector.broadcast %175 : vector<1x32xf32> to vector<64x32xf32>
    %197 = arith.addf %195, %196 : vector<64x32xf32>
    %198 = arith.addf %0, %36 : vector<64x32xf32>
    %199 = arith.addf %198, %197 : vector<64x32xf32>
    %c0_100 = arith.constant 0 : index
    %c0_101 = arith.constant 0 : index
    %200 = vector.load %arg32[%c0_100, %c0_101] : memref<64x32xf32, #tpu.memory_space<vmem>>, vector<64x32xf32>
    tpu.vector_store %arg32[%c0_100, %c0_101], %199 {strides = array<i32>} : memref<64x32xf32, #tpu.memory_space<vmem>>, vector<64x32xf32>,
    return
  }
}

</mosaic_0001>

<bundles_post_ra>
// kernel: short_long_mix_forward.1
= control target key start
LH: loop header
LB: loop body
LE: loop exit
PB: predicated region body
PF: predicated region fallthrough
CT: control target
= control target key end

     0   :  { %vm163_vm0 = vcmask 261120   ;;  %s4394_s6 = smov 2   ;;  %s4395_s10 = smov 22   ;;  %vm503_vm1 = vcmask 130048   ;;  %vm655_vm3 = vcmask 523264   ;;  %vm1588_vm12 = vcmask 392192   ;;  %s5868_s0 = inlined_call_operand.smem [shape: u32[34], index: -1, kind: input, shape index: {}] }
   0x1   :  { %s4438_s5 = sld [smem:[%s5868_s0]]   ;;  %s4396_s14 = smov 25  }
   0x2   :  { %s4469_s9 = sld [smem:[%s5868_s0 + %s4394_s6]]   ;;  %s4397_s18 = smov 24  }
   0x3   :  { %s4657_s13 = sld [smem:[%s5868_s0 + %s4395_s10]]   ;;  %s4398_s22 = smov 1  }
   0x4   :  { %s4714_s17 = sld [smem:[%s5868_s0 + %s4396_s14]]   ;;  %s4399_s26 = smov 8  }
   0x5   :  { %s3378_s21 = sld [smem:[%s5868_s0 + %s4397_s18]]   ;;  %s4401_s30 = smov 11  }
   0x6   :  { %s3355_s25 = sld [smem:[%s5868_s0 + %s4398_s22]]   ;;  %s4402_s4 = smov 6  }
   0x7   :  { %v4441_v0 = vld [vmem:[%s4438_s5] sm:$0xff]  ;;  %v4444_v1 = vld [vmem:[%s4438_s5 + $0x10] sm:$0xff]  ;;  %v4447_v2 = vld [vmem:[%s4438_s5 + $0x8] sm:$0xff]  ;;  %s4740_s29 = sld [smem:[%s5868_s0 + %s4399_s26]]   ;;  %s4403_s10 = smov 4  }
   0x8   :  { %v164_v3 = vsel %vm163_vm0, %v4441_v0, 0.0  ;;  %v170_v4 = vsel %vm163_vm0, %v4444_v1, 0.0  ;;  %v4454_v5 = vld [vmem:[%s4438_s5 + $0x18] sm:$0xff]  ;;  %v167_v6 = vsel %vm163_vm0, %v4447_v2, 0.0  ;;  %v4461_v8 = vld [vmem:[%s4438_s5 + $0x20] sm:$0xff]  ;;  %v4464_v9 = vld [vmem:[%s4438_s5 + $0x28] sm:$0xff]  ;;  %s3365_s3 = sld [smem:[%s5868_s0 + %s4401_s30]]  }
   0x9   :  { %165 = vadd.xlane.f32.xlu0 %v164_v3  ;;  %171 = vadd.xlane.f32.xlu1 %v170_v4  ;;  %v173_v7 = vsel %vm163_vm0, %v4454_v5, 0.0  ;;  %v176_v10 = vsel %vm163_vm0, %v4461_v8, 0.0  ;;  %v179_v11 = vsel %vm163_vm0, %v4464_v9, 0.0  ;;  %v4476_v12 = vld [vmem:[%s4438_s5 + $0x30] sm:$0xff]  ;;  %v4479_v13 = vld [vmem:[%s4438_s5 + $0x38] sm:$0xff]  ;;  %v4486_v16 = vld [vmem:[%s4469_s9] sm:$0xff]  ;;  %s4758_s8 = sld [smem:[%s5868_s0 + %s4402_s4]]  }
   0xa   :  { %v182_v14 = vsel %vm163_vm0, %v4476_v12, 0.0  ;;  %v185_v15 = vsel %vm163_vm0, %v4479_v13, 0.0  ;;  %v4489_v17 = vld [vmem:[%s4469_s9 + $0x8] sm:$0xff]  ;;  %v739_v18 = vsel %vm163_vm0, %v4486_v16, 0.0  ;;  %v4496_v20 = vld [vmem:[%s4469_s9 + $0x10] sm:$0xff]  ;;  %v4499_v21 = vld [vmem:[%s4469_s9 + $0x18] sm:$0xff] }
   0xb   :  { %v742_v19 = vsel %vm163_vm0, %v4489_v17, 0.0  ;;  %v745_v22 = vsel %vm163_vm0, %v4496_v20, 0.0  ;;  %v748_v23 = vsel %vm163_vm0, %v4499_v21, 0.0  ;;  %v4506_v24 = vld [vmem:[%s4469_s9 + $0x20] sm:$0xff]  ;;  %v4509_v25 = vld [vmem:[%s4469_s9 + $0x28] sm:$0xff]  ;;  %v4516_v28 = vld [vmem:[%s4469_s9 + $0x30] sm:$0xff] }
   0xc   :  { %v751_v26 = vsel %vm163_vm0, %v4506_v24, 0.0  ;;  %v754_v27 = vsel %vm163_vm0, %v4509_v25, 0.0  ;;  %v4519_v29 = vld [vmem:[%s4469_s9 + $0x38] sm:$0xff]  ;;  %v757_v30 = vsel %vm163_vm0, %v4516_v28, 0.0  ;;  %v4526_v32 = vld [vmem:[%s4469_s9 + $0x40] sm:$0xff]  ;;  %v4529_v33 = vld [vmem:[%s4469_s9 + $0x48] sm:$0xff] }
   0xd   :  { %168 = vadd.xlane.f32.xlu0 %v167_v6  ;;  %174 = vadd.xlane.f32.xlu1 %v173_v7  ;;  %v760_v31 = vsel %vm163_vm0, %v4519_v29, 0.0  ;;  %v763_v34 = vsel %vm163_vm0, %v4526_v32, 0.0  ;;  %v766_v35 = vsel %vm163_vm0, %v4529_v33, 0.0  ;;  %v4536_v36 = vld [vmem:[%s4469_s9 + $0x50] sm:$0xff]  ;;  %v4539_v37 = vld [vmem:[%s4469_s9 + $0x58] sm:$0xff]  ;;  %v4546_v40 = vld [vmem:[%s4469_s9 + $0x60] sm:$0xff] }
   0xe   :  { %v769_v38 = vsel %vm163_vm0, %v4536_v36, 0.0  ;;  %v772_v39 = vsel %vm163_vm0, %v4539_v37, 0.0  ;;  %v4549_v41 = vld [vmem:[%s4469_s9 + $0x68] sm:$0xff]  ;;  %v775_v42 = vsel %vm163_vm0, %v4546_v40, 0.0  ;;  %v4556_v44 = vld [vmem:[%s4469_s9 + $0x70] sm:$0xff]  ;;  %v4559_v45 = vld [vmem:[%s4469_s9 + $0x78] sm:$0xff] }
   0xf   :  { %v778_v43 = vsel %vm163_vm0, %v4549_v41, 0.0  ;;  %v781_v46 = vsel %vm163_vm0, %v4556_v44, 0.0  ;;  %v784_v47 = vsel %vm163_vm0, %v4559_v45, 0.0  ;;  %s4404_s14 = smov 5   ;;  %s4405_s19 = smov 10  }
  0x10   :  { %s4777_s18 = sld [smem:[%s5868_s0 + %s4404_s14]]   ;;  %s4406_s23 = smov 14  }
  0x11   :  { %177 = vadd.xlane.f32.xlu0 %v176_v10  ;;  %180 = vadd.xlane.f32.xlu1 %v179_v11  ;;  %s4790_s22 = sld [smem:[%s5868_s0 + %s4405_s19]]   ;;  %s4407_s27 = smov 15  }
  0x12   :  { %s3368_s26 = sld [smem:[%s5868_s0 + %s4406_s23]]   ;;  %s4409_s4 = smov 17  }
  0x13   :  { %s3369_s30 = sld [smem:[%s5868_s0 + %s4407_s27]]   ;;  %s4413_s14 = smov 23  }
  0x14   :  { %s4414_s19 = smov 26   ;;  %s4415_s23 = smov 28  }
  0x15   :  { %183 = vadd.xlane.f32.xlu0 %v182_v14  ;;  %186 = vadd.xlane.f32.xlu1 %v185_v15  ;;  %s4416_s27 = smov 13  }
  0x19   :  { %740 = vadd.xlane.f32.xlu0 %v739_v18  ;;  %743 = vadd.xlane.f32.xlu1 %v742_v19 }
  0x1d   :  { %746 = vadd.xlane.f32.xlu0 %v745_v22  ;;  %749 = vadd.xlane.f32.xlu1 %v748_v23 }
  0x21   :  { %752 = vadd.xlane.f32.xlu0 %v751_v26  ;;  %755 = vadd.xlane.f32.xlu1 %v754_v27 }
  0x25   :  { %758 = vadd.xlane.f32.xlu0 %v757_v30  ;;  %761 = vadd.xlane.f32.xlu1 %v760_v31 }
  0x29   :  { %764 = vadd.xlane.f32.xlu0 %v763_v34  ;;  %767 = vadd.xlane.f32.xlu1 %v766_v35 }
  0x2d   :  { %770 = vadd.xlane.f32.xlu0 %v769_v38  ;;  %773 = vadd.xlane.f32.xlu1 %v772_v39 }
  0x31   :  { %776 = vadd.xlane.f32.xlu0 %v775_v42  ;;  %779 = vadd.xlane.f32.xlu1 %v778_v43 }
  0x35   :  { %782 = vadd.xlane.f32.xlu0 %v781_v46  ;;  %785 = vadd.xlane.f32.xlu1 %v784_v47 }
  0x96   :  { %v166_v48 = vpop.xlane.xlu0 %165  ;;  %v172_v49 = vpop.xlane.xlu1 %171 }
  0x97   :  { %v189_v50 = vmul.f32 0.03125, %v166_v48  ;;  %v191_v51 = vmul.f32 0.03125, %v172_v49 }
  0x99   :  { %v4566_v52 = vsub.f32 %v4441_v0, %v189_v50  ;;  %v4569_v53 = vsub.f32 %v4444_v1, %v191_v51 }
  0x9a   :  { %v169_v54 = vpop.xlane.xlu0 %168  ;;  %v175_v55 = vpop.xlane.xlu1 %174 }
  0x9b   :  { %v190_v56 = vmul.f32 0.03125, %v169_v54  ;;  %v192_v57 = vmul.f32 0.03125, %v175_v55  ;;  %v205_v58 = vmul.f32 %v4566_v52, %v4566_v52  ;;  %v207_v59 = vmul.f32 %v4569_v53, %v4569_v53 }
  0x9d   :  { %v4576_v60 = vsub.f32 %v4447_v2, %v190_v56  ;;  %v4579_v61 = vsub.f32 %v4454_v5, %v192_v57  ;;  %v213_v62 = vsel %vm163_vm0, %v205_v58, 0.0  ;;  %v219_v1 = vsel %vm163_vm0, %v207_v59, 0.0 }
  0x9e   :  { %214 = vadd.xlane.f32.xlu0 %v213_v62  ;;  %v178_v63 = vpop.xlane.xlu0 %177  ;;  %v181_v0 = vpop.xlane.xlu1 %180 }
  0x9f   :  { %v193_v3 = vmul.f32 0.03125, %v178_v63  ;;  %v194_v4 = vmul.f32 0.03125, %v181_v0  ;;  %v206_v6 = vmul.f32 %v4576_v60, %v4576_v60  ;;  %v208_v7 = vmul.f32 %v4579_v61, %v4579_v61 }
  0xa1   :  { %v4588_v2 = vsub.f32 %v4461_v8, %v193_v3  ;;  %v4591_v5 = vsub.f32 %v4464_v9, %v194_v4  ;;  %v216_v10 = vsel %vm163_vm0, %v206_v6, 0.0  ;;  %v222_v15 = vsel %vm163_vm0, %v208_v7, 0.0 }
  0xa2   :  { %220 = vadd.xlane.f32.xlu0 %v219_v1  ;;  %217 = vadd.xlane.f32.xlu1 %v216_v10  ;;  %v184_v11 = vpop.xlane.xlu0 %183  ;;  %v187_v14 = vpop.xlane.xlu1 %186 }
  0xa3   :  { %v195_v18 = vmul.f32 0.03125, %v184_v11  ;;  %v196_v19 = vmul.f32 0.03125, %v187_v14  ;;  %v209_v22 = vmul.f32 %v4588_v2, %v4588_v2  ;;  %v210_v8 = vmul.f32 %v4591_v5, %v4591_v5 }
  0xa5   :  { %v4600_v23 = vsub.f32 %v4476_v12, %v195_v18  ;;  %v4603_v9 = vsub.f32 %v4479_v13, %v196_v19  ;;  %v225_v26 = vsel %vm163_vm0, %v209_v22, 0.0  ;;  %v228_v31 = vsel %vm163_vm0, %v210_v8, 0.0 }
  0xa6   :  { %223 = vadd.xlane.f32.xlu1 %v222_v15  ;;  %226 = vadd.xlane.f32.xlu0 %v225_v26  ;;  %v741_v27 = vpop.xlane.xlu0 %740  ;;  %v744_v30 = vpop.xlane.xlu1 %743 }
  0xa7   :  { %v787_v34 = vmul.f32 0.03125, %v741_v27  ;;  %v788_v35 = vmul.f32 0.03125, %v744_v30  ;;  %v211_v38 = vmul.f32 %v4600_v23, %v4600_v23  ;;  %v212_v12 = vmul.f32 %v4603_v9, %v4603_v9 }
  0xa9   :  { %v4612_v39 = vsub.f32 %v4486_v16, %v787_v34  ;;  %v4615_v13 = vsub.f32 %v4489_v17, %v788_v35  ;;  %v231_v42 = vsel %vm163_vm0, %v211_v38, 0.0  ;;  %v234_v47 = vsel %vm163_vm0, %v212_v12, 0.0 }
  0xaa   :  { %229 = vadd.xlane.f32.xlu1 %v228_v31  ;;  %232 = vadd.xlane.f32.xlu0 %v231_v42  ;;  %v747_v43 = vpop.xlane.xlu0 %746  ;;  %v750_v46 = vpop.xlane.xlu1 %749 }
  0xab   :  { %v789_v48 = vmul.f32 0.03125, %v747_v43  ;;  %v790_v49 = vmul.f32 0.03125, %v750_v46  ;;  %v819_v50 = vmul.f32 %v4612_v39, %v4612_v39  ;;  %v820_v16 = vmul.f32 %v4615_v13, %v4615_v13  ;;  %v297_v43 = vld [vmem:[%s4657_s13] sm:$0xff] }
  0xad   :  { %v4624_v51 = vsub.f32 %v4496_v20, %v789_v48  ;;  %v4627_v17 = vsub.f32 %v4499_v21, %v790_v49  ;;  %v835_v54 = vsel %vm163_vm0, %v819_v50, 0.0  ;;  %v838_v57 = vsel %vm163_vm0, %v820_v16, 0.0 }
  0xae   :  { %235 = vadd.xlane.f32.xlu1 %v234_v47  ;;  %836 = vadd.xlane.f32.xlu0 %v835_v54  ;;  %v753_v55 = vpop.xlane.xlu0 %752  ;;  %v756_v56 = vpop.xlane.xlu1 %755 }
  0xaf   :  { %v791_v58 = vmul.f32 0.03125, %v753_v55  ;;  %v792_v59 = vmul.f32 0.03125, %v756_v56  ;;  %v821_v62 = vmul.f32 %v4624_v51, %v4624_v51  ;;  %v822_v20 = vmul.f32 %v4627_v17, %v4627_v17 }
  0xb1   :  { %v4636_v63 = vsub.f32 %v4506_v24, %v791_v58  ;;  %v4639_v21 = vsub.f32 %v4509_v25, %v792_v59  ;;  %v841_v0 = vsel %vm163_vm0, %v821_v62, 0.0  ;;  %v844_v4 = vsel %vm163_vm0, %v822_v20, 0.0  ;;  %v299_v58 = vld [vmem:[%s4657_s13 + $0x10] sm:$0xff] }
  0xb2   :  { %839 = vadd.xlane.f32.xlu1 %v838_v57  ;;  %842 = vadd.xlane.f32.xlu0 %v841_v0  ;;  %v759_v1 = vpop.xlane.xlu0 %758  ;;  %v762_v3 = vpop.xlane.xlu1 %761 }
  0xb3   :  { %v793_v6 = vmul.f32 0.03125, %v759_v1  ;;  %v794_v7 = vmul.f32 0.03125, %v762_v3  ;;  %v823_v10 = vmul.f32 %v4636_v63, %v4636_v63  ;;  %v824_v24 = vmul.f32 %v4639_v21, %v4639_v21 }
  0xb5   :  { %v4648_v11 = vsub.f32 %v4516_v28, %v793_v6  ;;  %v4651_v25 = vsub.f32 %v4519_v29, %v794_v7  ;;  %v847_v14 = vsel %vm163_vm0, %v823_v10, 0.0  ;;  %v850_v19 = vsel %vm163_vm0, %v824_v24, 0.0 }
  0xb6   :  { %845 = vadd.xlane.f32.xlu1 %v844_v4  ;;  %848 = vadd.xlane.f32.xlu0 %v847_v14  ;;  %v765_v15 = vpop.xlane.xlu0 %764  ;;  %v768_v18 = vpop.xlane.xlu1 %767 }
  0xb7   :  { %v795_v22 = vmul.f32 0.03125, %v765_v15  ;;  %v796_v28 = vmul.f32 0.03125, %v768_v18  ;;  %v825_v29 = vmul.f32 %v4648_v11, %v4648_v11  ;;  %v826_v8 = vmul.f32 %v4651_v25, %v4651_v25 }
  0xb9   :  { %v4665_v26 = vsub.f32 %v4526_v32, %v795_v22  ;;  %v4668_v27 = vsub.f32 %v4529_v33, %v796_v28  ;;  %v853_v30 = vsel %vm163_vm0, %v825_v29, 0.0  ;;  %v856_v35 = vsel %vm163_vm0, %v826_v8, 0.0  ;;  %v298_v33 = vld [vmem:[%s4657_s13 + $0x8] sm:$0xff]  ;;  %v991_v22 = vld [vmem:[%s4714_s17] sm:$0xff] }
  0xba   :  { %851 = vadd.xlane.f32.xlu1 %v850_v19  ;;  %854 = vadd.xlane.f32.xlu0 %v853_v30  ;;  %v771_v31 = vpop.xlane.xlu0 %770  ;;  %v774_v34 = vpop.xlane.xlu1 %773  ;;  %v4036_v46 = vpack.c.bf16 %v298_v33, %v297_v43  ;;  %v992_v28 = vld [vmem:[%s4714_s17 + $0x8] sm:$0xff]  ;;  %v501_v8 = vld [vmem:[%s3378_s21] sm:$0xff]  ;;  %v4400_v43 = vmov 0   ;;  %v499_v33 = vld [vmem:[%s3355_s25 + $0x30] sm:$0xff] }
  0xbb   :  { %v797_v38 = vmul.f32 0.03125, %v771_v31  ;;  %v798_v12 = vmul.f32 0.03125, %v774_v34  ;;  %v827_v42 = vmul.f32 %v4665_v26, %v4665_v26  ;;  %v828_v32 = vmul.f32 %v4668_v27, %v4668_v27  ;;  %v502_v30 = vld [vmem:[%s3378_s21 + $0x8] sm:$0xff]  ;;  %v493_v34 = vld [vmem:[%s3355_s25] sm:$0xff]  ;;  %4209 = vset.pattern.permute.xlu1 %v4400_v43  ;;  %4208 = vset.pattern.permute.xlu0 %v4400_v43 }
  0xbc   :  { %4037 = vmatprep.subr.bf16.mxu0 %v4036_v46  ;;  %v4725_v29 = vpack.c.bf16 %v992_v28, %v991_v22  ;;  %v4044_v31 = vpack.c.bf16 %v502_v30, %v501_v8  ;;  %3770 = vmatprep.mubr.msk.f32.mxu1 %vm503_vm1, %v493_v34  ;;  %v2672_v28 = vld [vmem:[%s4777_s18 + $0x28] sm:$0xff]  ;;  %v2674_v30 = vld [vmem:[%s4777_s18 + $0x38] sm:$0xff] }
  0xbd   :  { %v4679_v47 = vsub.f32 %v4536_v36, %v797_v38  ;;  %v4682_v48 = vsub.f32 %v4539_v37, %v798_v12  ;;  %v859_v49 = vsel %vm163_vm0, %v827_v42, 0.0  ;;  %v862_v54 = vsel %vm163_vm0, %v828_v32, 0.0  ;;  %v300_v37 = vld [vmem:[%s4657_s13 + $0x18] sm:$0xff]  ;;  %4039 = vmatpush3.bf16.msra.mxu0 %v4036_v46  ;;  %v495_v38 = vld [vmem:[%s3355_s25 + $0x10] sm:$0xff]  ;;  %v497_v42 = vld [vmem:[%s3355_s25 + $0x20] sm:$0xff]  ;;  %s4766_s13 = sld [smem:[%s5868_s0 + %s4403_s10]]   ;;  %s4410_s10 = smov 3  }
  0xbe   :  { %857 = vadd.xlane.f32.xlu1 %v856_v35  ;;  %860 = vadd.xlane.f32.xlu0 %v859_v49  ;;  %v777_v50 = vpop.xlane.xlu0 %776  ;;  %v780_v16 = vpop.xlane.xlu1 %779  ;;  %v4040_v59 = vpack.c.bf16 %v300_v37, %v299_v58  ;;  %v494_v35 = vld [vmem:[%s3355_s25 + $0x8] sm:$0xff]  ;;  %v496_v12 = vld [vmem:[%s3355_s25 + $0x18] sm:$0xff]  ;;  %v2221_v37 = vld [vmem:[%s3365_s3] sm:$0xff] }
  0xbf   :  { %v799_v55 = vmul.f32 0.03125, %v777_v50  ;;  %v800_v56 = vmul.f32 0.03125, %v780_v16  ;;  %v829_v57 = vmul.f32 %v4679_v47, %v4679_v47  ;;  %v830_v36 = vmul.f32 %v4682_v48, %v4682_v48  ;;  %4045 = vmatprep.subr.bf16.mxu1 %v4044_v31  ;;  %v498_v32 = vld [vmem:[%s3355_s25 + $0x28] sm:$0xff]  ;;  %v500_v49 = vld [vmem:[%s3355_s25 + $0x38] sm:$0xff]  ;;  %v2086_v50 = vld [vmem:[%s4740_s29 + $0x10] sm:$0xff] }
  0xc0   :  { %4041 = vmatprep.subr.bf16.mxu0 %v4040_v59  ;;  %4047 = vmatpush3.bf16.msra.mxu1 %v4044_v31  ;;  %v2085_v46 = vld [vmem:[%s4740_s29 + $0x8] sm:$0xff]  ;;  %v2084_v16 = vld [vmem:[%s4740_s29] sm:$0xff] }
  0xc1   :  { %v4693_v62 = vsub.f32 %v4546_v40, %v799_v55  ;;  %v4696_v20 = vsub.f32 %v4549_v41, %v800_v56  ;;  %v865_v0 = vsel %vm163_vm0, %v829_v57, 0.0  ;;  %v868_v4 = vsel %vm163_vm0, %v830_v36, 0.0  ;;  %4043 = vmatpush3.bf16.msra.mxu0 %v4040_v59  ;;  %v2088_v55 = vld [vmem:[%s4740_s29 + $0x20] sm:$0xff]  ;;  %v2224_v56 = vld [vmem:[%s3365_s3 + $0x18] sm:$0xff]  ;;  %v2226_v57 = vld [vmem:[%s3365_s3 + $0x28] sm:$0xff] }
  0xc2   :  { %863 = vadd.xlane.f32.xlu1 %v862_v54  ;;  %866 = vadd.xlane.f32.xlu0 %v865_v0  ;;  %v783_v1 = vpop.xlane.xlu0 %782  ;;  %v786_v3 = vpop.xlane.xlu1 %785  ;;  %v2087_v54 = vld [vmem:[%s4740_s29 + $0x18] sm:$0xff]  ;;  %v2089_v36 = vld [vmem:[%s4740_s29 + $0x28] sm:$0xff] }
  0xc3   :  { %v801_v6 = vmul.f32 0.03125, %v783_v1  ;;  %v802_v7 = vmul.f32 0.03125, %v786_v3  ;;  %v831_v10 = vmul.f32 %v4693_v62, %v4693_v62  ;;  %v832_v40 = vmul.f32 %v4696_v20, %v4696_v20  ;;  %4065 = vmatprep.subr.bf16.mxu0 %v4725_v29  ;;  %3771 = vmatmul.mubr.msk.f32.vlgmr.msra.gmra.mrb[0].mxu1 %vm503_vm1, %v494_v35  ;;  %v1196_v58 = vld [vmem:[%s4758_s8 + $0x8] sm:$0xff]  ;;  %v1198_v59 = vld [vmem:[%s4758_s8 + $0x18] sm:$0xff]  ;;  %v2223_v3 = vld [vmem:[%s3365_s3 + $0x10] sm:$0xff] }
  0xc4   :  { %3773 = vmatprep.mubr.msk.f32.mxu1 %vm503_vm1, %v495_v38  ;;  %v2222_v0 = vld [vmem:[%s3365_s3 + $0x8] sm:$0xff]  ;;  %v2484_v22 = vld [vmem:[%s4766_s13 + $0x10] sm:$0xff]  ;;  %v2486_v8 = vld [vmem:[%s4766_s13 + $0x20] sm:$0xff] }
  0xc5   :  { %v4705_v41 = vsub.f32 %v4556_v44, %v801_v6  ;;  %v4708_v24 = vsub.f32 %v4559_v45, %v802_v7  ;;  %v871_v14 = vsel %vm163_vm0, %v831_v10, 0.0  ;;  %v874_v15 = vsel %vm163_vm0, %v832_v40, 0.0  ;;  %v1200_v1 = vld [vmem:[%s4758_s8 + $0x28] sm:$0xff]  ;;  %v2225_v6 = vld [vmem:[%s3365_s3 + $0x20] sm:$0xff]  ;;  %v2485_v7 = vld [vmem:[%s4766_s13 + $0x18] sm:$0xff] }
  0xc6   :  { %869 = vadd.xlane.f32.xlu1 %v868_v4  ;;  %872 = vadd.xlane.f32.xlu0 %v871_v14  ;;  %v2483_v4 = vld [vmem:[%s4766_s13 + $0x8] sm:$0xff]  ;;  %v1195_v10 = vld [vmem:[%s4758_s8] sm:$0xff]  ;;  %v1197_v14 = vld [vmem:[%s4758_s8 + $0x10] sm:$0xff] }
  0xc7   :  { %v833_v44 = vmul.f32 %v4705_v41, %v4705_v41  ;;  %v834_v45 = vmul.f32 %v4708_v24, %v4708_v24  ;;  %3774 = vmatmul.mubr.msk.f32.gmra.mrb[2].mxu1 %vm503_vm1, %v496_v12  ;;  %v2487_v40 = vld [vmem:[%s4766_s13 + $0x28] sm:$0xff]  ;;  %v2488_v31 = vld [vmem:[%s4766_s13 + $0x30] sm:$0xff]  ;;  %v2667_v12 = vld [vmem:[%s4777_s18] sm:$0xff] }
  0xc8   :  { %3776 = vmatprep.mubr.msk.f32.mxu1 %vm503_vm1, %v497_v42  ;;  %v1353_v35 = vld [vmem:[%s4790_s22 + $0x8] sm:$0xff] }
  0xc9   :  { %v877_v18 = vsel %vm163_vm0, %v833_v44, 0.0  ;;  %v880_v19 = vsel %vm163_vm0, %v834_v45, 0.0  ;;  %v1199_v44 = vld [vmem:[%s4758_s8 + $0x20] sm:$0xff]  ;;  %v2668_v45 = vld [vmem:[%s4777_s18 + $0x8] sm:$0xff]  ;;  %s4840_s8 = sld [smem:[%s5868_s0 + %s4409_s4]]   ;;  %s4418_s4 = smov 27  }
  0xca   :  { %875 = vadd.xlane.f32.xlu1 %v874_v15  ;;  %878 = vadd.xlane.f32.xlu0 %v877_v18  ;;  %v2489_v15 = vld [vmem:[%s4766_s13 + $0x38] sm:$0xff]  ;;  %v2482_v18 = vld [vmem:[%s4766_s13] sm:$0xff]  ;;  %s3357_s13 = sld [smem:[%s5868_s0 + %s4410_s10]]   ;;  %s4419_s10 = smov 12  }
  0xcb   :  { %3777 = vmatmul.mubr.msk.f32.gmra.mrb[4].mxu1 %vm503_vm1, %v498_v32 }
  0xcc   :  { %3779 = vmatprep.mubr.msk.f32.mxu1 %vm503_vm1, %v499_v33  ;;  %v1355_v33 = vld [vmem:[%s4790_s22 + $0x18] sm:$0xff] }
  0xce   :  { %881 = vadd.xlane.f32.xlu1 %v880_v19  ;;  %v2670_v19 = vld [vmem:[%s4777_s18 + $0x18] sm:$0xff] }
  0xcf   :  { %3780 = vmatmul.mubr.msk.f32.gmra.mrb[6].mxu1 %vm503_vm1, %v500_v49 }
  0xdf   :  { %2094 = vperm.xlu1 %4209, %v2085_v46  }
  0xe0   :  { %2091 = vperm.xlu0 %4208, %v2084_v16  }
  0xe3   :  { %2097 = vperm.xlu1 %4209, %v2086_v50   ;;  %v2669_v50 = vld [vmem:[%s4777_s18 + $0x10] sm:$0xff] }
  0xe4   :  { %2365 = vperm.xlu0 %4208, %v2224_v56  }
  0xe7   :  { %2100 = vperm.xlu1 %4209, %v2087_v54  }
  0xe8   :  { %2375 = vperm.xlu0 %4208, %v2226_v57   ;;  %v1357_v57 = vld [vmem:[%s4790_s22 + $0x28] sm:$0xff] }
  0xeb   :  { %2103 = vperm.xlu1 %4209, %v2088_v55  }
  0xec   :  { %1207 = vperm.xlu0 %4208, %v1196_v58  }
  0xef   :  { %2106 = vperm.xlu1 %4209, %v2089_v36  }
  0xf0   :  { %1213 = vperm.xlu0 %4208, %v1198_v59  }
  0xf3   :  { %2350 = vperm.xlu1 %4209, %v2221_v37   ;;  %v2671_v37 = vld [vmem:[%s4777_s18 + $0x20] sm:$0xff] }
  0xf4   :  { %1219 = vperm.xlu0 %4208, %v1200_v1  }
  0xf7   :  { %2355 = vperm.xlu1 %4209, %v2222_v0  }
  0xf8   :  { %2494 = vperm.xlu0 %4208, %v2483_v4  }
  0xfb   :  { %2360 = vperm.xlu1 %4209, %v2223_v3  }
  0xfc   :  { %2500 = vperm.xlu0 %4208, %v2485_v7   ;;  %v2673_v7 = vld [vmem:[%s4777_s18 + $0x30] sm:$0xff]  ;;  %s3377_s18 = sld [smem:[%s5868_s0 + %s4413_s14]]   ;;  %s4420_s14 = smov 7  }
  0xff   :  { %2370 = vperm.xlu1 %4209, %v2225_v6  }
 0x100   :  { %2506 = vperm.xlu0 %4208, %v2487_v40  }
 0x103   :  { %1204 = vperm.xlu1 %4209, %v1195_v10  }
 0x104   :  { %2512 = vperm.xlu0 %4208, %v2489_v15   ;;  %v4807_v15 = vld [vmem:[%s3368_s26] ss:$0 sm:$0xff]  ;;  %s5075_s26 = sld [smem:[%s5868_s0 + %s4415_s23]]   ;;  %s4422_s23 = smov 29  }
 0x107   :  { %1210 = vperm.xlu1 %4209, %v1197_v14  }
 0x108   :  { %2679 = vperm.xlu0 %4208, %v2668_v45  }
 0x10b   :  { %1216 = vperm.xlu1 %4209, %v1199_v44  }
 0x10c   :  { %2685 = vperm.xlu0 %4208, %v2670_v19  }
 0x10f   :  { %2491 = vperm.xlu1 %4209, %v2482_v18  }
 0x110   :  { %2691 = vperm.xlu0 %4208, %v2672_v28   ;;  %v4810_v28 = vld [vmem:[%s3369_s30] ss:$0 sm:$0xff]  ;;  %s3367_s30 = sld [smem:[%s5868_s0 + %s4416_s27]]   ;;  %s4423_s27 = smov 31  }
 0x113   :  { %2497 = vperm.xlu1 %4209, %v2484_v22  }
 0x114   :  { %2697 = vperm.xlu0 %4208, %v2674_v30  }
 0x117   :  { %2503 = vperm.xlu1 %4209, %v2486_v8   ;;  %v1352_v8 = vld [vmem:[%s4790_s22] sm:$0xff] }
 0x118   :  { %1486 = vperm.xlu0 %4208, %v1353_v35  }
 0x11b   :  { %2509 = vperm.xlu1 %4209, %v2488_v31  }
 0x11c   :  { %1496 = vperm.xlu0 %4208, %v1355_v33  }
 0x11f   :  { %2676 = vperm.xlu1 %4209, %v2667_v12  }
 0x120   :  { %1506 = vperm.xlu0 %4208, %v1357_v57  }
 0x123   :  { %2682 = vperm.xlu1 %4209, %v2669_v50   ;;  %v994_v50 = vld [vmem:[%s4714_s17 + $0x18] sm:$0xff] }
 0x127   :  { %2688 = vperm.xlu1 %4209, %v2671_v37  }
 0x12b   :  { %v215_v34 = vpop.xlane.xlu0 %214  ;;  %2694 = vperm.xlu1 %4209, %v2673_v7  }
 0x12c   :  { %v237_v38 = vmul.f32 0.03125, %v215_v34 }
 0x12e   :  { %v245_v42 = vadd.f32 1e-05, %v237_v38 }
 0x12f   :  { %v218_v32 = vpop.xlane.xlu1 %217  ;;  %v221_v43 = vpop.xlane.xlu0 %220  ;;  %1481 = vperm.xlu1 %4209, %v1352_v8  }
 0x130   :  { %4210 = vrsqrt.f32 %v245_v42  ;;  %v238_v46 = vmul.f32 0.03125, %v218_v32  ;;  %v239_v49 = vmul.f32 0.03125, %v221_v43 }
 0x132   :  { %v246_v16 = vadd.f32 1e-05, %v238_v46  ;;  %v247_v54 = vadd.f32 1e-05, %v239_v49  ;;  %v993_v49 = vld [vmem:[%s4714_s17 + $0x10] sm:$0xff]  ;;  %s4408_s17 = smov 16  }
 0x133   :  { %v224_v55 = vpop.xlane.xlu1 %223  ;;  %v227_v56 = vpop.xlane.xlu0 %226  ;;  %s4828_s3 = sld [smem:[%s5868_s0 + %s4408_s17]]   ;;  %s4417_s17 = smov 9  }
 0x134   :  { %4212 = vrsqrt.f32 %v246_v16  ;;  %v240_v36 = vmul.f32 0.03125, %v224_v55  ;;  %v241_v58 = vmul.f32 0.03125, %v227_v56  ;;  %v1354_v16 = vld [vmem:[%s4790_s22 + $0x10] sm:$0xff] }
 0x135   :  { %4214 = vrsqrt.f32 %v247_v54  ;;  %1491 = vperm.xlu1 %4209, %v1354_v16  }
 0x136   :  { %v248_v59 = vadd.f32 1e-05, %v240_v36  ;;  %v249_v0 = vadd.f32 1e-05, %v241_v58 }
 0x137   :  { %v230_v1 = vpop.xlane.xlu1 %229  ;;  %v233_v3 = vpop.xlane.xlu0 %232 }
 0x138   :  { %4216 = vrsqrt.f32 %v248_v59  ;;  %v242_v4 = vmul.f32 0.03125, %v230_v1  ;;  %v243_v6 = vmul.f32 0.03125, %v233_v3 }
 0x139   :  { %4218 = vrsqrt.f32 %v249_v0  ;;  %v4068_v0 = vpack.c.bf16 %v994_v50, %v993_v49 }
 0x13a   :  { %v4211_v10 = vpop.eup %4210  ;;  %v250_v40 = vadd.f32 1e-05, %v242_v4  ;;  %v251_v14 = vadd.f32 1e-05, %v243_v6  ;;  %v1356_v6 = vld [vmem:[%s4790_s22 + $0x20] sm:$0xff]  ;;  %s3380_s22 = sld [smem:[%s5868_s0 + %s4414_s19]]   ;;  %s4421_s19 = smov 30  }
 0x13b   :  { %v236_v44 = vpop.xlane.xlu1 %235  ;;  %v837_v45 = vpop.xlane.xlu0 %836  ;;  %v261_v18 = vmul.f32 %v4211_v10, %v4566_v52  ;;  %1501 = vperm.xlu1 %4209, %v1356_v6  }
 0x13c   :  { %4220 = vrsqrt.f32 %v250_v40  ;;  %v244_v19 = vmul.f32 0.03125, %v236_v44  ;;  %v883_v22 = vmul.f32 0.03125, %v837_v45 }
 0x13d   :  { %4222 = vrsqrt.f32 %v251_v14  ;;  %v275_v30 = vmul.f32 %v4807_v15, %v261_v18 }
 0x13e   :  { %v4213_v31 = vpop.eup %4212  ;;  %v252_v34 = vadd.f32 1e-05, %v244_v19  ;;  %v899_v35 = vadd.f32 1e-05, %v883_v22 }
 0x13f   :  { %v4215_v38 = vpop.eup %4214  ;;  %v840_v12 = vpop.xlane.xlu1 %839  ;;  %v289_v52 = vadd.f32 %v4810_v28, %v275_v30  ;;  %v262_v32 = vmul.f32 %v4213_v31, %v4576_v60 }
 0x140   :  { %v843_v42 = vpop.xlane.xlu0 %842  ;;  %4224 = vrsqrt.f32 %v252_v34  ;;  %v884_v43 = vmul.f32 0.03125, %v840_v12  ;;  %v263_v46 = vmul.f32 %v4215_v38, %v4569_v53 }
 0x141   :  { %v885_v33 = vmul.f32 0.03125, %v843_v42  ;;  %4226 = vrsqrt.f32 %v899_v35  ;;  %3754 = vmatprep.mubr.msk.f32.mxu0 %vm163_vm0, %v289_v52  ;;  %v276_v54 = vmul.f32 %v4807_v15, %v262_v32 }
 0x142   :  { %v4217_v55 = vpop.eup %4216  ;;  %v900_v56 = vadd.f32 1e-05, %v884_v43  ;;  %v277_v60 = vmul.f32 %v4807_v15, %v263_v46 }
 0x143   :  { %v901_v57 = vadd.f32 1e-05, %v885_v33  ;;  %v4219_v36 = vpop.eup %4218  ;;  %v846_v58 = vpop.xlane.xlu1 %845  ;;  %v290_v59 = vadd.f32 %v4810_v28, %v276_v54  ;;  %v264_v53 = vmul.f32 %v4217_v55, %v4579_v61  ;;  %v4854_v33 = vld [vmem:[%s4828_s3] ss:$0 sm:$0xff]  ;;  %s3363_s3 = sld [smem:[%s5868_s0 + %s4417_s17]]   ;;  %s4424_s17 = smov 18  }
 0x144   :  { %v849_v37 = vpop.xlane.xlu0 %848  ;;  %4228 = vrsqrt.f32 %v900_v56  ;;  %v886_v1 = vmul.f32 0.03125, %v846_v58  ;;  %v291_v4 = vadd.f32 %v4810_v28, %v277_v60  ;;  %v265_v61 = vmul.f32 %v4219_v36, %v4588_v2 }
 0x145   :  { %v887_v3 = vmul.f32 0.03125, %v849_v37  ;;  %4230 = vrsqrt.f32 %v901_v57  ;;  %3755 = vmatmul.mubr.msk.f32.vlgmr.msra.gmra.mrb[0].mxu0 %vm163_vm0, %v290_v59  ;;  %v278_v7 = vmul.f32 %v4807_v15, %v264_v53 }
 0x146   :  { %v4221_v10 = vpop.eup %4220  ;;  %v902_v40 = vadd.f32 1e-05, %v886_v1  ;;  %3757 = vmatprep.mubr.msk.f32.mxu0 %vm163_vm0, %v291_v4  ;;  %4067 = vmatpush3.bf16.msra.mxu0 %v4725_v29  ;;  %v279_v2 = vmul.f32 %v4807_v15, %v265_v61 }
 0x147   :  { %v903_v14 = vadd.f32 1e-05, %v887_v3  ;;  %v4223_v44 = vpop.eup %4222  ;;  %v852_v45 = vpop.xlane.xlu1 %851  ;;  %v292_v19 = vadd.f32 %v4810_v28, %v278_v7  ;;  %v266_v22 = vmul.f32 %v4221_v10, %v4591_v5  ;;  %4069 = vmatprep.subr.bf16.mxu0 %v4068_v0 }
 0x148   :  { %v855_v18 = vpop.xlane.xlu0 %854  ;;  %4232 = vrsqrt.f32 %v902_v40  ;;  %v888_v8 = vmul.f32 0.03125, %v852_v45  ;;  %v267_v30 = vmul.f32 %v4223_v44, %v4600_v23  ;;  %v293_v31 = vadd.f32 %v4810_v28, %v279_v2 }
 0x149   :  { %v889_v29 = vmul.f32 0.03125, %v855_v18  ;;  %4234 = vrsqrt.f32 %v903_v14  ;;  %3758 = vmatmul.mubr.msk.f32.gmra.mrb[2].mxu0 %vm163_vm0, %v292_v19  ;;  %v280_v34 = vmul.f32 %v4807_v15, %v266_v22 }
 0x14a   :  { %v4225_v35 = vpop.eup %4224  ;;  %v904_v38 = vadd.f32 1e-05, %v888_v8  ;;  %v281_v5 = vmul.f32 %v4807_v15, %v267_v30  ;;  %4071 = vmatpush3.bf16.msra.mxu0 %v4068_v0  ;;  %3760 = vmatprep.mubr.msk.f32.mxu0 %vm163_vm0, %v293_v31 }
 0x14b   :  { %v905_v12 = vadd.f32 1e-05, %v889_v29  ;;  %v4227_v42 = vpop.eup %4226  ;;  %v858_v52 = vpop.xlane.xlu1 %857  ;;  %v294_v23 = vadd.f32 %v4810_v28, %v280_v34  ;;  %v268_v43 = vmul.f32 %v4225_v35, %v4603_v9  ;;  %v4862_v9 = vld [vmem:[%s4840_s8] ss:$0 sm:$0xff]  ;;  %s3381_s8 = sld [smem:[%s5868_s0 + %s4418_s4]]   ;;  %s4425_s4 = smov 19  }
 0x14c   :  { %v861_v32 = vpop.xlane.xlu0 %860  ;;  %4236 = vrsqrt.f32 %v904_v38  ;;  %v890_v46 = vmul.f32 0.03125, %v858_v52  ;;  %v295_v50 = vadd.f32 %v4810_v28, %v281_v5  ;;  %v931_v54 = vmul.f32 %v4227_v42, %v4612_v39 }
 0x14d   :  { %v891_v49 = vmul.f32 0.03125, %v861_v32  ;;  %4238 = vrsqrt.f32 %v905_v12  ;;  %3761 = vmatmul.mubr.msk.f32.gmra.mrb[4].mxu0 %vm163_vm0, %v294_v23  ;;  %v282_v16 = vmul.f32 %v4807_v15, %v268_v43 }
 0x14e   :  { %v4229_v55 = vpop.eup %4228  ;;  %v906_v56 = vadd.f32 1e-05, %v890_v46  ;;  %3763 = vmatprep.mubr.msk.f32.mxu0 %vm163_vm0, %v295_v50  ;;  %v953_v53 = vmul.f32 %v4854_v33, %v931_v54 }
 0x14f   :  { %v907_v57 = vadd.f32 1e-05, %v891_v49  ;;  %v4231_v60 = vpop.eup %4230  ;;  %v932_v36 = vmul.f32 %v4229_v55, %v4615_v13  ;;  %v864_v58 = vpop.xlane.xlu1 %863  ;;  %v296_v59 = vadd.f32 %v4810_v28, %v282_v16 }
 0x150   :  { %v867_v37 = vpop.xlane.xlu0 %866  ;;  %4240 = vrsqrt.f32 %v906_v56  ;;  %v892_v15 = vmul.f32 0.03125, %v864_v58  ;;  %v933_v39 = vmul.f32 %v4231_v60, %v4624_v51  ;;  %v975_v3 = vadd.f32 %v4862_v9, %v953_v53 }
 0x151   :  { %v893_v0 = vmul.f32 0.03125, %v867_v37  ;;  %v954_v1 = vmul.f32 %v4854_v33, %v932_v36  ;;  %4242 = vrsqrt.f32 %v907_v57  ;;  %3764 = vmatmul.mubr.msk.f32.gmra.mrb[6].mxu0 %vm163_vm0, %v296_v59 }
 0x152   :  { %v4233_v4 = vpop.eup %4232  ;;  %v908_v13 = vadd.f32 1e-05, %v892_v15  ;;  %v955_v7 = vmul.f32 %v4854_v33, %v933_v39  ;;  %3809 = vmatprep.mubr.msk.f32.mxu0 %vm163_vm0, %v975_v3 }
 0x153   :  { %v909_v6 = vadd.f32 1e-05, %v893_v0  ;;  %v4235_v28 = vpop.eup %4234  ;;  %v870_v61 = vpop.xlane.xlu1 %869  ;;  %v976_v40 = vadd.f32 %v4862_v9, %v954_v1  ;;  %v934_v51 = vmul.f32 %v4233_v4, %v4627_v17 }
 0x154   :  { %v873_v10 = vpop.xlane.xlu0 %872  ;;  %4244 = vrsqrt.f32 %v908_v13  ;;  %v894_v14 = vmul.f32 0.03125, %v870_v61  ;;  %v977_v45 = vadd.f32 %v4862_v9, %v955_v7  ;;  %v935_v19 = vmul.f32 %v4235_v28, %v4636_v63 }
 0x155   :  { %v895_v44 = vmul.f32 0.03125, %v873_v10  ;;  %4246 = vrsqrt.f32 %v909_v6  ;;  %3810 = vmatmul.mubr.msk.f32.vlgmr.msra.gmra.mrb[8].mxu0 %vm163_vm0, %v976_v40  ;;  %v956_v18 = vmul.f32 %v4854_v33, %v934_v51 }
 0x156   :  { %v4237_v2 = vpop.eup %4236  ;;  %v910_v22 = vadd.f32 1e-05, %v894_v14  ;;  %3812 = vmatprep.mubr.msk.f32.mxu0 %vm163_vm0, %v977_v45  ;;  %v957_v34 = vmul.f32 %v4854_v33, %v935_v19 }
 0x157   :  { %v911_v8 = vadd.f32 1e-05, %v895_v44  ;;  %v4239_v29 = vpop.eup %4238  ;;  %v876_v30 = vpop.xlane.xlu1 %875  ;;  %v978_v31 = vadd.f32 %v4862_v9, %v956_v18  ;;  %v936_v35 = vmul.f32 %v4237_v2, %v4639_v21 }
 0x158   :  { %v879_v17 = vpop.xlane.xlu0 %878  ;;  %4248 = vrsqrt.f32 %v910_v22  ;;  %v896_v38 = vmul.f32 0.03125, %v876_v30  ;;  %v937_v5 = vmul.f32 %v4239_v29, %v4648_v11  ;;  %v979_v63 = vadd.f32 %v4862_v9, %v957_v34 }
 0x159   :  { %v897_v12 = vmul.f32 0.03125, %v879_v17  ;;  %4250 = vrsqrt.f32 %v911_v8  ;;  %3813 = vmatmul.mubr.msk.f32.gmra.mrb[10].mxu0 %vm163_vm0, %v978_v31  ;;  %v958_v42 = vmul.f32 %v4854_v33, %v936_v35  ;;  %v4952_v17 = vld [vmem:[%s3357_s13] ss:$0 sm:$0xff]  ;;  %v5869_v34 = vmov 0.0   ;;  %s5172_s13 = sld [smem:[%s5868_s0 + %s4419_s10]]   ;;  %s4426_s10 = smov 33  }
 0x15a   :  { %v4241_v52 = vpop.eup %4240  ;;  %v912_v32 = vadd.f32 1e-05, %v896_v38  ;;  %v959_v43 = vmul.f32 %v4854_v33, %v937_v5  ;;  %3815 = vmatprep.mubr.msk.f32.mxu0 %vm163_vm0, %v979_v63  ;;  %v4412_v38 = vmov 1.0   ;;  %v3390_v5 = vld [vmem:[%s3377_s18] ss:$0 sm:$0xff]  ;;  %s3361_s18 = sld [smem:[%s5868_s0 + %s4420_s14]]   ;;  %s4427_s14 = smov 20  }
 0x15b   :  { %v913_v23 = vadd.f32 1e-05, %v897_v12  ;;  %v4243_v46 = vpop.eup %4242  ;;  %v882_v21 = vpop.xlane.xlu1 %881  ;;  %v980_v49 = vadd.f32 %v4862_v9, %v958_v42  ;;  %v938_v11 = vmul.f32 %v4241_v52, %v4651_v25 }
 0x15c   :  { %4252 = vrsqrt.f32 %v912_v32  ;;  %v898_v50 = vmul.f32 0.03125, %v882_v21  ;;  %v981_v16 = vadd.f32 %v4862_v9, %v959_v43  ;;  %v939_v54 = vmul.f32 %v4243_v46, %v4665_v26 }
 0x15d   :  { %4254 = vrsqrt.f32 %v913_v23  ;;  %3816 = vmatmul.mubr.msk.f32.gmra.mrb[12].mxu0 %vm163_vm0, %v980_v49  ;;  %v960_v55 = vmul.f32 %v4854_v33, %v938_v11 }
 0x15e   :  { %v4245_v56 = vpop.eup %4244  ;;  %v914_v57 = vadd.f32 1e-05, %v898_v50  ;;  %3818 = vmatprep.mubr.msk.f32.mxu0 %vm163_vm0, %v981_v16  ;;  %v961_v60 = vmul.f32 %v4854_v33, %v939_v54 }
 0x15f   :  { %v4247_v36 = vpop.eup %4246  ;;  %v982_v25 = vadd.f32 %v4862_v9, %v960_v55  ;;  %v940_v58 = vmul.f32 %v4245_v56, %v4668_v27  ;;  %v2092_v31 = vpop.permute.xlu0 %2091 }
 0x160   :  { %4256 = vrsqrt.f32 %v914_v57  ;;  %v983_v37 = vadd.f32 %v4862_v9, %v961_v60  ;;  %v941_v26 = vmul.f32 %v4247_v36, %v4679_v47  ;;  %v4963_v12 = vpop.permute.xlu1 %2094 }
 0x161   :  { %3819 = vmatmul.mubr.msk.f32.gmra.mrb[14].mxu0 %vm163_vm0, %v982_v25  ;;  %v962_v59 = vmul.f32 %v4854_v33, %v940_v58 }
 0x162   :  { %v4249_v53 = vpop.eup %4248  ;;  %3821 = vmatprep.mubr.msk.f32.mxu0 %vm163_vm0, %v983_v37  ;;  %v963_v15 = vmul.f32 %v4854_v33, %v941_v26 }
 0x163   :  { %v4251_v0 = vpop.eup %4250  ;;  %v984_v39 = vadd.f32 %v4862_v9, %v962_v59  ;;  %v942_v1 = vmul.f32 %v4249_v53, %v4682_v48 }
 0x164   :  { %v985_v27 = vadd.f32 %v4862_v9, %v963_v15  ;;  %v943_v3 = vmul.f32 %v4251_v0, %v4693_v62  ;;  %v4967_v32 = vpop.permute.xlu1 %2097  ;;  %v4996_v0 = vld [vmem:[%s3380_s22] ss:$0 sm:$0xff]  ;;  %s5252_s22 = sld [smem:[%s5868_s0 + %s4421_s19]]  }
 0x165   :  { %3822 = vmatmul.mubr.msk.f32.gmra.mrb[16].mxu0 %vm163_vm0, %v984_v39  ;;  %v964_v47 = vmul.f32 %v4854_v33, %v942_v1 }
 0x166   :  { %v4253_v4 = vpop.eup %4252  ;;  %3824 = vmatprep.mubr.msk.f32.mxu0 %vm163_vm0, %v985_v27  ;;  %v965_v13 = vmul.f32 %v4854_v33, %v943_v3 }
 0x167   :  { %v4255_v6 = vpop.eup %4254  ;;  %v986_v7 = vadd.f32 %v4862_v9, %v964_v47  ;;  %v944_v28 = vmul.f32 %v4253_v4, %v4696_v20 }
 0x168   :  { %v987_v48 = vadd.f32 %v4862_v9, %v965_v13  ;;  %v945_v61 = vmul.f32 %v4255_v6, %v4705_v41  ;;  %v4981_v54 = vpop.permute.xlu1 %2100 }
 0x169   :  { %3825 = vmatmul.mubr.msk.f32.gmra.mrb[18].mxu0 %vm163_vm0, %v986_v7  ;;  %v966_v62 = vmul.f32 %v4854_v33, %v944_v28 }
 0x16a   :  { %v4257_v10 = vpop.eup %4256  ;;  %3827 = vmatprep.mubr.msk.f32.mxu0 %vm163_vm0, %v987_v48  ;;  %v967_v40 = vmul.f32 %v4854_v33, %v945_v61 }
 0x16b   :  { %v988_v51 = vadd.f32 %v4862_v9, %v966_v62  ;;  %v946_v14 = vmul.f32 %v4257_v10, %v4708_v24 }
 0x16c   :  { %v989_v44 = vadd.f32 %v4862_v9, %v967_v40  ;;  %v4992_v53 = vpop.permute.xlu1 %2103 }
 0x16d   :  { %3828 = vmatmul.mubr.msk.f32.gmra.mrb[20].mxu0 %vm163_vm0, %v988_v51  ;;  %v968_v20 = vmul.f32 %v4854_v33, %v946_v14 }
 0x16e   :  { %3830 = vmatprep.mubr.msk.f32.mxu0 %vm163_vm0, %v989_v44 }
 0x16f   :  { %v990_v41 = vadd.f32 %v4862_v9, %v968_v20  ;;  %v642_v9 = vlaneseq }
 0x170   :  { %v5006_v62 = vpop.permute.xlu1 %2106 }
 0x171   :  { %3831 = vmatmul.mubr.msk.f32.gmra.mrb[22].mxu0 %vm163_vm0, %v990_v41  ;;  %v4948_v29 = vshrl.u32 %v642_v9, 7  ;;  %v4950_v30 = vand.u32 127, %v642_v9 }
 0x173   :  { %vm649_vm2 = vcmp.eq.s32.totalorder %v4948_v29, %v4952_v17  ;;  %vm2108_vm4 = vcmp.eq.s32.totalorder %v4950_v30, %v2092_v31  ;;  %vm2109_vm7 = vcmp.eq.s32.totalorder %v4950_v30, %v4963_v12  ;;  %vm2110_vm8 = vcmp.eq.s32.totalorder %v4950_v30, %v4967_v32  ;;  %v2227_v12 = vld [vmem:[%s3367_s30] sm:$0xff]  ;;  %v2228_v32 = vld [vmem:[%s3367_s30 + $0x8] sm:$0xff] }
 0x174   :  { %v3416_v35 = vsel %vm649_vm2, 1.0, %v5869_v34  ;;  %3927 = vmatprep.mubr.msk.f32.mxu0 %vm2108_vm4, %v4412_v38  ;;  %vm2111_vm9 = vcmp.eq.s32.totalorder %v4950_v30, %v4981_v54  ;;  %vm2112_vm10 = vcmp.eq.s32.totalorder %v4950_v30, %v4992_v53  ;;  %vm2113_vm11 = vcmp.eq.s32.totalorder %v4950_v30, %v5006_v62  ;;  %v2230_v54 = vld [vmem:[%s3367_s30 + $0x18] sm:$0xff]  ;;  %v2231_v53 = vld [vmem:[%s3367_s30 + $0x20] sm:$0xff] }
 0x175   :  { %3798 = vmatprep.mubr.msk.f32.mxu1 %vm655_vm3, %v3416_v35 }
 0x196   :  { %v4929_v45 = vpop.f32.mrb[0].mxu1 }
 0x197   :  { %v4931_v18 = vpop.f32.mrb[1].mxu1 }
 0x19a   :  { %v4933_v19 = vpop.f32.mrb[2].mxu1 }
 0x19b   :  { %v4935_v2 = vpop.f32.mrb[3].mxu1 }
 0x19e   :  { %v4937_v24 = vpop.f32.mrb[4].mxu1 }
 0x19f   :  { %v4939_v22 = vpop.f32.mrb[5].mxu1 }
 0x1a2   :  { %v4941_v8 = vpop.f32.mrb[6].mxu1 }
 0x1a3   :  { %v4946_v33 = vpop.f32.mrb[7].mxu1 }
 0x218   :  { %v3756_v63 = vpop.f32.mrb[0].mxu0 }
 0x219   :  { %v4965_v42 = vadd.f32 %v3756_v63, %v3390_v5  ;;  %v398_v52 = vpop.f32.mrb[1].mxu0 }
 0x21a   :  { %v4969_v23 = vadd.f32 %v3390_v5, %v398_v52 }
 0x21b   :  { %v3400_v43 = vmul.f32 -1.442695, %v4965_v42 }
 0x21c   :  { %v3399_v46 = vmul.f32 -1.442695, %v4969_v23  ;;  %v3759_v21 = vpop.f32.mrb[2].mxu0 }
 0x21d   :  { %4258 = vpow2.f32 %v3400_v43  ;;  %v4973_v49 = vadd.f32 %v3759_v21, %v3390_v5  ;;  %v408_v11 = vpop.f32.mrb[3].mxu0  ;;  %v5021_v21 = vpop.permute.xlu1 %2350 }
 0x21e   :  { %4260 = vpow2.f32 %v3399_v46  ;;  %v4975_v50 = vadd.f32 %v3390_v5, %v408_v11 }
 0x21f   :  { %v3402_v16 = vmul.f32 -1.442695, %v4973_v49 }
 0x220   :  { %v3401_v55 = vmul.f32 -1.442695, %v4975_v50  ;;  %v3762_v56 = vpop.f32.mrb[4].mxu0 }
 0x221   :  { %4262 = vpow2.f32 %v3402_v16  ;;  %v4984_v57 = vadd.f32 %v3762_v56, %v3390_v5  ;;  %v418_v60 = vpop.f32.mrb[5].mxu0 }
 0x222   :  { %4264 = vpow2.f32 %v3401_v55  ;;  %v4986_v36 = vadd.f32 %v3390_v5, %v418_v60 }
 0x223   :  { %v3404_v25 = vmul.f32 -1.442695, %v4984_v57 }
 0x224   :  { %v3403_v58 = vmul.f32 -1.442695, %v4986_v36  ;;  %v3765_v37 = vpop.f32.mrb[6].mxu0 }
 0x225   :  { %4266 = vpow2.f32 %v3404_v25  ;;  %v4990_v26 = vadd.f32 %v3765_v37, %v3390_v5  ;;  %v428_v59 = vpop.f32.mrb[7].mxu0 }
 0x226   :  { %4268 = vpow2.f32 %v3403_v58  ;;  %v4994_v15 = vadd.f32 %v3390_v5, %v428_v59 }
 0x227   :  { %v4259_v39 = vpop.eup %4258  ;;  %v3406_v1 = vmul.f32 -1.442695, %v4990_v26 }
 0x228   :  { %v4261_v27 = vpop.eup %4260  ;;  %v462_v3 = vadd.f32 1.0, %v4259_v39  ;;  %v3405_v47 = vmul.f32 -1.442695, %v4994_v15  ;;  %v3811_v4 = vpop.f32.mrb[8].mxu0 }
 0x229   :  { %v461_v13 = vadd.f32 1.0, %v4261_v27  ;;  %4270 = vpow2.f32 %v3406_v1  ;;  %v5001_v6 = vadd.f32 %v3811_v4, %v4996_v0  ;;  %v1116_v7 = vpop.f32.mrb[9].mxu0 }
 0x22a   :  { %4272 = vrcp.f32 %v462_v3  ;;  %v5004_v28 = vadd.f32 %v4996_v0, %v1116_v7  ;;  %v5042_v7 = vpop.permute.xlu1 %2355 }
 0x22b   :  { %v4263_v48 = vpop.eup %4262  ;;  %4274 = vrcp.f32 %v461_v13 }
 0x22c   :  { %v4265_v61 = vpop.eup %4264  ;;  %v464_v10 = vadd.f32 1.0, %v4263_v48  ;;  %4276 = vpow2.f32 %v3405_v47  ;;  %v4092_v40 = vpack.c.bf16 %v5001_v6, %v5004_v28  ;;  %v3814_v51 = vpop.f32.mrb[10].mxu0 }
 0x22d   :  { %v463_v14 = vadd.f32 1.0, %v4265_v61  ;;  %v5011_v44 = vadd.f32 %v3814_v51, %v4996_v0  ;;  %v1126_v20 = vpop.f32.mrb[11].mxu0 }
 0x22e   :  { %4278 = vrcp.f32 %v464_v10  ;;  %v5014_v41 = vadd.f32 %v4996_v0, %v1126_v20  ;;  %4093 = vmatprep.subr.bf16.mxu0 %v4092_v40 }
 0x22f   :  { %v4267_v9 = vpop.eup %4266  ;;  %4280 = vrcp.f32 %v463_v14  ;;  %4095 = vmatpush3.bf16.msra.mxu0 %v4092_v40 }
 0x230   :  { %v4269_v31 = vpop.eup %4268  ;;  %v466_v35 = vadd.f32 1.0, %v4267_v9  ;;  %v4096_v5 = vpack.c.bf16 %v5011_v44, %v5014_v41  ;;  %v3817_v63 = vpop.f32.mrb[12].mxu0 }
 0x231   :  { %v465_v52 = vadd.f32 1.0, %v4269_v31  ;;  %v5019_v43 = vadd.f32 %v3817_v63, %v4996_v0  ;;  %v1136_v46 = vpop.f32.mrb[13].mxu0 }
 0x232   :  { %4282 = vrcp.f32 %v466_v35  ;;  %v5024_v11 = vadd.f32 %v4996_v0, %v1136_v46  ;;  %4097 = vmatprep.subr.bf16.mxu0 %v4096_v5 }
 0x233   :  { %v4271_v16 = vpop.eup %4270  ;;  %4284 = vrcp.f32 %v465_v52  ;;  %4099 = vmatpush3.bf16.msra.mxu0 %v4096_v5 }
 0x234   :  { %v4273_v55 = vpop.eup %4272  ;;  %v468_v56 = vadd.f32 1.0, %v4271_v16  ;;  %v4100_v60 = vpack.c.bf16 %v5019_v43, %v5024_v11  ;;  %v3820_v25 = vpop.f32.mrb[14].mxu0 }
 0x235   :  { %v4275_v58 = vpop.eup %4274  ;;  %v5029_v37 = vadd.f32 %v3820_v25, %v4996_v0  ;;  %v1146_v59 = vpop.f32.mrb[15].mxu0  ;;  %v5032_v39 = vmul.f32 %v4273_v55, %v4965_v42 }
 0x236   :  { %v4277_v1 = vpop.eup %4276  ;;  %4286 = vrcp.f32 %v468_v56  ;;  %v5035_v27 = vadd.f32 %v4996_v0, %v1146_v59  ;;  %4101 = vmatprep.subr.bf16.mxu0 %v4100_v60  ;;  %v5038_v3 = vmul.f32 %v4275_v58, %v4969_v23 }
 0x237   :  { %v467_v47 = vadd.f32 1.0, %v4277_v1  ;;  %v634_v4 = vmul.f32 %v4929_v45, %v5032_v39  ;;  %4103 = vmatpush3.bf16.msra.mxu0 %v4100_v60 }
 0x238   :  { %v4279_v13 = vpop.eup %4278  ;;  %v4104_v42 = vpack.c.bf16 %v5029_v37, %v5035_v27  ;;  %v633_v48 = vmul.f32 %v4931_v18, %v5038_v3  ;;  %v3823_v61 = vpop.f32.mrb[16].mxu0 }
 0x239   :  { %v4281_v10 = vpop.eup %4280  ;;  %4288 = vrcp.f32 %v467_v47  ;;  %v5049_v23 = vadd.f32 %v3823_v61, %v4996_v0  ;;  %v1156_v40 = vpop.f32.mrb[17].mxu0  ;;  %v5052_v51 = vmul.f32 %v4279_v13, %v4973_v49 }
 0x23a   :  { %v4048_v45 = vpack.c.bf16 %v634_v4, %v633_v48  ;;  %v5055_v14 = vadd.f32 %v4996_v0, %v1156_v40  ;;  %4105 = vmatprep.subr.bf16.mxu0 %v4104_v42  ;;  %v5058_v20 = vmul.f32 %v4281_v10, %v4975_v50  ;;  %v5110_v48 = vadd.s32 8, %v4948_v29  ;;  %v2234_v40 = vld [vmem:[%s5075_s26 + $0x8] sm:$0xff] }
 0x23b   :  { %v636_v18 = vmul.f32 %v4933_v19, %v5052_v51  ;;  %4107 = vmatpush3.bf16.msra.mxu0 %v4104_v42  ;;  %v5077_v19 = vpop.permute.xlu1 %2360 }
 0x23c   :  { %v4283_v9 = vpop.eup %4282  ;;  %v4108_v31 = vpack.c.bf16 %v5049_v23, %v5055_v14  ;;  %v635_v49 = vmul.f32 %v4935_v2, %v5058_v20  ;;  %4049 = vmatprep.subr.bf16.mxu1 %v4048_v45  ;;  %v3826_v35 = vpop.f32.mrb[18].mxu0  ;;  %vm650_vm5 = vcmp.eq.s32.totalorder %v5110_v48, %v4952_v17 }
 0x23d   :  { %v4285_v5 = vpop.eup %4284  ;;  %v5067_v63 = vadd.f32 %v3826_v35, %v4996_v0  ;;  %4051 = vmatpush3.bf16.msra.mxu1 %v4048_v45  ;;  %v1166_v50 = vpop.f32.mrb[19].mxu0  ;;  %v5070_v52 = vmul.f32 %v4283_v9, %v4984_v57  ;;  %v2232_v35 = vld [vmem:[%s3367_s30 + $0x28] sm:$0xff] }
 0x23e   :  { %v4052_v2 = vpack.c.bf16 %v636_v18, %v635_v49  ;;  %v5080_v46 = vadd.f32 %v4996_v0, %v1166_v50  ;;  %4109 = vmatprep.subr.bf16.mxu0 %v4108_v31  ;;  %v5083_v16 = vmul.f32 %v4285_v5, %v4986_v36  ;;  %v2366_v5 = vpop.permute.xlu0 %2365 }
 0x23f   :  { %5875 = vst [vmem:[#allocation2_spill] sm:$0xff] %v5070_v52  ;;  %v638_v57 = vmul.f32 %v4937_v24, %v5070_v52  ;;  %4111 = vmatpush3.bf16.msra.mxu0 %v4108_v31  ;;  %v5102_v4 = vpop.permute.xlu1 %2370 }
 0x240   :  { %5876 = vst [vmem:[#allocation3_spill] sm:$0xff] %v5083_v16  ;;  %v4287_v55 = vpop.eup %4286  ;;  %v4112_v56 = vpack.c.bf16 %v5067_v63, %v5080_v46  ;;  %v637_v60 = vmul.f32 %v4939_v22, %v5083_v16  ;;  %4053 = vmatprep.subr.bf16.mxu1 %v4052_v2  ;;  %v3829_v25 = vpop.f32.mrb[20].mxu0 }
 0x241   :  { %v5092_v58 = vadd.f32 %v3829_v25, %v4996_v0  ;;  %4055 = vmatpush3.bf16.msra.mxu1 %v4052_v2  ;;  %v1176_v59 = vpop.f32.mrb[21].mxu0  ;;  %v5095_v36 = vmul.f32 %v4287_v55, %v4990_v26  ;;  %v1365_v55 = vld [vmem:[%s3381_s8 + $0x8] sm:$0xff] }
 0x242   :  { %v4056_v24 = vpack.c.bf16 %v638_v57, %v637_v60  ;;  %v5098_v1 = vadd.f32 %v4996_v0, %v1176_v59  ;;  %4113 = vmatprep.subr.bf16.mxu0 %v4112_v56  ;;  %v2376_v50 = vpop.permute.xlu0 %2375  ;;  %v1364_v57 = vld [vmem:[%s3381_s8] sm:$0xff]  ;;  %s3373_s8 = sld [smem:[%s5868_s0 + %s4425_s4]]  }
 0x243   :  { %5877 = vst [vmem:[#allocation4_spill] sm:$0xff] %v5095_v36  ;;  %v4289_v47 = vpop.eup %4288  ;;  %v640_v22 = vmul.f32 %v4941_v8, %v5095_v36  ;;  %4115 = vmatpush3.bf16.msra.mxu0 %v4112_v56  ;;  %v2233_v8 = vld [vmem:[%s5075_s26] sm:$0xff]  ;;  %v1205_v49 = vpop.permute.xlu1 %1204  ;;  %s5381_s26 = sld [smem:[%s5868_s0 + %s4422_s23]]  }
 0x244   :  { %v4116_v13 = vpack.c.bf16 %v5092_v58, %v5098_v1  ;;  %v5107_v26 = vmul.f32 %v4289_v47, %v4994_v15  ;;  %4057 = vmatprep.subr.bf16.mxu1 %v4056_v24  ;;  %v3832_v42 = vpop.f32.mrb[22].mxu0  ;;  %v4124_v31 = vpack.c.bf16 %v2234_v40, %v2233_v8  ;;  %vm1221_vm6 = vcmp.eq.s32.totalorder %v4950_v30, %v1205_v49 }
 0x245   :  { %v5113_v61 = vadd.f32 %v3832_v42, %v4996_v0  ;;  %4059 = vmatpush3.bf16.msra.mxu1 %v4056_v24  ;;  %v1186_v10 = vpop.f32.mrb[23].mxu0  ;;  %v3439_v17 = vsel %vm1221_vm6, 1.0, %v5869_v34 }
 0x246   :  { %5878 = vst [vmem:[#allocation5_spill] sm:$0xff] %v5107_v26  ;;  %v639_v45 = vmul.f32 %v4946_v33, %v5107_v26  ;;  %v5120_v18 = vadd.f32 %v4996_v0, %v1186_v10  ;;  %4117 = vmatprep.subr.bf16.mxu0 %v4116_v13  ;;  %v3417_v33 = vsel %vm650_vm5, 1.0, %v5869_v34  ;;  %v2229_v0 = vld [vmem:[%s3367_s30 + $0x10] sm:$0xff]  ;;  %v1208_v2 = vpop.permute.xlu0 %1207  ;;  %s3385_s30 = sld [smem:[%s5868_s0 + %s4423_s27]]  }
 0x247   :  { %4119 = vmatpush3.bf16.msra.mxu0 %v4116_v13  ;;  %v1211_v24 = vpop.permute.xlu1 %1210  ;;  %vm1222_vm14 = vcmp.eq.s32.totalorder %v4950_v30, %v1208_v2 }
 0x248   :  { %v4060_v15 = vpack.c.bf16 %v640_v22, %v639_v45  ;;  %v4120_v9 = vpack.c.bf16 %v5113_v61, %v5120_v18  ;;  %v4076_v22 = vpack.c.bf16 %v1365_v55, %v1364_v57  ;;  %vm1223_vm15 = vcmp.eq.s32.totalorder %v4950_v30, %v1211_v24  ;;  %v1360_v24 = vld [vmem:[%s5172_s13 + $0x10] sm:$0xff] }
 0x249   :  { %v3440_v8 = vsel %vm1222_vm14, 1.0, %v5869_v34  ;;  %v3441_v40 = vsel %vm1223_vm15, 1.0, %v5869_v34 }
 0x24a   :  { %4061 = vmatprep.subr.bf16.mxu1 %v4060_v15  ;;  %4121 = vmatprep.subr.bf16.mxu0 %v4120_v9  ;;  %v1214_v42 = vpop.permute.xlu0 %1213 }
 0x24b   :  { %4063 = vmatpush3.bf16.msra.mxu1 %v4060_v15  ;;  %4123 = vmatpush3.bf16.msra.mxu0 %v4120_v9  ;;  %v1217_v45 = vpop.permute.xlu1 %1216  ;;  %vm1224_vm2 = vcmp.eq.s32.totalorder %v4950_v30, %v1214_v42 }
 0x24c   :  { %4125 = vmatprep.subr.bf16.mxu0 %v4124_v31 }
 0x24e   :  { %3799 = vmatmul.mubr.msk.f32.vlgmr.msra.gmra.mrb[8].mxu1 %vm655_vm3, %v3417_v33  ;;  %3928 = vmatmul.mubr.msk.f32.vlgmr.msra.gmra.mrb[24].mxu0 %vm2109_vm7, %v4412_v38  ;;  %vm1225_vm3 = vcmp.eq.s32.totalorder %v4950_v30, %v1217_v45  ;;  %v1220_v49 = vpop.permute.xlu0 %1219 }
 0x24f   :  { %3837 = vmatprep.mubr.msk.f32.mxu1 %vm503_vm1, %v3439_v17  ;;  %3930 = vmatprep.mubr.msk.f32.mxu0 %vm2110_vm8, %v4412_v38  ;;  %v3443_v33 = vsel %vm1225_vm3, 1.0, %v5869_v34  ;;  %vm1226_vm4 = vcmp.eq.s32.totalorder %v4950_v30, %v1220_v49 }
 0x250   :  { %4127 = vmatpush3.bf16.msra.mxu0 %v4124_v31  ;;  %v3442_v31 = vsel %vm1224_vm2, 1.0, %v5869_v34 }
 0x252   :  { %3931 = vmatmul.mubr.msk.f32.gmra.mrb[26].mxu0 %vm2111_vm9, %v4412_v38 }
 0x253   :  { %3933 = vmatprep.mubr.msk.f32.mxu0 %vm2112_vm10, %v4412_v38 }
 0x256   :  { %3934 = vmatmul.mubr.msk.f32.gmra.mrb[28].mxu0 %vm2113_vm11, %v4412_v38  ;;  %v5158_v38 = vld [vmem:[%s3363_s3] ss:$0 sm:$0xff]  ;;  %s3372_s3 = sld [smem:[%s5868_s0 + %s4424_s17]]  }
 0x257   :  { %3940 = vmatprep.mubr.msk.f32.mxu0 %vm503_vm1, %v2227_v12  ;;  %vm2395_vm13 = vcmp.eq.s32.totalorder %v4948_v29, %v5158_v38  ;;  %vm2396_vm5 = vcmp.eq.s32.totalorder %v5110_v48, %v5158_v38  ;;  %v5213_v38 = vld [vmem:[%s3361_s18] ss:$0 sm:$0xff]  ;;  %s4428_s18 = smov 21  }
 0x258   :  { %v3511_v62 = vsel %vm2395_vm13, 1.0, %v5869_v34  ;;  %vm1540_vm7 = vcmp.eq.s32.totalorder %v4948_v29, %v5213_v38  ;;  %vm1541_vm8 = vcmp.eq.s32.totalorder %v5110_v48, %v5213_v38  ;;  %s3375_s21 = sld [smem:[%s5868_s0 + %s4428_s18]]  }
 0x25a   :  { %3941 = vmatmul.mubr.msk.f32.vlgmr.msra.gmra.mrb[30].mxu0 %vm503_vm1, %v2228_v32 }
 0x25b   :  { %3943 = vmatprep.mubr.msk.f32.mxu0 %vm503_vm1, %v2229_v0 }
 0x25e   :  { %3944 = vmatmul.mubr.msk.f32.gmra.mrb[32].mxu0 %vm503_vm1, %v2230_v54  ;;  %v1358_v54 = vld [vmem:[%s5172_s13] sm:$0xff] }
 0x25f   :  { %3946 = vmatprep.mubr.msk.f32.mxu0 %vm503_vm1, %v2231_v53  ;;  %v3444_v53 = vsel %vm1226_vm4, 1.0, %v5869_v34 }
 0x262   :  { %3947 = vmatmul.mubr.msk.f32.gmra.mrb[34].mxu0 %vm503_vm1, %v2232_v35 }
 0x263   :  { %3961 = vmatprep.mubr.msk.f32.mxu0 %vm1588_vm12, %v3511_v62 }
 0x321   :  { %v3800_v56 = vpop.f32.mrb[8].mxu1  ;;  %v3929_v60 = vpop.f32.mrb[24].mxu0 }
 0x322   :  { %v728_v25 = vpop.f32.mrb[9].mxu1  ;;  %v2192_v59 = vpop.f32.mrb[25].mxu0 }
 0x323   :  { %v4072_v47 = vpack.c.bf16 %v3800_v56, %v728_v25  ;;  %v1359_v56 = vld [vmem:[%s5172_s13 + $0x8] sm:$0xff] }
 0x325   :  { %4073 = vmatprep.subr.bf16.mxu1 %v4072_v47  ;;  %v3932_v13 = vpop.f32.mrb[26].mxu0 }
 0x326   :  { %4075 = vmatpush3.bf16.msra.mxu1 %v4072_v47  ;;  %v2202_v10 = vpop.f32.mrb[27].mxu0 }
 0x327   :  { %4077 = vmatprep.subr.bf16.mxu1 %v4076_v22 }
 0x329   :  { %3838 = vmatmul.mubr.msk.f32.vlgmr.msra.gmra.mrb[10].mxu1 %vm503_vm1, %v3440_v8  ;;  %v3935_v15 = vpop.f32.mrb[28].mxu0 }
 0x32a   :  { %3840 = vmatprep.mubr.msk.f32.mxu1 %vm503_vm1, %v3441_v40  ;;  %v2212_v9 = vpop.f32.mrb[29].mxu0  ;;  %4079 = vmatpush3.bf16.msra.mxu1 %v4076_v22  ;;  %v1361_v22 = vld [vmem:[%s5172_s13 + $0x18] sm:$0xff]  ;;  %v1362_v40 = vld [vmem:[%s5172_s13 + $0x20] sm:$0xff] }
 0x32d   :  { %3841 = vmatmul.mubr.msk.f32.gmra.mrb[12].mxu1 %vm503_vm1, %v3442_v31  ;;  %v3942_v17 = vpop.f32.mrb[30].mxu0  ;;  %v5219_v31 = vpop.permute.xlu0 %2494 }
 0x32e   :  { %3843 = vmatprep.mubr.msk.f32.mxu1 %vm503_vm1, %v3443_v33  ;;  %v2379_v12 = vmul.f32 %v3942_v17, %v5042_v7  ;;  %v2319_v32 = vpop.f32.mrb[31].mxu0  ;;  %vm2515_vm9 = vcmp.eq.s32.totalorder %v4950_v30, %v5219_v31 }
 0x32f   :  { %v2378_v0 = vmul.f32 %v5021_v21, %v2319_v32 }
 0x330   :  { %v2385_v35 = vmul.f32 %v3929_v60, %v2379_v12 }
 0x331   :  { %v2384_v62 = vmul.f32 %v2378_v0, %v2192_v59  ;;  %3844 = vmatmul.mubr.msk.f32.gmra.mrb[14].mxu1 %vm503_vm1, %v3444_v53  ;;  %v3945_v2 = vpop.f32.mrb[32].mxu0  ;;  %v5221_v49 = vpop.permute.xlu0 %2500 }
 0x332   :  { %v2381_v57 = vmul.f32 %v3945_v2, %v2366_v5  ;;  %3850 = vmatprep.mubr.msk.f32.mxu1 %vm503_vm1, %v1358_v54  ;;  %v2329_v55 = vpop.f32.mrb[33].mxu0  ;;  %vm2517_vm15 = vcmp.eq.s32.totalorder %v4950_v30, %v5221_v49  ;;  %v1527_v49 = vadd.s32 56, %v4948_v29 }
 0x333   :  { %v2380_v7 = vmul.f32 %v5077_v19, %v2329_v55  ;;  %v4128_v25 = vpack.c.bf16 %v2385_v35, %v2384_v62 }
 0x334   :  { %v2387_v21 = vmul.f32 %v3932_v13, %v2381_v57  ;;  %v1363_v13 = vld [vmem:[%s5172_s13 + $0x28] sm:$0xff]  ;;  %s5694_s13 = sld [smem:[%s5868_s0 + %s4426_s10]]  }
 0x335   :  { %v2386_v47 = vmul.f32 %v2380_v7, %v2202_v10  ;;  %3851 = vmatmul.mubr.msk.f32.vlgmr.msra.gmra.mrb[16].mxu1 %vm503_vm1, %v1359_v56  ;;  %v3948_v60 = vpop.f32.mrb[34].mxu0  ;;  %4129 = vmatprep.subr.bf16.mxu0 %v4128_v25  ;;  %v5225_v17 = vpop.permute.xlu0 %2506 }
 0x336   :  { %v2383_v59 = vmul.f32 %v3948_v60, %v2376_v50  ;;  %3853 = vmatprep.mubr.msk.f32.mxu1 %vm503_vm1, %v1360_v24  ;;  %v2339_v5 = vpop.f32.mrb[35].mxu0  ;;  %4131 = vmatpush3.bf16.msra.mxu0 %v4128_v25  ;;  %v2492_v50 = vpop.permute.xlu1 %2491 }
 0x337   :  { %v2382_v42 = vmul.f32 %v5102_v4, %v2339_v5  ;;  %v4132_v8 = vpack.c.bf16 %v2387_v21, %v2386_v47  ;;  %vm2514_vm6 = vcmp.eq.s32.totalorder %v4950_v30, %v2492_v50  ;;  %v3512_v4 = vsel %vm2396_vm5, 1.0, %v5869_v34 }
 0x338   :  { %v2389_v19 = vmul.f32 %v3935_v15, %v2383_v59  ;;  %v3515_v15 = vsel %vm2514_vm6, 1.0, %v5869_v34  ;;  %vm2519_vm5 = vcmp.eq.s32.totalorder %v4950_v30, %v5225_v17 }
 0x339   :  { %v2388_v45 = vmul.f32 %v2382_v42, %v2212_v9  ;;  %3854 = vmatmul.mubr.msk.f32.gmra.mrb[18].mxu1 %vm503_vm1, %v1361_v22  ;;  %4133 = vmatprep.subr.bf16.mxu0 %v4132_v8  ;;  %v3458_v9 = vsel %vm1540_vm7, 1.0, %v5869_v34  ;;  %v5229_v32 = vpop.permute.xlu0 %2512  ;;  %vm1547_vm7 = vcmp.eq.s32.totalorder %v1527_v49, %v5213_v38 }
 0x33a   :  { %3856 = vmatprep.mubr.msk.f32.mxu1 %vm503_vm1, %v1362_v40  ;;  %4135 = vmatpush3.bf16.msra.mxu0 %v4132_v8  ;;  %v5223_v33 = vpop.permute.xlu1 %2497 }
 0x33b   :  { %v4136_v10 = vpack.c.bf16 %v2389_v19, %v2388_v45  ;;  %vm2516_vm11 = vcmp.eq.s32.totalorder %v4950_v30, %v5223_v33 }
 0x33d   :  { %3857 = vmatmul.mubr.msk.f32.gmra.mrb[20].mxu1 %vm503_vm1, %v1363_v13  ;;  %4137 = vmatprep.subr.bf16.mxu0 %v4136_v10  ;;  %v5233_v54 = vpop.permute.xlu0 %2679 }
 0x33e   :  { %4139 = vmatpush3.bf16.msra.mxu0 %v4136_v10  ;;  %3871 = vmatprep.mubr.msk.f32.mxu1 %vm1588_vm12, %v3458_v9  ;;  %v5227_v12 = vpop.permute.xlu1 %2503 }
 0x33f   :  { %vm2518_vm2 = vcmp.eq.s32.totalorder %v4950_v30, %v5227_v12  ;;  %v1528_v12 = vadd.s32 64, %v4948_v29 }
 0x341   :  { %3962 = vmatmul.mubr.msk.f32.vlgmr.msra.gmra.mrb[36].mxu0 %vm1588_vm12, %v3512_v4  ;;  %v5237_v35 = vpop.permute.xlu0 %2685 }
 0x342   :  { %3968 = vmatprep.mubr.msk.f32.mxu0 %vm503_vm1, %v3515_v15  ;;  %v5231_v0 = vpop.permute.xlu1 %2509 }
 0x343   :  { %vm2520_vm6 = vcmp.eq.s32.totalorder %v4950_v30, %v5231_v0 }
 0x345   :  { %v5241_v2 = vpop.permute.xlu0 %2691 }
 0x346   :  { %v5235_v53 = vpop.permute.xlu1 %2676 }
 0x349   :  { %v5245_v7 = vpop.permute.xlu0 %2697 }
 0x34a   :  { %v5239_v62 = vpop.permute.xlu1 %2682 }
 0x34d   :  { %v1487_v47 = vpop.permute.xlu0 %1486 }
 0x34e   :  { %v5243_v57 = vpop.permute.xlu1 %2688 }
 0x351   :  { %v1497_v40 = vpop.permute.xlu0 %1496 }
 0x352   :  { %v5247_v25 = vpop.permute.xlu1 %2694 }
 0x356   :  { %v1482_v59 = vpop.permute.xlu1 %1481 }
 0x35a   :  { %v1492_v45 = vpop.permute.xlu1 %1491 }
 0x3fc   :  { %v3839_v55 = vpop.f32.mrb[10].mxu1 }
 0x3fd   :  { %v1323_v56 = vpop.f32.mrb[11].mxu1 }
 0x400   :  { %v3842_v24 = vpop.f32.mrb[12].mxu1 }
 0x401   :  { %v1333_v21 = vpop.f32.mrb[13].mxu1 }
 0x404   :  { %v3845_v60 = vpop.f32.mrb[14].mxu1 }
 0x405   :  { %v1343_v5 = vpop.f32.mrb[15].mxu1 }
 0x408   :  { %v3852_v22 = vpop.f32.mrb[16].mxu1 }
 0x409   :  { %v1510_v42 = vmul.f32 %v3852_v22, %v1487_v47  ;;  %v1450_v8 = vpop.f32.mrb[17].mxu1  ;;  %v1507_v22 = vpop.permute.xlu0 %1506 }
 0x40a   :  { %v1509_v19 = vmul.f32 %v1482_v59, %v1450_v8 }
 0x40b   :  { %v1516_v13 = vmul.f32 %v3839_v55, %v1510_v42  ;;  %v1502_v55 = vpop.permute.xlu1 %1501 }
 0x40c   :  { %v1515_v10 = vmul.f32 %v1509_v19, %v1323_v56  ;;  %v3855_v50 = vpop.f32.mrb[18].mxu1  ;;  %v2856_v56 = vld [vmem:[%s5252_s22] sm:$0xff]  ;;  %v2857_v19 = vld [vmem:[%s5252_s22 + $0x8] sm:$0xff] }
 0x40d   :  { %v1512_v4 = vmul.f32 %v3855_v50, %v1497_v40  ;;  %v1460_v15 = vpop.f32.mrb[19].mxu1 }
 0x40e   :  { %v1511_v9 = vmul.f32 %v1492_v45, %v1460_v15  ;;  %v4080_v34 = vpack.c.bf16 %v1516_v13, %v1515_v10  ;;  %v1522_v45 = vadd.s32 16, %v4948_v29 }
 0x40f   :  { %v1518_v47 = vmul.f32 %v3842_v24, %v1512_v4 }
 0x410   :  { %v1517_v26 = vmul.f32 %v1511_v9, %v1333_v21  ;;  %v3858_v59 = vpop.f32.mrb[20].mxu1  ;;  %4081 = vmatprep.subr.bf16.mxu1 %v4080_v34  ;;  %v1523_v21 = vadd.s32 24, %v4948_v29  ;;  %vm1542_vm10 = vcmp.eq.s32.totalorder %v1522_v45, %v5213_v38  ;;  %v1533_v45 = vadd.s32 104, %v4948_v29 }
 0x411   :  { %v1514_v42 = vmul.f32 %v3858_v59, %v1507_v22  ;;  %v1470_v8 = vpop.f32.mrb[21].mxu1  ;;  %4083 = vmatpush3.bf16.msra.mxu1 %v4080_v34  ;;  %v4148_v34 = vpack.c.bf16 %v2857_v19, %v2856_v56  ;;  %v1529_v59 = vadd.s32 72, %v4948_v29  ;;  %v1531_v56 = vadd.s32 88, %v4948_v29 }
 0x412   :  { %v1513_v36 = vmul.f32 %v1502_v55, %v1470_v8  ;;  %v4084_v16 = vpack.c.bf16 %v1518_v47, %v1517_v26  ;;  %v1524_v26 = vadd.s32 32, %v4948_v29  ;;  %vm1543_vm13 = vcmp.eq.s32.totalorder %v1523_v21, %v5213_v38 }
 0x413   :  { %v1520_v52 = vmul.f32 %v3845_v60, %v1514_v42  ;;  %v1526_v60 = vadd.s32 48, %v4948_v29  ;;  %v1530_v55 = vadd.s32 80, %v4948_v29  ;;  %v1532_v19 = vadd.s32 96, %v4948_v29 }
 0x414   :  { %v1519_v40 = vmul.f32 %v1513_v36, %v1343_v5  ;;  %4085 = vmatprep.subr.bf16.mxu1 %v4084_v16  ;;  %v3963_v50 = vpop.f32.mrb[36].mxu0  ;;  %v1525_v36 = vadd.s32 40, %v4948_v29  ;;  %vm1544_vm14 = vcmp.eq.s32.totalorder %v1524_v26, %v5213_v38 }
 0x415   :  { %4087 = vmatpush3.bf16.msra.mxu1 %v4084_v16  ;;  %v2473_v24 = vpop.f32.mrb[37].mxu0  ;;  %v5879_v16 = vmov 0.0   ;;  %vm1546_vm4 = vcmp.eq.s32.totalorder %v1526_v60, %v5213_v38 }
 0x416   :  { %v4140_v13 = vpack.c.bf16 %v3963_v50, %v2473_v24  ;;  %v4088_v10 = vpack.c.bf16 %v1520_v52, %v1519_v40  ;;  %v3459_v52 = vsel %vm1541_vm8, 1.0, %v5879_v16  ;;  %v3516_v48 = vsel %vm2515_vm9, 1.0, %v5879_v16 }
 0x417   :  { %v3460_v31 = vsel %vm1542_vm10, 1.0, %v5879_v16  ;;  %v3517_v33 = vsel %vm2516_vm11, 1.0, %v5879_v16  ;;  %v3461_v5 = vsel %vm1543_vm13, 1.0, %v5879_v16  ;;  %v3462_v4 = vsel %vm1544_vm14, 1.0, %v5879_v16 }
 0x418   :  { %4089 = vmatprep.subr.bf16.mxu1 %v4088_v10  ;;  %4141 = vmatprep.subr.bf16.mxu0 %v4140_v13  ;;  %vm1545_vm3 = vcmp.eq.s32.totalorder %v1525_v36, %v5213_v38  ;;  %v3518_v15 = vsel %vm2517_vm15, 1.0, %v5879_v16  ;;  %v3519_v9 = vsel %vm2518_vm2, 1.0, %v5879_v16  ;;  %v3464_v22 = vsel %vm1546_vm4, 1.0, %v5879_v16  ;;  %v2859_v36 = vld [vmem:[%s5252_s22 + $0x18] sm:$0xff] }
 0x419   :  { %4091 = vmatpush3.bf16.msra.mxu1 %v4088_v10  ;;  %4143 = vmatpush3.bf16.msra.mxu0 %v4140_v13  ;;  %v3463_v47 = vsel %vm1545_vm3, 1.0, %v5879_v16  ;;  %v3520_v17 = vsel %vm2519_vm5, 1.0, %v5879_v16  ;;  %vm1548_vm8 = vcmp.eq.s32.totalorder %v1528_v12, %v5213_v38  ;;  %v3521_v0 = vsel %vm2520_vm6, 1.0, %v5879_v16 }
 0x41a   :  { %4145 = vmatprep.subr.bf16.mxu0 %v4140_v13  ;;  %4149 = vmatprep.subr.bf16.mxu1 %v4148_v34  ;;  %vm2521_vm9 = vcmp.eq.s32.totalorder %v4950_v30, %v5229_v32  ;;  %vm2699_vm10 = vcmp.eq.s32.totalorder %v4950_v30, %v5235_v53  ;;  %v3465_v42 = vsel %vm1547_vm7, 1.0, %v5879_v16  ;;  %v3466_v8 = vsel %vm1548_vm8, 1.0, %v5879_v16 }
 0x41b   :  { %vm1549_vm11 = vcmp.eq.s32.totalorder %v1529_v59, %v5213_v38  ;;  %v3522_v32 = vsel %vm2521_vm9, 1.0, %v5879_v16  ;;  %vm1550_vm13 = vcmp.eq.s32.totalorder %v1530_v55, %v5213_v38  ;;  %v3531_v53 = vsel %vm2699_vm10, 1.0, %v5879_v16 }
 0x41c   :  { %3969 = vmatmul.mubr.msk.f32.vlgmr.msra.gmra.mrb[38].mxu0 %vm503_vm1, %v3516_v48  ;;  %3872 = vmatmul.mubr.msk.f32.vlgmr.msra.gmra.mrb[22].mxu1 %vm1588_vm12, %v3459_v52  ;;  %vm2700_vm14 = vcmp.eq.s32.totalorder %v4950_v30, %v5233_v54  ;;  %vm2701_vm15 = vcmp.eq.s32.totalorder %v4950_v30, %v5239_v62  ;;  %v3467_v40 = vsel %vm1549_vm11, 1.0, %v5879_v16  ;;  %v3468_v50 = vsel %vm1550_vm13, 1.0, %v5879_v16 }
 0x41d   :  { %3971 = vmatprep.mubr.msk.f32.mxu0 %vm503_vm1, %v3517_v33  ;;  %4147 = vmatpush3.bf16.msra.mxu0 %v4140_v13  ;;  %vm1551_vm2 = vcmp.eq.s32.totalorder %v1531_v56, %v5213_v38  ;;  %v3532_v54 = vsel %vm2700_vm14, 1.0, %v5879_v16  ;;  %vm1552_vm3 = vcmp.eq.s32.totalorder %v1532_v19, %v5213_v38  ;;  %v1534_v24 = vadd.s32 112, %v4948_v29 }
 0x41e   :  { %3874 = vmatprep.mubr.msk.f32.mxu1 %vm1588_vm12, %v3460_v31  ;;  %4151 = vmatpush3.bf16.msra.mxu1 %v4148_v34  ;;  %v3533_v62 = vsel %vm2701_vm15, 1.0, %v5879_v16  ;;  %vm2702_vm4 = vcmp.eq.s32.totalorder %v4950_v30, %v5237_v35  ;;  %vm2703_vm5 = vcmp.eq.s32.totalorder %v4950_v30, %v5243_v57  ;;  %v3469_v21 = vsel %vm1551_vm2, 1.0, %v5879_v16 }
 0x41f   :  { %v3470_v13 = vsel %vm1552_vm3, 1.0, %v5879_v16  ;;  %vm1553_vm6 = vcmp.eq.s32.totalorder %v1533_v45, %v5213_v38  ;;  %v1535_v10 = vadd.s32 120, %v4948_v29  ;;  %v3534_v35 = vsel %vm2702_vm4, 1.0, %v5879_v16  ;;  %v2854_v45 = vld [vmem:[%s5381_s26 + $0x10] sm:$0xff] }
 0x420   :  { %3972 = vmatmul.mubr.msk.f32.gmra.mrb[40].mxu0 %vm503_vm1, %v3518_v15  ;;  %3875 = vmatmul.mubr.msk.f32.gmra.mrb[24].mxu1 %vm1588_vm12, %v3461_v5  ;;  %vm1554_vm7 = vcmp.eq.s32.totalorder %v1534_v24, %v5213_v38  ;;  %v3535_v34 = vsel %vm2703_vm5, 1.0, %v5879_v16  ;;  %vm2704_vm8 = vcmp.eq.s32.totalorder %v4950_v30, %v5241_v2  ;;  %vm2705_vm9 = vcmp.eq.s32.totalorder %v4950_v30, %v5247_v25 }
 0x421   :  { %3974 = vmatprep.mubr.msk.f32.mxu0 %vm503_vm1, %v3519_v9  ;;  %3877 = vmatprep.mubr.msk.f32.mxu1 %vm1588_vm12, %v3462_v4  ;;  %v3471_v29 = vsel %vm1553_vm6, 1.0, %v5879_v16  ;;  %v3472_v57 = vsel %vm1554_vm7, 1.0, %v5879_v16  ;;  %vm1555_vm10 = vcmp.eq.s32.totalorder %v1535_v10, %v5213_v38  ;;  %v3536_v2 = vsel %vm2704_vm8, 1.0, %v5879_v16  ;;  %v2858_v38 = vld [vmem:[%s5252_s22 + $0x10] sm:$0xff]  ;;  %s4429_s22 = smov 32  }
 0x422   :  { %v3537_v26 = vsel %vm2705_vm9, 1.0, %v5879_v16  ;;  %vm2706_vm11 = vcmp.eq.s32.totalorder %v4950_v30, %v5245_v7  ;;  %v3473_v25 = vsel %vm1555_vm10, 1.0, %v5879_v16  ;;  %v4152_v48 = vpack.c.bf16 %v2859_v36, %v2858_v38  ;;  %v2852_v30 = vld [vmem:[%s5381_s26] sm:$0xff]  ;;  %v2853_v7 = vld [vmem:[%s5381_s26 + $0x8] sm:$0xff]  ;;  %s5818_s25 = sld [smem:[%s5868_s0 + %s4429_s22]]  }
 0x423   :  { %v3538_v52 = vsel %vm2706_vm11, 1.0, %v5879_v16  ;;  %v4156_v16 = vpack.c.bf16 %v2853_v7, %v2852_v30 }
 0x424   :  { %3975 = vmatmul.mubr.msk.f32.gmra.mrb[42].mxu0 %vm503_vm1, %v3520_v17  ;;  %3878 = vmatmul.mubr.msk.f32.gmra.mrb[26].mxu1 %vm1588_vm12, %v3463_v47 }
 0x425   :  { %3977 = vmatprep.mubr.msk.f32.mxu0 %vm503_vm1, %v3521_v0  ;;  %3880 = vmatprep.mubr.msk.f32.mxu1 %vm1588_vm12, %v3464_v22 }
 0x426   :  { %4153 = vmatprep.subr.bf16.mxu1 %v4152_v48 }
 0x427   :  { %4155 = vmatpush3.bf16.msra.mxu1 %v4152_v48 }
 0x428   :  { %3978 = vmatmul.mubr.msk.f32.gmra.mrb[44].mxu0 %vm503_vm1, %v3522_v32  ;;  %3881 = vmatmul.mubr.msk.f32.gmra.mrb[28].mxu1 %vm1588_vm12, %v3465_v42 }
 0x429   :  { %3984 = vmatprep.mubr.msk.f32.mxu0 %vm503_vm1, %v3531_v53  ;;  %3883 = vmatprep.mubr.msk.f32.mxu1 %vm1588_vm12, %v3466_v8 }
 0x42a   :  { %4157 = vmatprep.subr.bf16.mxu1 %v4156_v16 }
 0x42c   :  { %3985 = vmatmul.mubr.msk.f32.vlgmr.msra.gmra.mrb[46].mxu0 %vm503_vm1, %v3532_v54  ;;  %3884 = vmatmul.mubr.msk.f32.gmra.mrb[30].mxu1 %vm1588_vm12, %v3467_v40  ;;  %v2855_v54 = vld [vmem:[%s5381_s26 + $0x18] sm:$0xff] }
 0x42d   :  { %3987 = vmatprep.mubr.msk.f32.mxu0 %vm503_vm1, %v3533_v62  ;;  %3886 = vmatprep.mubr.msk.f32.mxu1 %vm1588_vm12, %v3468_v50  ;;  %v4160_v10 = vpack.c.bf16 %v2855_v54, %v2854_v45 }
 0x430   :  { %3988 = vmatmul.mubr.msk.f32.gmra.mrb[48].mxu0 %vm503_vm1, %v3534_v35  ;;  %3887 = vmatmul.mubr.msk.f32.gmra.mrb[32].mxu1 %vm1588_vm12, %v3469_v21 }
 0x431   :  { %3990 = vmatprep.mubr.msk.f32.mxu0 %vm503_vm1, %v3535_v34  ;;  %3889 = vmatprep.mubr.msk.f32.mxu1 %vm1588_vm12, %v3470_v13 }
 0x434   :  { %3991 = vmatmul.mubr.msk.f32.gmra.mrb[50].mxu0 %vm503_vm1, %v3536_v2  ;;  %3890 = vmatmul.mubr.msk.f32.gmra.mrb[34].mxu1 %vm1588_vm12, %v3471_v29 }
 0x435   :  { %3993 = vmatprep.mubr.msk.f32.mxu0 %vm503_vm1, %v3537_v26  ;;  %3892 = vmatprep.mubr.msk.f32.mxu1 %vm1588_vm12, %v3472_v57 }
 0x438   :  { %3994 = vmatmul.mubr.msk.f32.gmra.mrb[52].mxu0 %vm503_vm1, %v3538_v52  ;;  %3893 = vmatmul.mubr.msk.f32.gmra.mrb[36].mxu1 %vm1588_vm12, %v3473_v25 }
 0x4ef   :  { %v5385_v31 = vpop.f32.mrb[38].mxu0  ;;  %v5387_v60 = vpop.f32.mrb[22].mxu1 }
 0x4f0   :  { %v5389_v33 = vpop.f32.mrb[39].mxu0  ;;  %v5391_v5 = vpop.f32.mrb[23].mxu1  ;;  %v1787_v4 = vsel %vm163_vm0, %v5387_v60, 0.0 }
 0x4f1   :  { %1788 = vadd.xlane.f32.xlu0 %v1787_v4  ;;  %v1784_v49 = vsel %vm163_vm0, %v5391_v5, 0.0 }
 0x4f2   :  { %1785 = vadd.xlane.f32.xlu1 %v1784_v49 }
 0x4f3   :  { %v5397_v15 = vpop.f32.mrb[40].mxu0  ;;  %v5399_v12 = vpop.f32.mrb[24].mxu1 }
 0x4f4   :  { %v5401_v9 = vpop.f32.mrb[41].mxu0  ;;  %v5403_v47 = vpop.f32.mrb[25].mxu1  ;;  %v1793_v22 = vsel %vm163_vm0, %v5399_v12, 0.0 }
 0x4f5   :  { %v1790_v59 = vsel %vm163_vm0, %v5403_v47, 0.0 }
 0x4f6   :  { %1794 = vadd.xlane.f32.xlu1 %v1793_v22  ;;  %1791 = vadd.xlane.f32.xlu0 %v1790_v59 }
 0x4f7   :  { %v5409_v17 = vpop.f32.mrb[42].mxu0  ;;  %v5411_v55 = vpop.f32.mrb[26].mxu1 }
 0x4f8   :  { %v5413_v0 = vpop.f32.mrb[43].mxu0  ;;  %v5415_v42 = vpop.f32.mrb[27].mxu1  ;;  %v1799_v8 = vsel %vm163_vm0, %v5411_v55, 0.0 }
 0x4f9   :  { %v1796_v56 = vsel %vm163_vm0, %v5415_v42, 0.0 }
 0x4fa   :  { %1800 = vadd.xlane.f32.xlu1 %v1799_v8  ;;  %1797 = vadd.xlane.f32.xlu0 %v1796_v56 }
 0x4fb   :  { %v3979_v32 = vpop.f32.mrb[44].mxu0  ;;  %v5421_v19 = vpop.f32.mrb[28].mxu1 }
 0x4fc   :  { %v2658_v53 = vpop.f32.mrb[45].mxu0  ;;  %v5423_v40 = vpop.f32.mrb[29].mxu1  ;;  %v1805_v50 = vsel %vm163_vm0, %v5421_v19, 0.0 }
 0x4fd   :  { %v1802_v24 = vsel %vm163_vm0, %v5423_v40, 0.0 }
 0x4fe   :  { %1806 = vadd.xlane.f32.xlu1 %v1805_v50  ;;  %1803 = vadd.xlane.f32.xlu0 %v1802_v24 }
 0x4ff   :  { %v3986_v62 = vpop.f32.mrb[46].mxu0  ;;  %v5431_v21 = vpop.f32.mrb[30].mxu1 }
 0x500   :  { %v2813_v13 = vpop.f32.mrb[47].mxu0  ;;  %v5433_v35 = vpop.f32.mrb[31].mxu1  ;;  %v1811_v34 = vsel %vm163_vm0, %v5431_v21, 0.0 }
 0x501   :  { %4004 = vmatprep.mubr.msk.f32.mxu1 %vm163_vm0, %v2813_v13  ;;  %v1808_v29 = vsel %vm163_vm0, %v5433_v35, 0.0 }
 0x502   :  { %4005 = vmatmul.mubr.msk.f32.vlgmr.msra.gmra.mrb[38].mxu1 %vm163_vm0, %v3986_v62  ;;  %1812 = vadd.xlane.f32.xlu1 %v1811_v34 }
 0x503   :  { %v3989_v57 = vpop.f32.mrb[48].mxu0  ;;  %4159 = vmatpush3.bf16.msra.mxu1 %v4156_v16  ;;  %1809 = vadd.xlane.f32.xlu0 %v1808_v29  ;;  %v5441_v2 = vpop.f32.mrb[32].mxu1 }
 0x504   :  { %v2823_v26 = vpop.f32.mrb[49].mxu0  ;;  %4161 = vmatprep.subr.bf16.mxu1 %v4160_v10  ;;  %v5443_v25 = vpop.f32.mrb[33].mxu1  ;;  %v1817_v52 = vsel %vm163_vm0, %v5441_v2, 0.0 }
 0x505   :  { %4007 = vmatprep.mubr.msk.f32.mxu1 %vm163_vm0, %v2823_v26  ;;  %v1814_v38 = vsel %vm163_vm0, %v5443_v25, 0.0 }
 0x506   :  { %4008 = vmatmul.mubr.msk.f32.gmra.mrb[40].mxu1 %vm163_vm0, %v3989_v57  ;;  %1818 = vadd.xlane.f32.xlu1 %v1817_v52 }
 0x507   :  { %v3992_v36 = vpop.f32.mrb[50].mxu0  ;;  %4163 = vmatpush3.bf16.msra.mxu1 %v4160_v10  ;;  %1815 = vadd.xlane.f32.xlu0 %v1814_v38  ;;  %v5451_v48 = vpop.f32.mrb[34].mxu1 }
 0x508   :  { %v2833_v30 = vpop.f32.mrb[51].mxu0  ;;  %v5453_v7 = vpop.f32.mrb[35].mxu1  ;;  %v1823_v16 = vsel %vm163_vm0, %v5451_v48, 0.0 }
 0x509   :  { %4010 = vmatprep.mubr.msk.f32.mxu1 %vm163_vm0, %v2833_v30  ;;  %v1820_v4 = vsel %vm163_vm0, %v5453_v7, 0.0 }
 0x50a   :  { %4011 = vmatmul.mubr.msk.f32.gmra.mrb[42].mxu1 %vm163_vm0, %v3992_v36  ;;  %1824 = vadd.xlane.f32.xlu1 %v1823_v16 }
 0x50b   :  { %v3995_v49 = vpop.f32.mrb[52].mxu0  ;;  %1821 = vadd.xlane.f32.xlu0 %v1820_v4  ;;  %v5461_v22 = vpop.f32.mrb[36].mxu1 }
 0x50c   :  { %v2843_v59 = vpop.f32.mrb[53].mxu0  ;;  %v5463_v8 = vpop.f32.mrb[37].mxu1  ;;  %v1829_v56 = vsel %vm163_vm0, %v5461_v22, 0.0 }
 0x50d   :  { %4013 = vmatprep.mubr.msk.f32.mxu1 %vm163_vm0, %v2843_v59  ;;  %v1826_v50 = vsel %vm163_vm0, %v5463_v8, 0.0 }
 0x50e   :  { %4014 = vmatmul.mubr.msk.f32.gmra.mrb[44].mxu1 %vm163_vm0, %v3995_v49  ;;  %1830 = vadd.xlane.f32.xlu1 %v1829_v56 }
 0x50f   :  { %4024 = vmatprep.mubr.msk.f32.mxu1 %vm163_vm0, %v5389_v33  ;;  %1827 = vadd.xlane.f32.xlu0 %v1826_v50 }
 0x512   :  { %4025 = vmatmul.mubr.msk.f32.vlgmr.msra.gmra.mrb[38].mxu1 %vm163_vm0, %v5385_v31  ;;  %v3563_v31 = vld [vmem:[%s3385_s30] ss:$0 sm:$0xff] }
 0x513   :  { %4027 = vmatprep.mubr.msk.f32.mxu1 %vm163_vm0, %v5401_v9 }
 0x516   :  { %4028 = vmatmul.mubr.msk.f32.gmra.mrb[40].mxu1 %vm163_vm0, %v5397_v15 }
 0x517   :  { %4030 = vmatprep.mubr.msk.f32.mxu1 %vm163_vm0, %v5413_v0 }
 0x51a   :  { %4031 = vmatmul.mubr.msk.f32.gmra.mrb[42].mxu1 %vm163_vm0, %v5409_v17 }
 0x51b   :  { %4033 = vmatprep.mubr.msk.f32.mxu1 %vm163_vm0, %v2658_v53 }
 0x51e   :  { %4034 = vmatmul.mubr.msk.f32.gmra.mrb[44].mxu1 %vm163_vm0, %v3979_v32 }
 0x5e5   :  { %v4026_v33 = vpop.f32.mrb[38].mxu1 }
 0x5e6   :  { %v3126_v9 = vadd.f32 %v4026_v33, %v3563_v31  ;;  %v3079_v45 = vpop.f32.mrb[39].mxu1 }
 0x5e7   :  { %v3125_v15 = vadd.f32 %v3563_v31, %v3079_v45  ;;  %v1786_v45 = vpop.xlane.xlu1 %1785 }
 0x5e8   :  { %v3565_v54 = vmul.f32 -1.442695, %v3126_v9 }
 0x5e9   :  { %v3564_v24 = vmul.f32 -1.442695, %v3125_v15  ;;  %v4029_v0 = vpop.f32.mrb[40].mxu1 }
 0x5ea   :  { %4290 = vpow2.f32 %v3565_v54  ;;  %v3128_v62 = vadd.f32 %v4029_v0, %v3563_v31  ;;  %v3089_v17 = vpop.f32.mrb[41].mxu1 }
 0x5eb   :  { %4292 = vpow2.f32 %v3564_v24  ;;  %v3127_v53 = vadd.f32 %v3563_v31, %v3089_v17  ;;  %v1789_v17 = vpop.xlane.xlu0 %1788 }
 0x5ec   :  { %v3567_v13 = vmul.f32 -1.442695, %v3128_v62 }
 0x5ed   :  { %v3566_v32 = vmul.f32 -1.442695, %v3127_v53  ;;  %v4032_v10 = vpop.f32.mrb[42].mxu1 }
 0x5ee   :  { %4294 = vpow2.f32 %v3567_v13  ;;  %v5488_v34 = vadd.f32 %v4032_v10, %v3563_v31  ;;  %v3099_v29 = vpop.f32.mrb[43].mxu1  ;;  %v1795_v10 = vpop.xlane.xlu1 %1794 }
 0x5ef   :  { %4296 = vpow2.f32 %v3566_v32  ;;  %v5490_v57 = vadd.f32 %v3563_v31, %v3099_v29 }
 0x5f0   :  { %v3569_v26 = vmul.f32 -1.442695, %v5488_v34 }
 0x5f1   :  { %v3568_v52 = vmul.f32 -1.442695, %v5490_v57  ;;  %v4035_v38 = vpop.f32.mrb[44].mxu1 }
 0x5f2   :  { %4298 = vpow2.f32 %v3569_v26  ;;  %v5494_v36 = vadd.f32 %v4035_v38, %v3563_v31  ;;  %v3109_v30 = vpop.f32.mrb[45].mxu1  ;;  %v1792_v38 = vpop.xlane.xlu0 %1791 }
 0x5f3   :  { %4300 = vpow2.f32 %v3568_v52  ;;  %v5496_v16 = vadd.f32 %v3563_v31, %v3109_v30 }
 0x5f4   :  { %v4291_v4 = vpop.eup %4290  ;;  %v3571_v49 = vmul.f32 -1.442695, %v5494_v36 }
 0x5f5   :  { %v4293_v59 = vpop.eup %4292  ;;  %v3158_v56 = vadd.f32 1.0, %v4291_v4  ;;  %v3570_v50 = vmul.f32 -1.442695, %v5496_v16 }
 0x5f6   :  { %v3157_v33 = vadd.f32 1.0, %v4293_v59  ;;  %4302 = vpow2.f32 %v3571_v49 }
 0x5f7   :  { %4304 = vrcp.f32 %v3158_v56 }
 0x5f8   :  { %v4295_v54 = vpop.eup %4294  ;;  %4306 = vrcp.f32 %v3157_v33 }
 0x5f9   :  { %v4297_v24 = vpop.eup %4296  ;;  %v3160_v0 = vadd.f32 1.0, %v4295_v54  ;;  %4308 = vpow2.f32 %v3570_v50  ;;  %v1801_v50 = vpop.xlane.xlu1 %1800 }
 0x5fa   :  { %v3159_v13 = vadd.f32 1.0, %v4297_v24 }
 0x5fb   :  { %4310 = vrcp.f32 %v3160_v0 }
 0x5fc   :  { %v4299_v31 = vpop.eup %4298  ;;  %4312 = vrcp.f32 %v3159_v13 }
 0x5fd   :  { %v4301_v32 = vpop.eup %4300  ;;  %v3162_v29 = vadd.f32 1.0, %v4299_v31 }
 0x5fe   :  { %v3161_v26 = vadd.f32 1.0, %v4301_v32  ;;  %v1798_v32 = vpop.xlane.xlu0 %1797 }
 0x5ff   :  { %4314 = vrcp.f32 %v3162_v29 }
 0x600   :  { %v4303_v52 = vpop.eup %4302  ;;  %4316 = vrcp.f32 %v3161_v26 }
 0x601   :  { %v4305_v30 = vpop.eup %4304  ;;  %v3164_v4 = vadd.f32 1.0, %v4303_v52 }
 0x602   :  { %v4307_v49 = vpop.eup %4306  ;;  %v5500_v59 = vmul.f32 %v4305_v30, %v3126_v9  ;;  %v1807_v30 = vpop.xlane.xlu1 %1806 }
 0x603   :  { %v4309_v56 = vpop.eup %4308  ;;  %v5502_v33 = vmul.f32 %v4307_v49, %v3125_v15  ;;  %4318 = vrcp.f32 %v3164_v4  ;;  %v1833_v15 = vmul.f32 0.03125, %v1789_v17  ;;  %v1835_v17 = vmul.f32 0.03125, %v1795_v10 }
 0x604   :  { %v3163_v54 = vadd.f32 1.0, %v4309_v56  ;;  %v3194_v24 = vsel %vm163_vm0, %v5500_v59, 0.0 }
 0x605   :  { %v4311_v0 = vpop.eup %4310  ;;  %3195 = vadd.xlane.f32.xlu1 %v3194_v24  ;;  %v3191_v13 = vsel %vm163_vm0, %v5502_v33, 0.0  ;;  %v1804_v24 = vpop.xlane.xlu0 %1803  ;;  %v5536_v10 = vsub.f32 %v5399_v12, %v1835_v17  ;;  %v1839_v17 = vmul.f32 0.03125, %v1807_v30 }
 0x606   :  { %v4313_v31 = vpop.eup %4312  ;;  %v5508_v29 = vmul.f32 %v4311_v0, %v3128_v62  ;;  %4320 = vrcp.f32 %v3163_v54  ;;  %3192 = vadd.xlane.f32.xlu0 %v3191_v13  ;;  %v1832_v62 = vmul.f32 0.03125, %v1786_v45  ;;  %v1834_v45 = vmul.f32 0.03125, %v1792_v38 }
 0x607   :  { %v5510_v9 = vmul.f32 %v4313_v31, %v3127_v53  ;;  %v5523_v53 = vsub.f32 %v5387_v60, %v1833_v15  ;;  %v1813_v60 = vpop.xlane.xlu1 %1812  ;;  %v1836_v38 = vmul.f32 0.03125, %v1798_v32  ;;  %v1838_v32 = vmul.f32 0.03125, %v1804_v24 }
 0x608   :  { %v3200_v26 = vsel %vm163_vm0, %v5508_v29, 0.0  ;;  %v1841_v30 = vmul.f32 0.03125, %v1813_v60 }
 0x609   :  { %v4315_v52 = vpop.eup %4314  ;;  %3201 = vadd.xlane.f32.xlu1 %v3200_v26  ;;  %v3197_v4 = vsel %vm163_vm0, %v5510_v9, 0.0  ;;  %v1837_v26 = vmul.f32 0.03125, %v1801_v50 }
 0x60a   :  { %v4317_v49 = vpop.eup %4316  ;;  %v5517_v56 = vmul.f32 %v4315_v52, %v5488_v34  ;;  %3198 = vadd.xlane.f32.xlu0 %v3197_v4  ;;  %v1865_v4 = vmul.f32 %v5523_v53, %v5523_v53  ;;  %v5577_v60 = vsub.f32 %v5431_v21, %v1841_v30 }
 0x60b   :  { %v5520_v54 = vmul.f32 %v4317_v49, %v5490_v57  ;;  %v5533_v57 = vsub.f32 %v5391_v5, %v1832_v62  ;;  %v1810_v49 = vpop.xlane.xlu0 %1809  ;;  %v5546_v5 = vsub.f32 %v5403_v47, %v1834_v45  ;;  %v5553_v62 = vsub.f32 %v5411_v55, %v1837_v26 }
 0x60c   :  { %v3206_v0 = vsel %vm163_vm0, %v5517_v56, 0.0  ;;  %v5559_v47 = vsub.f32 %v5415_v42, %v1836_v38  ;;  %v5565_v55 = vsub.f32 %v5421_v19, %v1839_v17  ;;  %v5571_v42 = vsub.f32 %v5423_v40, %v1838_v32 }
 0x60d   :  { %v4319_v13 = vpop.eup %4318  ;;  %3207 = vadd.xlane.f32.xlu1 %v3206_v0  ;;  %v3203_v31 = vsel %vm163_vm0, %v5520_v54, 0.0  ;;  %v1864_v50 = vmul.f32 %v5533_v57, %v5533_v57  ;;  %v1867_v0 = vmul.f32 %v5536_v10, %v5536_v10  ;;  %v1866_v45 = vmul.f32 %v5546_v5, %v5546_v5 }
 0x60e   :  { %v5530_v34 = vmul.f32 %v4319_v13, %v5494_v36  ;;  %3204 = vadd.xlane.f32.xlu0 %v3203_v31  ;;  %v1819_v13 = vpop.xlane.xlu1 %1818  ;;  %v1840_v24 = vmul.f32 0.03125, %v1810_v49  ;;  %v1868_v19 = vmul.f32 %v5559_v47, %v5559_v47  ;;  %v1871_v17 = vmul.f32 %v5565_v55, %v5565_v55 }
 0x60f   :  { %v1880_v31 = vsel %vm163_vm0, %v1864_v50, 0.0  ;;  %v1889_v26 = vsel %vm163_vm0, %v1867_v0, 0.0  ;;  %v1886_v38 = vsel %vm163_vm0, %v1866_v45, 0.0  ;;  %v1870_v32 = vmul.f32 %v5571_v42, %v5571_v42 }
 0x610   :  { %v4321_v15 = vpop.eup %4320  ;;  %v3212_v52 = vsel %vm163_vm0, %v5530_v34, 0.0  ;;  %v5583_v49 = vsub.f32 %v5433_v35, %v1840_v24  ;;  %v1892_v0 = vsel %vm163_vm0, %v1868_v19, 0.0  ;;  %v1873_v45 = vmul.f32 %v5577_v60, %v5577_v60 }
 0x611   :  { %v5543_v36 = vmul.f32 %v4321_v15, %v5496_v16  ;;  %3213 = vadd.xlane.f32.xlu1 %v3212_v52  ;;  %v1883_v16 = vsel %vm163_vm0, %v1865_v4, 0.0  ;;  %v1816_v15 = vpop.xlane.xlu0 %1815  ;;  %v1869_v52 = vmul.f32 %v5553_v62, %v5553_v62 }
 0x612   :  { %v1825_v4 = vpop.xlane.xlu1 %1824 }
 0x613   :  { %v3209_v12 = vsel %vm163_vm0, %v5543_v36, 0.0  ;;  %v1895_v50 = vsel %vm163_vm0, %v1869_v52, 0.0  ;;  %v1872_v52 = vmul.f32 %v5583_v49, %v5583_v49 }
 0x614   :  { %3210 = vadd.xlane.f32.xlu0 %v3209_v12  ;;  %v1843_v12 = vmul.f32 0.03125, %v1819_v13  ;;  %v1845_v13 = vmul.f32 0.03125, %v1825_v4 }
 0x615   :  { %1884 = vadd.xlane.f32.xlu1 %v1883_v16  ;;  %v1822_v40 = vpop.xlane.xlu0 %1821  ;;  %v1842_v16 = vmul.f32 0.03125, %v1816_v15 }
 0x616   :  { %v5589_v21 = vsub.f32 %v5441_v2, %v1843_v12  ;;  %v1831_v30 = vpop.xlane.xlu1 %1830  ;;  %v1844_v15 = vmul.f32 0.03125, %v1822_v40  ;;  %v5601_v2 = vsub.f32 %v5451_v48, %v1845_v13 }
 0x617   :  { %v5595_v35 = vsub.f32 %v5443_v25, %v1842_v16  ;;  %v1847_v24 = vmul.f32 0.03125, %v1831_v30 }
 0x618   :  { %1881 = vadd.xlane.f32.xlu0 %v1880_v31  ;;  %v1901_v31 = vsel %vm163_vm0, %v1871_v17, 0.0  ;;  %v1875_v19 = vmul.f32 %v5589_v21, %v5589_v21  ;;  %v5607_v25 = vsub.f32 %v5453_v7, %v1844_v15  ;;  %v1877_v16 = vmul.f32 %v5601_v2, %v5601_v2 }
 0x619   :  { %1890 = vadd.xlane.f32.xlu1 %v1889_v26  ;;  %v1898_v26 = vsel %vm163_vm0, %v1870_v32, 0.0  ;;  %v1828_v4 = vpop.xlane.xlu0 %1827  ;;  %v1874_v17 = vmul.f32 %v5595_v35, %v5595_v35  ;;  %v5613_v48 = vsub.f32 %v5461_v22, %v1847_v24 }
 0x61a   :  { %v1846_v12 = vmul.f32 0.03125, %v1828_v4  ;;  %v1913_v40 = vsel %vm163_vm0, %v1875_v19, 0.0  ;;  %v1876_v32 = vmul.f32 %v5607_v25, %v5607_v25  ;;  %v1919_v13 = vsel %vm163_vm0, %v1877_v16, 0.0 }
 0x61b   :  { %v1910_v7 = vsel %vm163_vm0, %v1874_v17, 0.0  ;;  %v1879_v22 = vmul.f32 %v5613_v48, %v5613_v48 }
 0x61c   :  { %1887 = vadd.xlane.f32.xlu0 %v1886_v38  ;;  %v1907_v38 = vsel %vm163_vm0, %v1873_v45, 0.0 }
 0x61d   :  { %1896 = vadd.xlane.f32.xlu1 %v1895_v50  ;;  %v1904_v50 = vsel %vm163_vm0, %v1872_v52, 0.0 }
 0x620   :  { %1893 = vadd.xlane.f32.xlu0 %v1892_v0  ;;  %v5619_v0 = vsub.f32 %v5463_v8, %v1846_v12  ;;  %v1925_v8 = vsel %vm163_vm0, %v1879_v22, 0.0 }
 0x621   :  { %1902 = vadd.xlane.f32.xlu1 %v1901_v31  ;;  %v1916_v31 = vsel %vm163_vm0, %v1876_v32, 0.0 }
 0x622   :  { %v1878_v45 = vmul.f32 %v5619_v0, %v5619_v0 }
 0x624   :  { %1899 = vadd.xlane.f32.xlu0 %v1898_v26  ;;  %v1922_v30 = vsel %vm163_vm0, %v1878_v45, 0.0 }
 0x625   :  { %1908 = vadd.xlane.f32.xlu1 %v1907_v38 }
 0x628   :  { %1905 = vadd.xlane.f32.xlu0 %v1904_v50 }
 0x629   :  { %1914 = vadd.xlane.f32.xlu1 %v1913_v40 }
 0x62c   :  { %1911 = vadd.xlane.f32.xlu0 %v1910_v7 }
 0x62d   :  { %1920 = vadd.xlane.f32.xlu1 %v1919_v13 }
 0x630   :  { %1917 = vadd.xlane.f32.xlu0 %v1916_v31 }
 0x631   :  { %1926 = vadd.xlane.f32.xlu1 %v1925_v8 }
 0x634   :  { %1923 = vadd.xlane.f32.xlu0 %v1922_v30 }
 0x692   :  { %v3196_v15 = vpop.xlane.xlu1 %3195 }
 0x693   :  { %v3216_v26 = vmul.f32 0.03125, %v3196_v15  ;;  %v3193_v52 = vpop.xlane.xlu0 %3192 }
 0x694   :  { %v3215_v24 = vmul.f32 0.03125, %v3193_v52 }
 0x695   :  { %v5633_v4 = vsub.f32 %v5500_v59, %v3216_v26 }
 0x696   :  { %v5636_v38 = vsub.f32 %v5502_v33, %v3215_v24  ;;  %v3202_v19 = vpop.xlane.xlu1 %3201 }
 0x697   :  { %v3218_v12 = vmul.f32 0.03125, %v3202_v19  ;;  %v3199_v50 = vpop.xlane.xlu0 %3198  ;;  %v3232_v17 = vmul.f32 %v5633_v4, %v5633_v4 }
 0x698   :  { %v3217_v40 = vmul.f32 0.03125, %v3199_v50  ;;  %v3231_v16 = vmul.f32 %v5636_v38, %v5636_v38 }
 0x699   :  { %v5643_v7 = vsub.f32 %v5508_v29, %v3218_v12  ;;  %v3242_v32 = vsel %vm163_vm0, %v3232_v17, 0.0 }
 0x69a   :  { %v5647_v59 = vsub.f32 %v5510_v9, %v3217_v40  ;;  %v3208_v33 = vpop.xlane.xlu1 %3207  ;;  %3243 = vadd.xlane.f32.xlu1 %v3242_v32  ;;  %v3239_v13 = vsel %vm163_vm0, %v3231_v16, 0.0 }
 0x69b   :  { %v3220_v22 = vmul.f32 0.03125, %v3208_v33  ;;  %3240 = vadd.xlane.f32.xlu0 %v3239_v13  ;;  %v3205_v31 = vpop.xlane.xlu0 %3204  ;;  %v3234_v45 = vmul.f32 %v5643_v7, %v5643_v7 }
 0x69c   :  { %v3219_v8 = vmul.f32 0.03125, %v3205_v31  ;;  %v3233_v29 = vmul.f32 %v5647_v59, %v5647_v59 }
 0x69d   :  { %v5655_v30 = vsub.f32 %v5517_v56, %v3220_v22  ;;  %v3248_v9 = vsel %vm163_vm0, %v3234_v45, 0.0 }
 0x69e   :  { %v5659_v15 = vsub.f32 %v5520_v54, %v3219_v8  ;;  %3249 = vadd.xlane.f32.xlu1 %v3248_v9  ;;  %v3214_v26 = vpop.xlane.xlu1 %3213  ;;  %v3245_v52 = vsel %vm163_vm0, %v3233_v29, 0.0 }
 0x69f   :  { %v3222_v24 = vmul.f32 0.03125, %v3214_v26  ;;  %3246 = vadd.xlane.f32.xlu0 %v3245_v52  ;;  %v3236_v19 = vmul.f32 %v5655_v30, %v5655_v30 }
 0x6a0   :  { %v3235_v12 = vmul.f32 %v5659_v15, %v5659_v15 }
 0x6a1   :  { %v5667_v56 = vsub.f32 %v5530_v34, %v3222_v24  ;;  %v3211_v50 = vpop.xlane.xlu0 %3210  ;;  %v3254_v17 = vsel %vm163_vm0, %v3236_v19, 0.0 }
 0x6a2   :  { %v3221_v54 = vmul.f32 0.03125, %v3211_v50  ;;  %3255 = vadd.xlane.f32.xlu1 %v3254_v17  ;;  %v1885_v40 = vpop.xlane.xlu1 %1884  ;;  %v3251_v16 = vsel %vm163_vm0, %v3235_v12, 0.0 }
 0x6a3   :  { %v1929_v32 = vmul.f32 0.03125, %v1885_v40  ;;  %3252 = vadd.xlane.f32.xlu0 %v3251_v16  ;;  %v3238_v33 = vmul.f32 %v5667_v56, %v5667_v56 }
 0x6a4   :  { %v5674_v13 = vsub.f32 %v5543_v36, %v3221_v54 }
 0x6a5   :  { %v1945_v22 = vadd.f32 1e-05, %v1929_v32  ;;  %v1882_v31 = vpop.xlane.xlu0 %1881  ;;  %v3260_v34 = vsel %vm163_vm0, %v3238_v33, 0.0 }
 0x6a6   :  { %v1928_v45 = vmul.f32 0.03125, %v1882_v31  ;;  %3261 = vadd.xlane.f32.xlu1 %v3260_v34  ;;  %v1891_v8 = vpop.xlane.xlu1 %1890  ;;  %v3237_v29 = vmul.f32 %v5674_v13, %v5674_v13  ;;  %v5686_v34 = vld [vmem:[%s3372_s3] ss:$0 sm:$0xff] }
 0x6a7   :  { %4322 = vrsqrt.f32 %v1945_v22  ;;  %v1931_v9 = vmul.f32 0.03125, %v1891_v8 }
 0x6a8   :  { %v1944_v26 = vadd.f32 1e-05, %v1928_v45  ;;  %v3257_v52 = vsel %vm163_vm0, %v3237_v29, 0.0 }
 0x6a9   :  { %v1947_v36 = vadd.f32 1e-05, %v1931_v9  ;;  %3258 = vadd.xlane.f32.xlu0 %v3257_v52  ;;  %v1888_v24 = vpop.xlane.xlu0 %1887  ;;  %v5689_v52 = vld [vmem:[%s3373_s8] ss:$0 sm:$0xff] }
 0x6aa   :  { %4324 = vrsqrt.f32 %v1944_v26  ;;  %v1930_v19 = vmul.f32 0.03125, %v1888_v24  ;;  %v1897_v12 = vpop.xlane.xlu1 %1896 }
 0x6ab   :  { %4326 = vrsqrt.f32 %v1947_v36  ;;  %v1933_v50 = vmul.f32 0.03125, %v1897_v12 }
 0x6ac   :  { %v1946_v17 = vadd.f32 1e-05, %v1930_v19 }
 0x6ad   :  { %v1949_v54 = vadd.f32 1e-05, %v1933_v50  ;;  %v1894_v40 = vpop.xlane.xlu0 %1893 }
 0x6ae   :  { %4328 = vrsqrt.f32 %v1946_v17  ;;  %v1932_v16 = vmul.f32 0.03125, %v1894_v40  ;;  %v1903_v32 = vpop.xlane.xlu1 %1902 }
 0x6af   :  { %4330 = vrsqrt.f32 %v1949_v54  ;;  %v1935_v33 = vmul.f32 0.03125, %v1903_v32 }
 0x6b0   :  { %v1948_v22 = vadd.f32 1e-05, %v1932_v16 }
 0x6b1   :  { %v4323_v31 = vpop.eup %4322  ;;  %v1951_v45 = vadd.f32 1e-05, %v1935_v33  ;;  %v1900_v8 = vpop.xlane.xlu0 %1899 }
 0x6b2   :  { %v1977_v29 = vmul.f32 %v4323_v31, %v5523_v53  ;;  %4332 = vrsqrt.f32 %v1948_v22  ;;  %v1934_v9 = vmul.f32 0.03125, %v1900_v8  ;;  %v1909_v26 = vpop.xlane.xlu1 %1908 }
 0x6b3   :  { %4334 = vrsqrt.f32 %v1951_v45  ;;  %v1937_v36 = vmul.f32 0.03125, %v1909_v26 }
 0x6b4   :  { %v4325_v24 = vpop.eup %4324  ;;  %v1999_v19 = vmul.f32 %v5686_v34, %v1977_v29  ;;  %v1950_v12 = vadd.f32 1e-05, %v1934_v9 }
 0x6b5   :  { %v4327_v50 = vpop.eup %4326  ;;  %v1976_v53 = vmul.f32 %v4325_v24, %v5533_v57  ;;  %v1953_v17 = vadd.f32 1e-05, %v1937_v36  ;;  %v1906_v54 = vpop.xlane.xlu0 %1905 }
 0x6b6   :  { %v2021_v40 = vadd.f32 %v5689_v52, %v1999_v19  ;;  %v1979_v16 = vmul.f32 %v4327_v50, %v5536_v10  ;;  %4336 = vrsqrt.f32 %v1950_v12  ;;  %v1936_v32 = vmul.f32 0.03125, %v1906_v54  ;;  %v1915_v33 = vpop.xlane.xlu1 %1914  ;;  %v4370_v19 = vld [vmem:[%s4469_s9 + $0x8] sm:$0xff] }
 0x6b7   :  { %v1998_v22 = vmul.f32 %v5686_v34, %v1976_v53  ;;  %4338 = vrsqrt.f32 %v1953_v17  ;;  %v1939_v31 = vmul.f32 0.03125, %v1915_v33 }
 0x6b8   :  { %v4329_v45 = vpop.eup %4328  ;;  %v2037_v8 = vadd.f32 %v2021_v40, %v5001_v6  ;;  %v2001_v29 = vmul.f32 %v5686_v34, %v1979_v16  ;;  %v1952_v57 = vadd.f32 1e-05, %v1936_v32 }
 0x6b9   :  { %v4331_v9 = vpop.eup %4330  ;;  %v2020_v26 = vadd.f32 %v5689_v52, %v1998_v22  ;;  %v1978_v10 = vmul.f32 %v4329_v45, %v5546_v5  ;;  %v1955_v36 = vadd.f32 1e-05, %v1939_v31  ;;  %v1912_v24 = vpop.xlane.xlu0 %1911 }
 0x6ba   :  { %v2053_v12 = vadd.f32 %v4370_v19, %v2037_v8  ;;  %v2023_v50 = vadd.f32 %v5689_v52, %v2001_v29  ;;  %v1981_v53 = vmul.f32 %v4331_v9, %v5553_v62  ;;  %4340 = vrsqrt.f32 %v1952_v57  ;;  %v1921_v6 = vpop.xlane.xlu1 %1920  ;;  %v4371_v62 = vld [vmem:[%s4469_s9] sm:$0xff]  ;;  %v4372_v57 = vld [vmem:[%s4469_s9 + $0x18] sm:$0xff] }
 0x6bb   :  { %v2036_v17 = vadd.f32 %v2020_v26, %v5004_v28  ;;  %v2000_v54 = vmul.f32 %v5686_v34, %v1978_v10  ;;  %4342 = vrsqrt.f32 %v1955_v36  ;;  %v1938_v40 = vmul.f32 0.03125, %v1912_v24 }
 0x6bc   :  { %v4333_v16 = vpop.eup %4332  ;;  %2069 = vst.msk [vmem:[%s5694_s13 + $0x8] sm:$0xff] %vm163_vm0, %v2053_v12  ;;  %v2039_v5 = vadd.f32 %v2023_v50, %v5011_v44  ;;  %v2003_v32 = vmul.f32 %v5686_v34, %v1981_v53  ;;  %v1941_v33 = vmul.f32 0.03125, %v1921_v6 }
 0x6bd   :  { %v4335_v22 = vpop.eup %4334  ;;  %v2052_v31 = vadd.f32 %v4371_v62, %v2036_v17  ;;  %v2022_v45 = vadd.f32 %v5689_v52, %v2000_v54  ;;  %v1980_v28 = vmul.f32 %v4333_v16, %v5559_v47  ;;  %v1954_v8 = vadd.f32 1e-05, %v1938_v40  ;;  %v1918_v29 = vpop.xlane.xlu0 %1917  ;;  %v4373_v17 = vld [vmem:[%s4469_s9 + $0x10] sm:$0xff] }
 0x6be   :  { %v2055_v9 = vadd.f32 %v4372_v57, %v2039_v5  ;;  %v2025_v26 = vadd.f32 %v5689_v52, %v2003_v32  ;;  %v1983_v44 = vmul.f32 %v4335_v22, %v5565_v55  ;;  %v1957_v10 = vadd.f32 1e-05, %v1941_v33  ;;  %v1927_v36 = vpop.xlane.xlu1 %1926  ;;  %v4374_v32 = vld [vmem:[%s4469_s9 + $0x28] sm:$0xff]  ;;  %v4375_v57 = vld [vmem:[%s4469_s9 + $0x20] sm:$0xff] }
 0x6bf   :  { %2068 = vst.msk [vmem:[%s5694_s13] sm:$0xff] %vm163_vm0, %v2052_v31  ;;  %v2038_v24 = vadd.f32 %v2022_v45, %v5014_v41  ;;  %v2002_v19 = vmul.f32 %v5686_v34, %v1980_v28  ;;  %4344 = vrsqrt.f32 %v1954_v8  ;;  %v1940_v47 = vmul.f32 0.03125, %v1918_v29 }
 0x6c0   :  { %v4337_v12 = vpop.eup %4336  ;;  %2071 = vst.msk [vmem:[%s5694_s13 + $0x18] sm:$0xff] %vm163_vm0, %v2055_v9  ;;  %v2041_v50 = vadd.f32 %v2025_v26, %v5019_v43  ;;  %v2005_v53 = vmul.f32 %v5686_v34, %v1983_v44  ;;  %4346 = vrsqrt.f32 %v1957_v10  ;;  %v1943_v55 = vmul.f32 0.03125, %v1927_v36  ;;  %v4376_v10 = vld [vmem:[%s4469_s9 + $0x38] sm:$0xff] }
 0x6c1   :  { %v4339_v6 = vpop.eup %4338  ;;  %v2054_v54 = vadd.f32 %v4373_v17, %v2038_v24  ;;  %v2024_v41 = vadd.f32 %v5689_v52, %v2002_v19  ;;  %v1982_v40 = vmul.f32 %v4337_v12, %v5571_v42  ;;  %v1956_v16 = vadd.f32 1e-05, %v1940_v47  ;;  %v1924_v5 = vpop.xlane.xlu0 %1923  ;;  %v4378_v17 = vld [vmem:[%s4469_s9 + $0x48] sm:$0xff] }
 0x6c2   :  { %v2057_v33 = vadd.f32 %v4374_v32, %v2041_v50  ;;  %v2027_v43 = vadd.f32 %v5689_v52, %v2005_v53  ;;  %v1985_v22 = vmul.f32 %v4339_v6, %v5577_v60  ;;  %v1959_v62 = vadd.f32 1e-05, %v1943_v55  ;;  %v4377_v53 = vld [vmem:[%s4469_s9 + $0x30] sm:$0xff] }
 0x6c3   :  { %2070 = vst.msk [vmem:[%s5694_s13 + $0x10] sm:$0xff] %vm163_vm0, %v2054_v54  ;;  %v2040_v31 = vadd.f32 %v2024_v41, %v5024_v11  ;;  %v2004_v45 = vmul.f32 %v5686_v34, %v1982_v40  ;;  %4348 = vrsqrt.f32 %v1956_v16  ;;  %v1942_v28 = vmul.f32 0.03125, %v1924_v5 }
 0x6c4   :  { %v4341_v42 = vpop.eup %4340  ;;  %2073 = vst.msk [vmem:[%s5694_s13 + $0x28] sm:$0xff] %vm163_vm0, %v2057_v33  ;;  %v2043_v8 = vadd.f32 %v2027_v43, %v5029_v37  ;;  %v2007_v29 = vmul.f32 %v5686_v34, %v1985_v22  ;;  %4350 = vrsqrt.f32 %v1959_v62  ;;  %v4379_v33 = vld [vmem:[%s4469_s9 + $0x40] sm:$0xff]  ;;  %v4380_v62 = vld [vmem:[%s4469_s9 + $0x58] sm:$0xff] }
 0x6c5   :  { %v4343_v60 = vpop.eup %4342  ;;  %v2056_v9 = vadd.f32 %v4375_v57, %v2040_v31  ;;  %v2026_v11 = vadd.f32 %v5689_v52, %v2004_v45  ;;  %v1984_v26 = vmul.f32 %v4341_v42, %v5583_v49  ;;  %v1958_v44 = vadd.f32 1e-05, %v1942_v28 }
 0x6c6   :  { %v2059_v36 = vadd.f32 %v4376_v10, %v2043_v8  ;;  %v2029_v24 = vadd.f32 %v5689_v52, %v2007_v29  ;;  %v1987_v37 = vmul.f32 %v4343_v60, %v5589_v21  ;;  %v4381_v60 = vld [vmem:[%s4469_s9 + $0x50] sm:$0xff] }
 0x6c7   :  { %2072 = vst.msk [vmem:[%s5694_s13 + $0x20] sm:$0xff] %vm163_vm0, %v2056_v9  ;;  %v2042_v19 = vadd.f32 %v2026_v11, %v5035_v27  ;;  %v2006_v47 = vmul.f32 %v5686_v34, %v1984_v26  ;;  %4352 = vrsqrt.f32 %v1958_v44  ;;  %v4382_v11 = vld [vmem:[%s4469_s9 + $0x68] sm:$0xff] }
 0x6c8   :  { %2075 = vst.msk [vmem:[%s5694_s13 + $0x38] sm:$0xff] %vm163_vm0, %v2059_v36  ;;  %v2045_v49 = vadd.f32 %v2029_v24, %v5049_v23  ;;  %v2009_v12 = vmul.f32 %v5686_v34, %v1987_v37  ;;  %v4383_v36 = vld [vmem:[%s4469_s9 + $0x60] sm:$0xff]  ;;  %v4384_v37 = vld [vmem:[%s4469_s9 + $0x78] sm:$0xff] }
 0x6c9   :  { %v4345_v50 = vpop.eup %4344  ;;  %v2058_v55 = vadd.f32 %v4377_v53, %v2042_v19  ;;  %v2028_v21 = vadd.f32 %v5689_v52, %v2006_v47 }
 0x6ca   :  { %v4347_v6 = vpop.eup %4346  ;;  %v2061_v27 = vadd.f32 %v4378_v17, %v2045_v49  ;;  %v2031_v54 = vadd.f32 %v5689_v52, %v2009_v12  ;;  %v1986_v41 = vmul.f32 %v4345_v50, %v5595_v35  ;;  %v4385_v49 = vld [vmem:[%s4469_s9 + $0x70] sm:$0xff]  ;;  %s3374_s9 = sld [smem:[%s5868_s0 + %s4427_s14]]  }
 0x6cb   :  { %2074 = vst.msk [vmem:[%s5694_s13 + $0x30] sm:$0xff] %vm163_vm0, %v2058_v55  ;;  %v2044_v23 = vadd.f32 %v2028_v21, %v5055_v14  ;;  %v1989_v40 = vmul.f32 %v4347_v6, %v5601_v2 }
 0x6cc   :  { %2077 = vst.msk [vmem:[%s5694_s13 + $0x48] sm:$0xff] %vm163_vm0, %v2061_v27  ;;  %v2047_v16 = vadd.f32 %v2031_v54, %v5067_v63  ;;  %v2008_v5 = vmul.f32 %v5686_v34, %v1986_v41 }
 0x6cd   :  { %v4349_v32 = vpop.eup %4348  ;;  %v2060_v43 = vadd.f32 %v4379_v33, %v2044_v23  ;;  %v2011_v35 = vmul.f32 %v5686_v34, %v1989_v40 }
 0x6ce   :  { %v4351_v22 = vpop.eup %4350  ;;  %v2063_v31 = vadd.f32 %v4380_v62, %v2047_v16  ;;  %v2030_v14 = vadd.f32 %v5689_v52, %v2008_v5  ;;  %v1988_v2 = vmul.f32 %v4349_v32, %v5607_v25 }
 0x6cf   :  { %2076 = vst.msk [vmem:[%s5694_s13 + $0x40] sm:$0xff] %vm163_vm0, %v2060_v43  ;;  %v2033_v63 = vadd.f32 %v5689_v52, %v2011_v35  ;;  %v1991_v45 = vmul.f32 %v4351_v22, %v5613_v48 }
 0x6d0   :  { %2079 = vst.msk [vmem:[%s5694_s13 + $0x58] sm:$0xff] %vm163_vm0, %v2063_v31  ;;  %v2046_v28 = vadd.f32 %v2030_v14, %v5080_v46  ;;  %v2010_v42 = vmul.f32 %v5686_v34, %v1988_v2  ;;  %v5813_v35 = vld [vmem:[%s3374_s9] ss:$0 sm:$0xff] }
 0x6d1   :  { %v4353_v8 = vpop.eup %4352  ;;  %v2049_v29 = vadd.f32 %v2033_v63, %v5092_v58  ;;  %v2013_v25 = vmul.f32 %v5686_v34, %v1991_v45  ;;  %v3573_v63 = vld [vmem:[%s3375_s21] ss:$0 sm:$0xff] }
 0x6d2   :  { %v2062_v57 = vadd.f32 %v4381_v60, %v2046_v28  ;;  %v2032_v9 = vadd.f32 %v5689_v52, %v2010_v42  ;;  %v1990_v48 = vmul.f32 %v4353_v8, %v5619_v0  ;;  %v4386_v60 = vld [vmem:[%s4438_s5 + $0x8] sm:$0xff] }
 0x6d3   :  { %v2065_v46 = vadd.f32 %v4382_v11, %v2049_v29  ;;  %v2035_v26 = vadd.f32 %v5689_v52, %v2013_v25 }
 0x6d4   :  { %2078 = vst.msk [vmem:[%s5694_s13 + $0x50] sm:$0xff] %vm163_vm0, %v2062_v57  ;;  %v2048_v58 = vadd.f32 %v2032_v9, %v5098_v1  ;;  %v2012_v44 = vmul.f32 %v5686_v34, %v1990_v48  ;;  %v3324_v57 = vadd.f32 %v4386_v60, %v5032_v39  ;;  %v4387_v48 = vld [vmem:[%s4438_s5] sm:$0xff] }
 0x6d5   :  { %2081 = vst.msk [vmem:[%s5694_s13 + $0x68] sm:$0xff] %vm163_vm0, %v2065_v46  ;;  %v2051_v10 = vadd.f32 %v2035_v26, %v5113_v61 }
 0x6d6   :  { %v2064_v24 = vadd.f32 %v4383_v36, %v2048_v58  ;;  %v2034_v0 = vadd.f32 %v5689_v52, %v2012_v44 }
 0x6d7   :  { %v2067_v19 = vadd.f32 %v4384_v37, %v2051_v10 }
 0x6d8   :  { %2080 = vst.msk [vmem:[%s5694_s13 + $0x60] sm:$0xff] %vm163_vm0, %v2064_v24  ;;  %v2050_v47 = vadd.f32 %v2034_v0, %v5120_v18  ;;  %v4388_v24 = vld [vmem:[%s4438_s5 + $0x18] sm:$0xff] }
 0x6d9   :  { %2083 = vst.msk [vmem:[%s5694_s13 + $0x78] sm:$0xff] %vm163_vm0, %v2067_v19 }
 0x6da   :  { %v2066_v1 = vadd.f32 %v4385_v49, %v2050_v47 }
 0x6dc   :  { %2082 = vst.msk [vmem:[%s5694_s13 + $0x70] sm:$0xff] %vm163_vm0, %v2066_v1 }
 0x727   :  { %v3244_v34 = vpop.xlane.xlu1 %3243 }
 0x728   :  { %v3264_v12 = vmul.f32 0.03125, %v3244_v34  ;;  %v3241_v50 = vpop.xlane.xlu0 %3240 }
 0x729   :  { %v3263_v61 = vmul.f32 0.03125, %v3241_v50  ;;  %v4390_v50 = vld [vmem:[%s4438_s5 + $0x28] sm:$0xff] }
 0x72a   :  { %v3272_v53 = vadd.f32 1e-05, %v3264_v12 }
 0x72b   :  { %v3271_v55 = vadd.f32 1e-05, %v3263_v61  ;;  %v3250_v21 = vpop.xlane.xlu1 %3249 }
 0x72c   :  { %4354 = vrsqrt.f32 %v3272_v53  ;;  %v3266_v52 = vmul.f32 0.03125, %v3250_v21  ;;  %v3247_v6 = vpop.xlane.xlu0 %3246 }
 0x72d   :  { %4356 = vrsqrt.f32 %v3271_v55  ;;  %v3265_v17 = vmul.f32 0.03125, %v3247_v6  ;;  %v4391_v55 = vld [vmem:[%s4438_s5 + $0x20] sm:$0xff] }
 0x72e   :  { %v3274_v18 = vadd.f32 1e-05, %v3266_v52 }
 0x72f   :  { %v3273_v27 = vadd.f32 1e-05, %v3265_v17  ;;  %v3256_v54 = vpop.xlane.xlu1 %3255 }
 0x730   :  { %4358 = vrsqrt.f32 %v3274_v18  ;;  %v3268_v41 = vmul.f32 0.03125, %v3256_v54  ;;  %v3253_v23 = vpop.xlane.xlu0 %3252 }
 0x731   :  { %4360 = vrsqrt.f32 %v3273_v27  ;;  %v3267_v40 = vmul.f32 0.03125, %v3253_v23  ;;  %v5882_v23 = vld [vmem:[#allocation4_spill] sm:$0xff] }
 0x732   :  { %v3276_v16 = vadd.f32 1e-05, %v3268_v41  ;;  %v4392_v41 = vld [vmem:[%s4438_s5 + $0x38] sm:$0xff] }
 0x733   :  { %v3275_v5 = vadd.f32 1e-05, %v3267_v40  ;;  %v3262_v32 = vpop.xlane.xlu1 %3261  ;;  %v3330_v40 = vadd.f32 %v4392_v41, %v5882_v23 }
 0x734   :  { %4362 = vrsqrt.f32 %v3276_v16  ;;  %v3270_v33 = vmul.f32 0.03125, %v3262_v32  ;;  %v4393_v32 = vld [vmem:[%s4438_s5 + $0x30] sm:$0xff] }
 0x735   :  { %4364 = vrsqrt.f32 %v3275_v5 }
 0x736   :  { %v4355_v43 = vpop.eup %4354  ;;  %v3278_v22 = vadd.f32 1e-05, %v3270_v33  ;;  %v3259_v62 = vpop.xlane.xlu0 %3258  ;;  %v5883_v33 = vld [vmem:[#allocation5_spill] sm:$0xff] }
 0x737   :  { %v4357_v31 = vpop.eup %4356  ;;  %v3288_v14 = vmul.f32 %v4355_v43, %v5633_v4  ;;  %v3269_v2 = vmul.f32 0.03125, %v3259_v62  ;;  %v3329_v43 = vadd.f32 %v4393_v32, %v5883_v33 }
 0x738   :  { %v3287_v45 = vmul.f32 %v4357_v31, %v5636_v38  ;;  %4366 = vrsqrt.f32 %v3278_v22  ;;  %v3323_v38 = vadd.f32 %v4387_v48, %v5038_v3 }
 0x739   :  { %v3302_v28 = vmul.f32 %v5813_v35, %v3288_v14  ;;  %v3277_v42 = vadd.f32 1e-05, %v3269_v2 }
 0x73a   :  { %v4359_v8 = vpop.eup %4358  ;;  %v3301_v29 = vmul.f32 %v5813_v35, %v3287_v45 }
 0x73b   :  { %v4361_v25 = vpop.eup %4360  ;;  %v3316_v9 = vadd.f32 %v3573_v63, %v3302_v28  ;;  %v3290_v4 = vmul.f32 %v4359_v8, %v5643_v7  ;;  %4368 = vrsqrt.f32 %v3277_v42  ;;  %v3326_v7 = vadd.f32 %v4388_v24, %v5052_v51 }
 0x73c   :  { %v3315_v11 = vadd.f32 %v3573_v63, %v3301_v29  ;;  %v3289_v46 = vmul.f32 %v4361_v25, %v5647_v59  ;;  %v4389_v59 = vld [vmem:[%s4438_s5 + $0x10] sm:$0xff] }
 0x73d   :  { %v3332_v26 = vadd.f32 %v3324_v57, %v3316_v9  ;;  %v3304_v58 = vmul.f32 %v5813_v35, %v3290_v4  ;;  %v3325_v37 = vadd.f32 %v4389_v59, %v5058_v20 }
 0x73e   :  { %v4363_v44 = vpop.eup %4362  ;;  %v3331_v10 = vadd.f32 %v3323_v38, %v3315_v11  ;;  %v3303_v39 = vmul.f32 %v5813_v35, %v3289_v46 }
 0x73f   :  { %v4365_v36 = vpop.eup %4364  ;;  %3340 = vst.msk [vmem:[%s5818_s25 + $0x8] sm:$0xff] %vm163_vm0, %v3332_v26  ;;  %v3318_v3 = vadd.f32 %v3573_v63, %v3304_v58  ;;  %v3292_v0 = vmul.f32 %v4363_v44, %v5655_v30  ;;  %v5880_v30 = vld [vmem:[#allocation2_spill] sm:$0xff] }
 0x740   :  { %3339 = vst.msk [vmem:[%s5818_s25] sm:$0xff] %vm163_vm0, %v3331_v10  ;;  %v3317_v19 = vadd.f32 %v3573_v63, %v3303_v39  ;;  %v3291_v47 = vmul.f32 %v4365_v36, %v5659_v15  ;;  %v3328_v61 = vadd.f32 %v4390_v50, %v5880_v30  ;;  %v5881_v15 = vld [vmem:[#allocation3_spill] sm:$0xff] }
 0x741   :  { %v3334_v49 = vadd.f32 %v3326_v7, %v3318_v3  ;;  %v3306_v1 = vmul.f32 %v5813_v35, %v3292_v0  ;;  %v3327_v21 = vadd.f32 %v4391_v55, %v5881_v15 }
 0x742   :  { %v4367_v51 = vpop.eup %4366  ;;  %v3333_v34 = vadd.f32 %v3325_v37, %v3317_v19  ;;  %v3305_v12 = vmul.f32 %v5813_v35, %v3291_v47 }
 0x743   :  { %3342 = vst.msk [vmem:[%s5818_s25 + $0x18] sm:$0xff] %vm163_vm0, %v3334_v49  ;;  %v3320_v20 = vadd.f32 %v3573_v63, %v3306_v1  ;;  %v3294_v53 = vmul.f32 %v4367_v51, %v5667_v56 }
 0x744   :  { %3341 = vst.msk [vmem:[%s5818_s25 + $0x10] sm:$0xff] %vm163_vm0, %v3333_v34  ;;  %v3319_v52 = vadd.f32 %v3573_v63, %v3305_v12 }
 0x745   :  { %v4369_v6 = vpop.eup %4368  ;;  %v3336_v17 = vadd.f32 %v3328_v61, %v3320_v20  ;;  %v3308_v18 = vmul.f32 %v5813_v35, %v3294_v53 }
 0x746   :  { %v3335_v27 = vadd.f32 %v3327_v21, %v3319_v52  ;;  %v3293_v54 = vmul.f32 %v4369_v6, %v5674_v13 }
 0x747   :  { %3344 = vst.msk [vmem:[%s5818_s25 + $0x28] sm:$0xff] %vm163_vm0, %v3336_v17  ;;  %v3322_v56 = vadd.f32 %v3573_v63, %v3308_v18 }
 0x748   :  { %3343 = vst.msk [vmem:[%s5818_s25 + $0x20] sm:$0xff] %vm163_vm0, %v3335_v27  ;;  %v3307_v16 = vmul.f32 %v5813_v35, %v3293_v54 }
 0x749   :  { %v3338_v5 = vadd.f32 %v3330_v40, %v3322_v56 }
 0x74a   :  { %v3321_v22 = vadd.f32 %v3573_v63, %v3307_v16 }
 0x74b   :  { %3346 = vst.msk [vmem:[%s5818_s25 + $0x38] sm:$0xff] %vm163_vm0, %v3338_v5 }
 0x74c   :  { %v3337_v62 = vadd.f32 %v3329_v43, %v3321_v22 }
 0x74e   :  { %3345 = vst.msk [vmem:[%s5818_s25 + $0x30] sm:$0xff] %vm163_vm0, %v3337_v62 }

</bundles_post_ra>
